<compile_context>
chip_gen: v7x
topology: tpu7x:2x2x1
jax: 0.10.0
libtpu: 0.0.40
codegen_flags: <defaults>
</compile_context>

<pallas_src>
import functools

import jax
import jax.numpy as jnp
from jax.experimental import pallas as pl
from jax.experimental.pallas import tpu as pltpu


def _round_up(x, m):
    return ((x + m - 1) // m) * m


def _vmem_limit_bytes():
    """Scoped-VMEM budget per generation (feedback): v5e/v6e have 128 MiB of
    physical VMEM -> allow big resident tiles; v7x has 64 MiB per TensorCore ->
    stay <= ~48 MiB so double-buffering still fits."""
    try:
        kind = jax.devices()[0].device_kind.lower()
    except Exception:  # pragma: no cover - defensive, keep a safe default
        kind = ""
    if "v5" in kind or "v6" in kind:
        return 96 * 1024 * 1024
    return 48 * 1024 * 1024


_VMEM_LIMIT = _vmem_limit_bytes()


# ----------------------------------------------------------------------------
# Pallas kernels
# ----------------------------------------------------------------------------
def _matmul_bias_act_kernel(x_ref, w_ref, b_ref, o_ref, *, relu):
    """o = (relu)(x @ w + b); bf16 operands, f32 accumulation on the MXU."""
    acc = jnp.dot(x_ref[...], w_ref[...], preferred_element_type=jnp.float32)
    acc = acc + b_ref[...]
    if relu:
        acc = jnp.maximum(acc, 0.0)
    o_ref[...] = acc.astype(o_ref.dtype)


def _conv3_mlp_head_kernel(p3_ref, w3_ref, b3_ref, w1_ref, b1_ref,
                           wh_ref, bh_ref, o_ref, acc_ref):
    """Fused conv3 + ReLU + lin1 + ReLU + head for one batch tile.

    p3_ref: (P, tile_n, K3) conv3 im2col patches, spatial-major so p3_ref[p] is a
    lane-dense (tile_n, K3) slab.  For each spatial position p the conv3 output
    block multiplies the matching 64-row block of lin1's (HWC-ordered) weight and
    accumulates into an explicit f32 VMEM scratch -- neither the conv3 activation
    nor the 512-wide hidden ever touches HBM."""
    n_pos = p3_ref.shape[0]       # conv3 output positions per image (e.g. 16)
    c3_ch = w3_ref.shape[1]       # conv3 output channels (64)
    for p in range(n_pos):        # static unroll: small, fixed trip count
        c3 = jnp.dot(p3_ref[p], w3_ref[...], preferred_element_type=jnp.float32)
        # bf16 immediately after bias+ReLU so only the narrow copy stays live.
        c3 = jnp.maximum(c3 + b3_ref[...], 0.0).astype(jnp.bfloat16)
        contrib = jnp.dot(c3, w1_ref[p * c3_ch:(p + 1) * c3_ch, :],
                          preferred_element_type=jnp.float32)
        if p == 0:
            acc_ref[...] = contrib          # init the VMEM-staged hidden
        else:
            acc_ref[...] += contrib
    h = jnp.maximum(acc_ref[...] + b1_ref[...], 0.0).astype(jnp.bfloat16)
    out = jnp.dot(h, wh_ref[...], preferred_element_type=jnp.float32)
    o_ref[...] = (out + bh_ref[...]).astype(o_ref.dtype)   # 128-lane-dense store


# ----------------------------------------------------------------------------
# pallas_call wrappers (row padding / tiling, cost estimates)
# ----------------------------------------------------------------------------
def _row_tiling(m, max_tile=512):
    """(padded_rows, tile_rows).  Rows are padded to a multiple of 8.  Problems
    above 256 rows get at least 2 row blocks (so v7x's two TensorCores both work)
    and at most `max_tile` rows per block (mem-bound throughput sweet spot)."""
    m8 = _round_up(m, 8)
    if m8 <= 256:
        return m8, m8
    tile = min(max_tile, _round_up((m8 + 1) // 2, 8))
    return _round_up(m8, tile), tile


def _pad_rows(x, rows):
    pad = rows - x.shape[0]
    if pad:
        x = jnp.pad(x, ((0, pad), (0, 0)))
    return x


def pallas_matmul_bias_act(x, w, b, *, relu, out_dtype):
    """(relu)(x @ w + b).  x:(M,K) bf16, w:(K,N) bf16, b:(1,N) f32 -> (M,N)."""
    m, k = x.shape
    k2, n = w.shape
    assert k == k2, (k, k2)
    m_pad, tile_m = _row_tiling(m, max_tile=512)
    x = _pad_rows(x, m_pad)

    flops = 2 * m_pad * k * n + 2 * m_pad * n
    bytes_accessed = ((m_pad * k + k * n) * 2 + n * 4
                      + m_pad * n * jnp.dtype(out_dtype).itemsize)
    out = pl.pallas_call(
        functools.partial(_matmul_bias_act_kernel, relu=relu),
        out_shape=jax.ShapeDtypeStruct((m_pad, n), out_dtype),
        grid=(m_pad // tile_m,),
        in_specs=[
            pl.BlockSpec((tile_m, k), lambda i: (i, 0)),
            pl.BlockSpec((k, n), lambda i: (0, 0)),
            pl.BlockSpec((1, n), lambda i: (0, 0)),
        ],
        out_specs=pl.BlockSpec((tile_m, n), lambda i: (i, 0)),
        compiler_params=pltpu.CompilerParams(
            dimension_semantics=("parallel",),
            vmem_limit_bytes=_VMEM_LIMIT,
        ),
        cost_estimate=pl.CostEstimate(
            flops=flops, transcendentals=0, bytes_accessed=bytes_accessed),
    )(x, w, b)
    return out[:m]


def pallas_conv3_mlp_head(p3, w3, b3, w1, b1, wh, bh):
    """Fused conv3+ReLU+lin1+ReLU+head.  p3:(P,N,K3) bf16 -> (N, n_out_pad) f32."""
    n_pos, n, k3 = p3.shape
    c3_ch = w3.shape[1]
    hdim = w1.shape[1]
    n_out = wh.shape[1]
    n_pad, tile_n = _row_tiling(n, max_tile=256)
    if n_pad != n:
        p3 = jnp.pad(p3, ((0, 0), (0, n_pad - n), (0, 0)))

    flops = 2 * n_pad * (n_pos * k3 * c3_ch + n_pos * c3_ch * hdim + hdim * n_out)
    bytes_accessed = (n_pad * n_pos * k3 * 2
                      + (k3 * c3_ch + n_pos * c3_ch * hdim + hdim * n_out) * 2
                      + (c3_ch + hdim + n_out) * 4
                      + n_pad * n_out * 4)
    out = pl.pallas_call(
        _conv3_mlp_head_kernel,
        out_shape=jax.ShapeDtypeStruct((n_pad, n_out), jnp.float32),
        grid=(n_pad // tile_n,),
        in_specs=[
            pl.BlockSpec((n_pos, tile_n, k3), lambda i: (0, i, 0)),
            pl.BlockSpec((k3, c3_ch), lambda i: (0, 0)),
            pl.BlockSpec((1, c3_ch), lambda i: (0, 0)),
            pl.BlockSpec((n_pos * c3_ch, hdim), lambda i: (0, 0)),
            pl.BlockSpec((1, hdim), lambda i: (0, 0)),
            pl.BlockSpec((hdim, n_out), lambda i: (0, 0)),
            pl.BlockSpec((1, n_out), lambda i: (0, 0)),
        ],
        out_specs=pl.BlockSpec((tile_n, n_out), lambda i: (i, 0)),
        scratch_shapes=[pltpu.VMEM((tile_n, hdim), jnp.float32)],
        compiler_params=pltpu.CompilerParams(
            dimension_semantics=("parallel",),
            vmem_limit_bytes=_VMEM_LIMIT,
        ),
        cost_estimate=pl.CostEstimate(
            flops=flops, transcendentals=0, bytes_accessed=bytes_accessed),
    )(p3, w3, b3, w1, b1, wh, bh)
    return out[:n]


# ----------------------------------------------------------------------------
# Patch extraction (one fused XLA op, NHWC) + Pallas matmul = Conv2d + ReLU
# ----------------------------------------------------------------------------
def _extract_patches_nhwc(x, kernel_size, stride):
    """x:(N,H,W,C) -> (N,OH,OW,C*kh*kw), 'VALID' windows.  Feature order is
    channel-major: feature index = c*kh*kw + ki*kw + kj (matches the conv weight
    repack below).  One fused XLA op -- no slice/stack/concat materialization."""
    return jax.lax.conv_general_dilated_patches(
        x,
        filter_shape=(kernel_size, kernel_size),
        window_strides=(stride, stride),
        padding="VALID",
        dimension_numbers=("NHWC", "HWIO", "NHWC"))


def conv2d_relu_nhwc(x, w_flat, b, *, kernel_size, stride):
    """Conv2d (valid padding) + ReLU; NHWC in / NHWC out (bf16).
    w_flat: (Cin*kh*kw, Cout) bf16, prepared once from the PyTorch OIHW weight."""
    n = x.shape[0]
    patches = _extract_patches_nhwc(x, kernel_size, stride)
    _, oh, ow, feat = patches.shape
    out = pallas_matmul_bias_act(patches.reshape(n * oh * ow, feat), w_flat, b,
                                 relu=True, out_dtype=jnp.bfloat16)
    return out.reshape(n, oh, ow, w_flat.shape[1])


# ----------------------------------------------------------------------------
# DQN parameters (PyTorch-equivalent layout) + one-time kernel-layout prep
# ----------------------------------------------------------------------------
def _conv_size_out(size, kernel, stride):
    return (size - kernel) // stride + 1


def init_dqn_params(key, h, w, outputs):
    """Parameters in a PyTorch-equivalent layout (f32):
    conv*: weight (Cout, Cin, kh, kw), bias (Cout,);
    lin1/head: weight stored transposed as (in, out); lin1 input rows follow the
    PyTorch NCHW channel-major flatten order (c, h, w)."""
    def uniform(k, shape, fan_in):
        bound = 1.0 / jnp.sqrt(jnp.float32(fan_in))
        return jax.random.uniform(k, shape, jnp.float32, -bound, bound)

    keys = jax.random.split(key, 10)
    convw = _conv_size_out(_conv_size_out(_conv_size_out(w, 8, 4), 4, 2), 3, 1)
    convh = _conv_size_out(_conv_size_out(_conv_size_out(h, 8, 4), 4, 2), 3, 1)
    lin_in = convw * convh * 64
    return {
        "conv1_w": uniform(keys[0], (32, 1, 8, 8), 1 * 8 * 8),
        "conv1_b": uniform(keys[1], (32,), 1 * 8 * 8),
        "conv2_w": uniform(keys[2], (64, 32, 4, 4), 32 * 4 * 4),
        "conv2_b": uniform(keys[3], (64,), 32 * 4 * 4),
        "conv3_w": uniform(keys[4], (64, 64, 3, 3), 64 * 3 * 3),
        "conv3_b": uniform(keys[5], (64,), 64 * 3 * 3),
        "lin1_w": uniform(keys[6], (lin_in, 512), lin_in),
        "lin1_b": uniform(keys[7], (512,), lin_in),
        "head_w": uniform(keys[8], (512, outputs), 512),
        "head_b": uniform(keys[9], (outputs,), 512),
    }


def prepare_params(params, h, w, outputs):
    """One-time repack into the kernel-friendly layout:
    conv weights -> (Cin*kh*kw, Cout) bf16 (channel-major rows, matching the
    patch feature order of conv_general_dilated_patches); lin1 rows permuted
    CHW->HWC so the NHWC/p-major tail kernel feeds it directly; head weight and
    bias zero-padded to 128 output columns (lane-dense stores); biases (1,N) f32."""
    def prep_conv(wt):
        co = wt.shape[0]
        return wt.reshape(co, -1).T.astype(jnp.bfloat16)   # rows in (ci, kh, kw)

    convw = _conv_size_out(_conv_size_out(_conv_size_out(w, 8, 4), 4, 2), 3, 1)
    convh = _conv_size_out(_conv_size_out(_conv_size_out(h, 8, 4), 4, 2), 3, 1)
    c3 = 64
    lin1_w = params["lin1_w"].reshape(c3, convh, convw, 512)       # rows were (c,h,w)
    lin1_w = jnp.transpose(lin1_w, (1, 2, 0, 3)).reshape(convh * convw * c3, 512)

    n_out_pad = max(128, _round_up(outputs, 128))
    head_w = jnp.zeros((512, n_out_pad), jnp.float32).at[:, :outputs].set(
        params["head_w"])
    head_b = jnp.zeros((n_out_pad,), jnp.float32).at[:outputs].set(
        params["head_b"])

    return {
        "conv1_w": prep_conv(params["conv1_w"]),
        "conv1_b": params["conv1_b"].reshape(1, -1).astype(jnp.float32),
        "conv2_w": prep_conv(params["conv2_w"]),
        "conv2_b": params["conv2_b"].reshape(1, -1).astype(jnp.float32),
        "conv3_w": prep_conv(params["conv3_w"]),
        "conv3_b": params["conv3_b"].reshape(1, -1).astype(jnp.float32),
        "lin1_w": lin1_w.astype(jnp.bfloat16),
        "lin1_b": params["lin1_b"].reshape(1, -1).astype(jnp.float32),
        "head_w": head_w.astype(jnp.bfloat16),
        "head_b": head_b.reshape(1, -1).astype(jnp.float32),
    }


# ----------------------------------------------------------------------------
# Forward passes
# ----------------------------------------------------------------------------
def dqn_forward(prepared, x, *, n_outputs):
    """x: (N, 1, H, W) f32 (PyTorch NCHW input) -> (N, n_outputs) f32.
    NOTE: matmul operands are intentionally bf16 (f32 accumulation)."""
    n = x.shape[0]
    # NCHW -> NHWC once (Cin == 1, so this is effectively a free reshape) + bf16 cast.
    x = jnp.transpose(x, (0, 2, 3, 1)).astype(jnp.bfloat16)
    x = conv2d_relu_nhwc(x, prepared["conv1_w"], prepared["conv1_b"],
                         kernel_size=8, stride=4)
    x = conv2d_relu_nhwc(x, prepared["conv2_w"], prepared["conv2_b"],
                         kernel_size=4, stride=2)
    # conv3 + lin1 + head fused: extract conv3's patches once, rearrange them
    # spatial-major (P, N, K3) so each position is a lane-dense slab in-kernel.
    p3 = _extract_patches_nhwc(x, 3, 1)                 # (N, OH3, OW3, 576)
    _, oh3, ow3, k3 = p3.shape
    p3 = jnp.transpose(p3.reshape(n, oh3 * ow3, k3), (1, 0, 2))   # (P, N, K3)
    out = pallas_conv3_mlp_head(p3, prepared["conv3_w"], prepared["conv3_b"],
                                prepared["lin1_w"], prepared["lin1_b"],
                                prepared["head_w"], prepared["head_b"])
    return out[:, :n_outputs]


def dqn_forward_reference(params, x):
    """Plain-JAX NCHW forward mirroring the PyTorch module exactly (check only)."""
    def conv(y, wt, b, stride):
        y = jax.lax.conv_general_dilated(
            y, wt, (stride, stride), "VALID",
            dimension_numbers=("NCHW", "OIHW", "NCHW"))
        return jax.nn.relu(y + b[None, :, None, None])

    y = conv(x, params["conv1_w"], params["conv1_b"], 4)
    y = conv(y, params["conv2_w"], params["conv2_b"], 2)
    y = conv(y, params["conv3_w"], params["conv3_b"], 1)
    y = y.reshape(y.shape[0], -1)  # PyTorch x.view(N, -1): channel-major (CHW)
    y = jax.nn.relu(y @ params["lin1_w"] + params["lin1_b"])
    return y @ params["head_w"] + params["head_b"]


if __name__ == "__main__":
    # 64x64 single-channel frames, 4 actions.
    # conv chain: 64 -> 15 -> 6 -> 4  =>  linear_input_size = 4*4*64 = 1024.
    H, W, OUTPUTS = 64, 64, 4
    BATCH = 2

    key = jax.random.PRNGKey(0)
    pkey, xkey = jax.random.split(key)
    params = init_dqn_params(pkey, H, W, OUTPUTS)
    prepared = prepare_params(params, H, W, OUTPUTS)
    x = jax.random.normal(xkey, (BATCH, 1, H, W), jnp.float32)

    fwd = jax.jit(functools.partial(dqn_forward, n_outputs=OUTPUTS))
    out = jax.block_until_ready(fwd(prepared, x))
    assert out.shape == (BATCH, OUTPUTS), out.shape

    # Validate against a plain-JAX reference that mirrors the PyTorch module
    # (checks patch feature order, the CHW->HWC lin1 weight permutation and the
    # head padding; bf16-MXU-level tolerance).
    ref = jax.block_until_ready(dqn_forward_reference(params, x))
    max_err = float(jnp.max(jnp.abs(out - ref)))
    tol = 5e-2 * (1.0 + float(jnp.max(jnp.abs(ref))))
    assert max_err <= tol, (max_err, tol)

    print("KERNEL_OK")
</pallas_src>

<mosaic_0001>
module attributes {stable_mosaic.version = 11 : i64} {
  func.func @_matmul_bias_act_kernel(%arg0: i32, %arg1: memref<232x64xbf16, #tpu.memory_space<vmem>>, %arg2: memref<64x32xbf16, #tpu.memory_space<vmem>>, %arg3: memref<1x32xf32, #tpu.memory_space<vmem>>, %arg4: memref<232x32xbf16, #tpu.memory_space<vmem>>) attributes {dimension_semantics = [#tpu.dimension_semantics<parallel>], iteration_bounds = array<i64: 2>, scalar_prefetch = 0 : i64, scratch_operands = 0 : i64, tpu.core_type = #tpu.core_type<tc>, window_params = [{transform_indices = @transform_0, window_bounds = array<i64: 232, 64>}, {pipeline_mode = #tpu.pipeline_mode<synchronous>, transform_indices = @transform_1, window_bounds = array<i64: 64, 32>}, {pipeline_mode = #tpu.pipeline_mode<synchronous>, transform_indices = @transform_2, window_bounds = array<i64: 1, 32>}, {transform_indices = @transform_3, window_bounds = array<i64: 232, 32>}]} {
    %c0 = arith.constant 0 : index
    %c0_0 = arith.constant 0 : index
    %0 = vector.load %arg1[%c0, %c0_0] : memref<232x64xbf16, #tpu.memory_space<vmem>>, vector<232x64xbf16>
    %c0_1 = arith.constant 0 : index
    %c0_2 = arith.constant 0 : index
    %1 = vector.load %arg2[%c0_1, %c0_2] : memref<64x32xbf16, #tpu.memory_space<vmem>>, vector<64x32xbf16>
    %cst = arith.constant dense<0.000000e+00> : vector<232x32xf32>
    %2 = tpu.matmul %0, %1, %cst {dimension_numbers = #tpu.dot_dimension_numbers<[1], [0], [0], [1], [0, 0, 1, 1], [], []>} : vector<232x64xbf16>, vector<64x32xbf16>, vector<232x32xf32> -> vector<232x32xf32>
    %c0_3 = arith.constant 0 : index
    %c0_4 = arith.constant 0 : index
    %3 = vector.load %arg3[%c0_3, %c0_4] : memref<1x32xf32, #tpu.memory_space<vmem>>, vector<1x32xf32>
    %4 = vector.broadcast %3 : vector<1x32xf32> to vector<232x32xf32>
    %5 = arith.addf %2, %4 : vector<232x32xf32>
    %cst_5 = arith.constant 0.000000e+00 : f32
    %6 = vector.broadcast %cst_5 : f32 to vector<232x32xf32>
    %7 = arith.maximumf %5, %6 : vector<232x32xf32>
    %8 = arith.truncf %7 : vector<232x32xf32> to vector<232x32xbf16>
    %c0_6 = arith.constant 0 : index
    %c0_7 = arith.constant 0 : index
    %9 = vector.load %arg4[%c0_6, %c0_7] : memref<232x32xbf16, #tpu.memory_space<vmem>>, vector<232x32xbf16>
    tpu.vector_store %arg4[%c0_6, %c0_7], %8 {strides = array<i32>} : memref<232x32xbf16, #tpu.memory_space<vmem>>, vector<232x32xbf16>,
    return
  }
  func.func @transform_0(%arg0: i32) -> (i32, i32) {
    %c0_i32 = arith.constant 0 : i32
    %c0_i32_0 = arith.constant 0 : i32
    return %arg0, %c0_i32 : i32, i32
  }
  func.func @transform_1(%arg0: i32) -> (i32, i32) {
    %c0_i32 = arith.constant 0 : i32
    %c0_i32_0 = arith.constant 0 : i32
    %c0_i32_1 = arith.constant 0 : i32
    return %c0_i32, %c0_i32_0 : i32, i32
  }
  func.func @transform_2(%arg0: i32) -> (i32, i32) {
    %c0_i32 = arith.constant 0 : i32
    %c0_i32_0 = arith.constant 0 : i32
    %c0_i32_1 = arith.constant 0 : i32
    return %c0_i32, %c0_i32_0 : i32, i32
  }
  func.func @transform_3(%arg0: i32) -> (i32, i32) {
    %c0_i32 = arith.constant 0 : i32
    %c0_i32_0 = arith.constant 0 : i32
    return %arg0, %c0_i32 : i32, i32
  }
}

module attributes {stable_mosaic.version = 11 : i64} {
  func.func @_matmul_bias_act_kernel(%arg0: i32, %arg1: memref<72x512xbf16, #tpu.memory_space<vmem>>, %arg2: memref<512x64xbf16, #tpu.memory_space<vmem>>, %arg3: memref<1x64xf32, #tpu.memory_space<vmem>>, %arg4: memref<72x64xbf16, #tpu.memory_space<vmem>>) attributes {dimension_semantics = [#tpu.dimension_semantics<parallel>], iteration_bounds = array<i64: 1>, scalar_prefetch = 0 : i64, scratch_operands = 0 : i64, tpu.core_type = #tpu.core_type<tc>, window_params = [{transform_indices = @transform_0, window_bounds = array<i64: 72, 512>}, {pipeline_mode = #tpu.pipeline_mode<synchronous>, transform_indices = @transform_1, window_bounds = array<i64: 512, 64>}, {pipeline_mode = #tpu.pipeline_mode<synchronous>, transform_indices = @transform_2, window_bounds = array<i64: 1, 64>}, {transform_indices = @transform_3, window_bounds = array<i64: 72, 64>}]} {
    %c0 = arith.constant 0 : index
    %c0_0 = arith.constant 0 : index
    %0 = vector.load %arg1[%c0, %c0_0] : memref<72x512xbf16, #tpu.memory_space<vmem>>, vector<72x512xbf16>
    %c0_1 = arith.constant 0 : index
    %c0_2 = arith.constant 0 : index
    %1 = vector.load %arg2[%c0_1, %c0_2] : memref<512x64xbf16, #tpu.memory_space<vmem>>, vector<512x64xbf16>
    %cst = arith.constant dense<0.000000e+00> : vector<72x64xf32>
    %2 = tpu.matmul %0, %1, %cst {dimension_numbers = #tpu.dot_dimension_numbers<[1], [0], [0], [1], [0, 0, 1, 1], [], []>} : vector<72x512xbf16>, vector<512x64xbf16>, vector<72x64xf32> -> vector<72x64xf32>
    %c0_3 = arith.constant 0 : index
    %c0_4 = arith.constant 0 : index
    %3 = vector.load %arg3[%c0_3, %c0_4] : memref<1x64xf32, #tpu.memory_space<vmem>>, vector<1x64xf32>
    %4 = vector.broadcast %3 : vector<1x64xf32> to vector<72x64xf32>
    %5 = arith.addf %2, %4 : vector<72x64xf32>
    %cst_5 = arith.constant 0.000000e+00 : f32
    %6 = vector.broadcast %cst_5 : f32 to vector<72x64xf32>
    %7 = arith.maximumf %5, %6 : vector<72x64xf32>
    %8 = arith.truncf %7 : vector<72x64xf32> to vector<72x64xbf16>
    %c0_6 = arith.constant 0 : index
    %c0_7 = arith.constant 0 : index
    %9 = vector.load %arg4[%c0_6, %c0_7] : memref<72x64xbf16, #tpu.memory_space<vmem>>, vector<72x64xbf16>
    tpu.vector_store %arg4[%c0_6, %c0_7], %8 {strides = array<i32>} : memref<72x64xbf16, #tpu.memory_space<vmem>>, vector<72x64xbf16>,
    return
  }
  func.func @transform_0(%arg0: i32) -> (i32, i32) {
    %c0_i32 = arith.constant 0 : i32
    %c0_i32_0 = arith.constant 0 : i32
    return %arg0, %c0_i32 : i32, i32
  }
  func.func @transform_1(%arg0: i32) -> (i32, i32) {
    %c0_i32 = arith.constant 0 : i32
    %c0_i32_0 = arith.constant 0 : i32
    %c0_i32_1 = arith.constant 0 : i32
    return %c0_i32, %c0_i32_0 : i32, i32
  }
  func.func @transform_2(%arg0: i32) -> (i32, i32) {
    %c0_i32 = arith.constant 0 : i32
    %c0_i32_0 = arith.constant 0 : i32
    %c0_i32_1 = arith.constant 0 : i32
    return %c0_i32, %c0_i32_0 : i32, i32
  }
  func.func @transform_3(%arg0: i32) -> (i32, i32) {
    %c0_i32 = arith.constant 0 : i32
    %c0_i32_0 = arith.constant 0 : i32
    return %arg0, %c0_i32 : i32, i32
  }
}

module attributes {stable_mosaic.version = 11 : i64} {
  func.func @_conv3_mlp_head_kernel(%arg0: i32, %arg1: memref<16x8x576xbf16, #tpu.memory_space<vmem>>, %arg2: memref<576x64xbf16, #tpu.memory_space<vmem>>, %arg3: memref<1x64xf32, #tpu.memory_space<vmem>>, %arg4: memref<1024x512xbf16, #tpu.memory_space<vmem>>, %arg5: memref<1x512xf32, #tpu.memory_space<vmem>>, %arg6: memref<512x128xbf16, #tpu.memory_space<vmem>>, %arg7: memref<1x128xf32, #tpu.memory_space<vmem>>, %arg8: memref<8x128xf32, #tpu.memory_space<vmem>>, %arg9: memref<8x512xf32, #tpu.memory_space<vmem>>) attributes {dimension_semantics = [#tpu.dimension_semantics<parallel>], iteration_bounds = array<i64: 1>, scalar_prefetch = 0 : i64, scratch_operands = 1 : i64, tpu.core_type = #tpu.core_type<tc>, window_params = [{transform_indices = @transform_0, window_bounds = array<i64: 16, 8, 576>}, {pipeline_mode = #tpu.pipeline_mode<synchronous>, transform_indices = @transform_1, window_bounds = array<i64: 576, 64>}, {pipeline_mode = #tpu.pipeline_mode<synchronous>, transform_indices = @transform_2, window_bounds = array<i64: 1, 64>}, {pipeline_mode = #tpu.pipeline_mode<synchronous>, transform_indices = @transform_3, window_bounds = array<i64: 1024, 512>}, {pipeline_mode = #tpu.pipeline_mode<synchronous>, transform_indices = @transform_4, window_bounds = array<i64: 1, 512>}, {pipeline_mode = #tpu.pipeline_mode<synchronous>, transform_indices = @transform_5, window_bounds = array<i64: 512, 128>}, {pipeline_mode = #tpu.pipeline_mode<synchronous>, transform_indices = @transform_6, window_bounds = array<i64: 1, 128>}, {transform_indices = @transform_7, window_bounds = array<i64: 8, 128>}]} {
    %c0 = arith.constant 0 : index
    %c0_0 = arith.constant 0 : index
    %c0_1 = arith.constant 0 : index
    %0 = vector.load %arg1[%c0, %c0_0, %c0_1] : memref<16x8x576xbf16, #tpu.memory_space<vmem>>, vector<1x8x576xbf16>
    %1 = vector.shape_cast %0 : vector<1x8x576xbf16> to vector<8x576xbf16>
    %c0_2 = arith.constant 0 : index
    %c0_3 = arith.constant 0 : index
    %2 = vector.load %arg2[%c0_2, %c0_3] : memref<576x64xbf16, #tpu.memory_space<vmem>>, vector<576x64xbf16>
    %cst = arith.constant dense<0.000000e+00> : vector<8x64xf32>
    %3 = tpu.matmul %1, %2, %cst {dimension_numbers = #tpu.dot_dimension_numbers<[1], [0], [0], [1], [0, 0, 1, 1], [], []>} : vector<8x576xbf16>, vector<576x64xbf16>, vector<8x64xf32> -> vector<8x64xf32>
    %c0_4 = arith.constant 0 : index
    %c0_5 = arith.constant 0 : index
    %4 = vector.load %arg3[%c0_4, %c0_5] : memref<1x64xf32, #tpu.memory_space<vmem>>, vector<1x64xf32>
    %5 = vector.broadcast %4 : vector<1x64xf32> to vector<8x64xf32>
    %6 = arith.addf %3, %5 : vector<8x64xf32>
    %cst_6 = arith.constant 0.000000e+00 : f32
    %7 = vector.broadcast %cst_6 : f32 to vector<8x64xf32>
    %8 = arith.maximumf %6, %7 : vector<8x64xf32>
    %9 = arith.truncf %8 : vector<8x64xf32> to vector<8x64xbf16>
    %c0_7 = arith.constant 0 : index
    %c0_8 = arith.constant 0 : index
    %10 = vector.load %arg4[%c0_7, %c0_8] : memref<1024x512xbf16, #tpu.memory_space<vmem>>, vector<64x512xbf16>
    %cst_9 = arith.constant dense<0.000000e+00> : vector<8x512xf32>
    %11 = tpu.matmul %9, %10, %cst_9 {dimension_numbers = #tpu.dot_dimension_numbers<[1], [0], [0], [1], [0, 0, 1, 1], [], []>} : vector<8x64xbf16>, vector<64x512xbf16>, vector<8x512xf32> -> vector<8x512xf32>
    %c0_10 = arith.constant 0 : index
    %c0_11 = arith.constant 0 : index
    %12 = vector.load %arg9[%c0_10, %c0_11] : memref<8x512xf32, #tpu.memory_space<vmem>>, vector<8x512xf32>
    tpu.vector_store %arg9[%c0_10, %c0_11], %11 {strides = array<i32>} : memref<8x512xf32, #tpu.memory_space<vmem>>, vector<8x512xf32>,
    %c1 = arith.constant 1 : index
    %c0_12 = arith.constant 0 : index
    %c0_13 = arith.constant 0 : index
    %13 = vector.load %arg1[%c1, %c0_12, %c0_13] : memref<16x8x576xbf16, #tpu.memory_space<vmem>>, vector<1x8x576xbf16>
    %14 = vector.shape_cast %13 : vector<1x8x576xbf16> to vector<8x576xbf16>
    %c0_14 = arith.constant 0 : index
    %c0_15 = arith.constant 0 : index
    %15 = vector.load %arg2[%c0_14, %c0_15] : memref<576x64xbf16, #tpu.memory_space<vmem>>, vector<576x64xbf16>
    %cst_16 = arith.constant dense<0.000000e+00> : vector<8x64xf32>
    %16 = tpu.matmul %14, %15, %cst_16 {dimension_numbers = #tpu.dot_dimension_numbers<[1], [0], [0], [1], [0, 0, 1, 1], [], []>} : vector<8x576xbf16>, vector<576x64xbf16>, vector<8x64xf32> -> vector<8x64xf32>
    %c0_17 = arith.constant 0 : index
    %c0_18 = arith.constant 0 : index
    %17 = vector.load %arg3[%c0_17, %c0_18] : memref<1x64xf32, #tpu.memory_space<vmem>>, vector<1x64xf32>
    %18 = vector.broadcast %17 : vector<1x64xf32> to vector<8x64xf32>
    %19 = arith.addf %16, %18 : vector<8x64xf32>
    %cst_19 = arith.constant 0.000000e+00 : f32
    %20 = vector.broadcast %cst_19 : f32 to vector<8x64xf32>
    %21 = arith.maximumf %19, %20 : vector<8x64xf32>
    %22 = arith.truncf %21 : vector<8x64xf32> to vector<8x64xbf16>
    %c64 = arith.constant 64 : index
    %c0_20 = arith.constant 0 : index
    %23 = vector.load %arg4[%c64, %c0_20] : memref<1024x512xbf16, #tpu.memory_space<vmem>>, vector<64x512xbf16>
    %cst_21 = arith.constant dense<0.000000e+00> : vector<8x512xf32>
    %24 = tpu.matmul %22, %23, %cst_21 {dimension_numbers = #tpu.dot_dimension_numbers<[1], [0], [0], [1], [0, 0, 1, 1], [], []>} : vector<8x64xbf16>, vector<64x512xbf16>, vector<8x512xf32> -> vector<8x512xf32>
    %c0_22 = arith.constant 0 : index
    %c0_23 = arith.constant 0 : index
    %25 = vector.load %arg9[%c0_22, %c0_23] : memref<8x512xf32, #tpu.memory_space<vmem>>, vector<8x512xf32>
    %26 = arith.addf %25, %24 : vector<8x512xf32>
    %c0_24 = arith.constant 0 : index
    %c0_25 = arith.constant 0 : index
    %27 = vector.load %arg9[%c0_24, %c0_25] : memref<8x512xf32, #tpu.memory_space<vmem>>, vector<8x512xf32>
    tpu.vector_store %arg9[%c0_24, %c0_25], %26 {strides = array<i32>} : memref<8x512xf32, #tpu.memory_space<vmem>>, vector<8x512xf32>,
    %c2 = arith.constant 2 : index
    %c0_26 = arith.constant 0 : index
    %c0_27 = arith.constant 0 : index
    %28 = vector.load %arg1[%c2, %c0_26, %c0_27] : memref<16x8x576xbf16, #tpu.memory_space<vmem>>, vector<1x8x576xbf16>
    %29 = vector.shape_cast %28 : vector<1x8x576xbf16> to vector<8x576xbf16>
    %c0_28 = arith.constant 0 : index
    %c0_29 = arith.constant 0 : index
    %30 = vector.load %arg2[%c0_28, %c0_29] : memref<576x64xbf16, #tpu.memory_space<vmem>>, vector<576x64xbf16>
    %cst_30 = arith.constant dense<0.000000e+00> : vector<8x64xf32>
    %31 = tpu.matmul %29, %30, %cst_30 {dimension_numbers = #tpu.dot_dimension_numbers<[1], [0], [0], [1], [0, 0, 1, 1], [], []>} : vector<8x576xbf16>, vector<576x64xbf16>, vector<8x64xf32> -> vector<8x64xf32>
    %c0_31 = arith.constant 0 : index
    %c0_32 = arith.constant 0 : index
    %32 = vector.load %arg3[%c0_31, %c0_32] : memref<1x64xf32, #tpu.memory_space<vmem>>, vector<1x64xf32>
    %33 = vector.broadcast %32 : vector<1x64xf32> to vector<8x64xf32>
    %34 = arith.addf %31, %33 : vector<8x64xf32>
    %cst_33 = arith.constant 0.000000e+00 : f32
    %35 = vector.broadcast %cst_33 : f32 to vector<8x64xf32>
    %36 = arith.maximumf %34, %35 : vector<8x64xf32>
    %37 = arith.truncf %36 : vector<8x64xf32> to vector<8x64xbf16>
    %c128 = arith.constant 128 : index
    %c0_34 = arith.constant 0 : index
    %38 = vector.load %arg4[%c128, %c0_34] : memref<1024x512xbf16, #tpu.memory_space<vmem>>, vector<64x512xbf16>
    %cst_35 = arith.constant dense<0.000000e+00> : vector<8x512xf32>
    %39 = tpu.matmul %37, %38, %cst_35 {dimension_numbers = #tpu.dot_dimension_numbers<[1], [0], [0], [1], [0, 0, 1, 1], [], []>} : vector<8x64xbf16>, vector<64x512xbf16>, vector<8x512xf32> -> vector<8x512xf32>
    %c0_36 = arith.constant 0 : index
    %c0_37 = arith.constant 0 : index
    %40 = vector.load %arg9[%c0_36, %c0_37] : memref<8x512xf32, #tpu.memory_space<vmem>>, vector<8x512xf32>
    %41 = arith.addf %40, %39 : vector<8x512xf32>
    %c0_38 = arith.constant 0 : index
    %c0_39 = arith.constant 0 : index
    %42 = vector.load %arg9[%c0_38, %c0_39] : memref<8x512xf32, #tpu.memory_space<vmem>>, vector<8x512xf32>
    tpu.vector_store %arg9[%c0_38, %c0_39], %41 {strides = array<i32>} : memref<8x512xf32, #tpu.memory_space<vmem>>, vector<8x512xf32>,
    %c3 = arith.constant 3 : index
    %c0_40 = arith.constant 0 : index
    %c0_41 = arith.constant 0 : index
    %43 = vector.load %arg1[%c3, %c0_40, %c0_41] : memref<16x8x576xbf16, #tpu.memory_space<vmem>>, vector<1x8x576xbf16>
    %44 = vector.shape_cast %43 : vector<1x8x576xbf16> to vector<8x576xbf16>
    %c0_42 = arith.constant 0 : index
    %c0_43 = arith.constant 0 : index
    %45 = vector.load %arg2[%c0_42, %c0_43] : memref<576x64xbf16, #tpu.memory_space<vmem>>, vector<576x64xbf16>
    %cst_44 = arith.constant dense<0.000000e+00> : vector<8x64xf32>
    %46 = tpu.matmul %44, %45, %cst_44 {dimension_numbers = #tpu.dot_dimension_numbers<[1], [0], [0], [1], [0, 0, 1, 1], [], []>} : vector<8x576xbf16>, vector<576x64xbf16>, vector<8x64xf32> -> vector<8x64xf32>
    %c0_45 = arith.constant 0 : index
    %c0_46 = arith.constant 0 : index
    %47 = vector.load %arg3[%c0_45, %c0_46] : memref<1x64xf32, #tpu.memory_space<vmem>>, vector<1x64xf32>
    %48 = vector.broadcast %47 : vector<1x64xf32> to vector<8x64xf32>
    %49 = arith.addf %46, %48 : vector<8x64xf32>
    %cst_47 = arith.constant 0.000000e+00 : f32
    %50 = vector.broadcast %cst_47 : f32 to vector<8x64xf32>
    %51 = arith.maximumf %49, %50 : vector<8x64xf32>
    %52 = arith.truncf %51 : vector<8x64xf32> to vector<8x64xbf16>
    %c192 = arith.constant 192 : index
    %c0_48 = arith.constant 0 : index
    %53 = vector.load %arg4[%c192, %c0_48] : memref<1024x512xbf16, #tpu.memory_space<vmem>>, vector<64x512xbf16>
    %cst_49 = arith.constant dense<0.000000e+00> : vector<8x512xf32>
    %54 = tpu.matmul %52, %53, %cst_49 {dimension_numbers = #tpu.dot_dimension_numbers<[1], [0], [0], [1], [0, 0, 1, 1], [], []>} : vector<8x64xbf16>, vector<64x512xbf16>, vector<8x512xf32> -> vector<8x512xf32>
    %c0_50 = arith.constant 0 : index
    %c0_51 = arith.constant 0 : index
    %55 = vector.load %arg9[%c0_50, %c0_51] : memref<8x512xf32, #tpu.memory_space<vmem>>, vector<8x512xf32>
    %56 = arith.addf %55, %54 : vector<8x512xf32>
    %c0_52 = arith.constant 0 : index
    %c0_53 = arith.constant 0 : index
    %57 = vector.load %arg9[%c0_52, %c0_53] : memref<8x512xf32, #tpu.memory_space<vmem>>, vector<8x512xf32>
    tpu.vector_store %arg9[%c0_52, %c0_53], %56 {strides = array<i32>} : memref<8x512xf32, #tpu.memory_space<vmem>>, vector<8x512xf32>,
    %c4 = arith.constant 4 : index
    %c0_54 = arith.constant 0 : index
    %c0_55 = arith.constant 0 : index
    %58 = vector.load %arg1[%c4, %c0_54, %c0_55] : memref<16x8x576xbf16, #tpu.memory_space<vmem>>, vector<1x8x576xbf16>
    %59 = vector.shape_cast %58 : vector<1x8x576xbf16> to vector<8x576xbf16>
    %c0_56 = arith.constant 0 : index
    %c0_57 = arith.constant 0 : index
    %60 = vector.load %arg2[%c0_56, %c0_57] : memref<576x64xbf16, #tpu.memory_space<vmem>>, vector<576x64xbf16>
    %cst_58 = arith.constant dense<0.000000e+00> : vector<8x64xf32>
    %61 = tpu.matmul %59, %60, %cst_58 {dimension_numbers = #tpu.dot_dimension_numbers<[1], [0], [0], [1], [0, 0, 1, 1], [], []>} : vector<8x576xbf16>, vector<576x64xbf16>, vector<8x64xf32> -> vector<8x64xf32>
    %c0_59 = arith.constant 0 : index
    %c0_60 = arith.constant 0 : index
    %62 = vector.load %arg3[%c0_59, %c0_60] : memref<1x64xf32, #tpu.memory_space<vmem>>, vector<1x64xf32>
    %63 = vector.broadcast %62 : vector<1x64xf32> to vector<8x64xf32>
    %64 = arith.addf %61, %63 : vector<8x64xf32>
    %cst_61 = arith.constant 0.000000e+00 : f32
    %65 = vector.broadcast %cst_61 : f32 to vector<8x64xf32>
    %66 = arith.maximumf %64, %65 : vector<8x64xf32>
    %67 = arith.truncf %66 : vector<8x64xf32> to vector<8x64xbf16>
    %c256 = arith.constant 256 : index
    %c0_62 = arith.constant 0 : index
    %68 = vector.load %arg4[%c256, %c0_62] : memref<1024x512xbf16, #tpu.memory_space<vmem>>, vector<64x512xbf16>
    %cst_63 = arith.constant dense<0.000000e+00> : vector<8x512xf32>
    %69 = tpu.matmul %67, %68, %cst_63 {dimension_numbers = #tpu.dot_dimension_numbers<[1], [0], [0], [1], [0, 0, 1, 1], [], []>} : vector<8x64xbf16>, vector<64x512xbf16>, vector<8x512xf32> -> vector<8x512xf32>
    %c0_64 = arith.constant 0 : index
    %c0_65 = arith.constant 0 : index
    %70 = vector.load %arg9[%c0_64, %c0_65] : memref<8x512xf32, #tpu.memory_space<vmem>>, vector<8x512xf32>
    %71 = arith.addf %70, %69 : vector<8x512xf32>
    %c0_66 = arith.constant 0 : index
    %c0_67 = arith.constant 0 : index
    %72 = vector.load %arg9[%c0_66, %c0_67] : memref<8x512xf32, #tpu.memory_space<vmem>>, vector<8x512xf32>
    tpu.vector_store %arg9[%c0_66, %c0_67], %71 {strides = array<i32>} : memref<8x512xf32, #tpu.memory_space<vmem>>, vector<8x512xf32>,
    %c5 = arith.constant 5 : index
    %c0_68 = arith.constant 0 : index
    %c0_69 = arith.constant 0 : index
    %73 = vector.load %arg1[%c5, %c0_68, %c0_69] : memref<16x8x576xbf16, #tpu.memory_space<vmem>>, vector<1x8x576xbf16>
    %74 = vector.shape_cast %73 : vector<1x8x576xbf16> to vector<8x576xbf16>
    %c0_70 = arith.constant 0 : index
    %c0_71 = arith.constant 0 : index
    %75 = vector.load %arg2[%c0_70, %c0_71] : memref<576x64xbf16, #tpu.memory_space<vmem>>, vector<576x64xbf16>
    %cst_72 = arith.constant dense<0.000000e+00> : vector<8x64xf32>
    %76 = tpu.matmul %74, %75, %cst_72 {dimension_numbers = #tpu.dot_dimension_numbers<[1], [0], [0], [1], [0, 0, 1, 1], [], []>} : vector<8x576xbf16>, vector<576x64xbf16>, vector<8x64xf32> -> vector<8x64xf32>
    %c0_73 = arith.constant 0 : index
    %c0_74 = arith.constant 0 : index
    %77 = vector.load %arg3[%c0_73, %c0_74] : memref<1x64xf32, #tpu.memory_space<vmem>>, vector<1x64xf32>
    %78 = vector.broadcast %77 : vector<1x64xf32> to vector<8x64xf32>
    %79 = arith.addf %76, %78 : vector<8x64xf32>
    %cst_75 = arith.constant 0.000000e+00 : f32
    %80 = vector.broadcast %cst_75 : f32 to vector<8x64xf32>
    %81 = arith.maximumf %79, %80 : vector<8x64xf32>
    %82 = arith.truncf %81 : vector<8x64xf32> to vector<8x64xbf16>
    %c320 = arith.constant 320 : index
    %c0_76 = arith.constant 0 : index
    %83 = vector.load %arg4[%c320, %c0_76] : memref<1024x512xbf16, #tpu.memory_space<vmem>>, vector<64x512xbf16>
    %cst_77 = arith.constant dense<0.000000e+00> : vector<8x512xf32>
    %84 = tpu.matmul %82, %83, %cst_77 {dimension_numbers = #tpu.dot_dimension_numbers<[1], [0], [0], [1], [0, 0, 1, 1], [], []>} : vector<8x64xbf16>, vector<64x512xbf16>, vector<8x512xf32> -> vector<8x512xf32>
    %c0_78 = arith.constant 0 : index
    %c0_79 = arith.constant 0 : index
    %85 = vector.load %arg9[%c0_78, %c0_79] : memref<8x512xf32, #tpu.memory_space<vmem>>, vector<8x512xf32>
    %86 = arith.addf %85, %84 : vector<8x512xf32>
    %c0_80 = arith.constant 0 : index
    %c0_81 = arith.constant 0 : index
    %87 = vector.load %arg9[%c0_80, %c0_81] : memref<8x512xf32, #tpu.memory_space<vmem>>, vector<8x512xf32>
    tpu.vector_store %arg9[%c0_80, %c0_81], %86 {strides = array<i32>} : memref<8x512xf32, #tpu.memory_space<vmem>>, vector<8x512xf32>,
    %c6 = arith.constant 6 : index
    %c0_82 = arith.constant 0 : index
    %c0_83 = arith.constant 0 : index
    %88 = vector.load %arg1[%c6, %c0_82, %c0_83] : memref<16x8x576xbf16, #tpu.memory_space<vmem>>, vector<1x8x576xbf16>
    %89 = vector.shape_cast %88 : vector<1x8x576xbf16> to vector<8x576xbf16>
    %c0_84 = arith.constant 0 : index
    %c0_85 = arith.constant 0 : index
    %90 = vector.load %arg2[%c0_84, %c0_85] : memref<576x64xbf16, #tpu.memory_space<vmem>>, vector<576x64xbf16>
    %cst_86 = arith.constant dense<0.000000e+00> : vector<8x64xf32>
    %91 = tpu.matmul %89, %90, %cst_86 {dimension_numbers = #tpu.dot_dimension_numbers<[1], [0], [0], [1], [0, 0, 1, 1], [], []>} : vector<8x576xbf16>, vector<576x64xbf16>, vector<8x64xf32> -> vector<8x64xf32>
    %c0_87 = arith.constant 0 : index
    %c0_88 = arith.constant 0 : index
    %92 = vector.load %arg3[%c0_87, %c0_88] : memref<1x64xf32, #tpu.memory_space<vmem>>, vector<1x64xf32>
    %93 = vector.broadcast %92 : vector<1x64xf32> to vector<8x64xf32>
    %94 = arith.addf %91, %93 : vector<8x64xf32>
    %cst_89 = arith.constant 0.000000e+00 : f32
    %95 = vector.broadcast %cst_89 : f32 to vector<8x64xf32>
    %96 = arith.maximumf %94, %95 : vector<8x64xf32>
    %97 = arith.truncf %96 : vector<8x64xf32> to vector<8x64xbf16>
    %c384 = arith.constant 384 : index
    %c0_90 = arith.constant 0 : index
    %98 = vector.load %arg4[%c384, %c0_90] : memref<1024x512xbf16, #tpu.memory_space<vmem>>, vector<64x512xbf16>
    %cst_91 = arith.constant dense<0.000000e+00> : vector<8x512xf32>
    %99 = tpu.matmul %97, %98, %cst_91 {dimension_numbers = #tpu.dot_dimension_numbers<[1], [0], [0], [1], [0, 0, 1, 1], [], []>} : vector<8x64xbf16>, vector<64x512xbf16>, vector<8x512xf32> -> vector<8x512xf32>
    %c0_92 = arith.constant 0 : index
    %c0_93 = arith.constant 0 : index
    %100 = vector.load %arg9[%c0_92, %c0_93] : memref<8x512xf32, #tpu.memory_space<vmem>>, vector<8x512xf32>
    %101 = arith.addf %100, %99 : vector<8x512xf32>
    %c0_94 = arith.constant 0 : index
    %c0_95 = arith.constant 0 : index
    %102 = vector.load %arg9[%c0_94, %c0_95] : memref<8x512xf32, #tpu.memory_space<vmem>>, vector<8x512xf32>
    tpu.vector_store %arg9[%c0_94, %c0_95], %101 {strides = array<i32>} : memref<8x512xf32, #tpu.memory_space<vmem>>, vector<8x512xf32>,
    %c7 = arith.constant 7 : index
    %c0_96 = arith.constant 0 : index
    %c0_97 = arith.constant 0 : index
    %103 = vector.load %arg1[%c7, %c0_96, %c0_97] : memref<16x8x576xbf16, #tpu.memory_space<vmem>>, vector<1x8x576xbf16>
    %104 = vector.shape_cast %103 : vector<1x8x576xbf16> to vector<8x576xbf16>
    %c0_98 = arith.constant 0 : index
    %c0_99 = arith.constant 0 : index
    %105 = vector.load %arg2[%c0_98, %c0_99] : memref<576x64xbf16, #tpu.memory_space<vmem>>, vector<576x64xbf16>
    %cst_100 = arith.constant dense<0.000000e+00> : vector<8x64xf32>
    %106 = tpu.matmul %104, %105, %cst_100 {dimension_numbers = #tpu.dot_dimension_numbers<[1], [0], [0], [1], [0, 0, 1, 1], [], []>} : vector<8x576xbf16>, vector<576x64xbf16>, vector<8x64xf32> -> vector<8x64xf32>
    %c0_101 = arith.constant 0 : index
    %c0_102 = arith.constant 0 : index
    %107 = vector.load %arg3[%c0_101, %c0_102] : memref<1x64xf32, #tpu.memory_space<vmem>>, vector<1x64xf32>
    %108 = vector.broadcast %107 : vector<1x64xf32> to vector<8x64xf32>
    %109 = arith.addf %106, %108 : vector<8x64xf32>
    %cst_103 = arith.constant 0.000000e+00 : f32
    %110 = vector.broadcast %cst_103 : f32 to vector<8x64xf32>
    %111 = arith.maximumf %109, %110 : vector<8x64xf32>
    %112 = arith.truncf %111 : vector<8x64xf32> to vector<8x64xbf16>
    %c448 = arith.constant 448 : index
    %c0_104 = arith.constant 0 : index
    %113 = vector.load %arg4[%c448, %c0_104] : memref<1024x512xbf16, #tpu.memory_space<vmem>>, vector<64x512xbf16>
    %cst_105 = arith.constant dense<0.000000e+00> : vector<8x512xf32>
    %114 = tpu.matmul %112, %113, %cst_105 {dimension_numbers = #tpu.dot_dimension_numbers<[1], [0], [0], [1], [0, 0, 1, 1], [], []>} : vector<8x64xbf16>, vector<64x512xbf16>, vector<8x512xf32> -> vector<8x512xf32>
    %c0_106 = arith.constant 0 : index
    %c0_107 = arith.constant 0 : index
    %115 = vector.load %arg9[%c0_106, %c0_107] : memref<8x512xf32, #tpu.memory_space<vmem>>, vector<8x512xf32>
    %116 = arith.addf %115, %114 : vector<8x512xf32>
    %c0_108 = arith.constant 0 : index
    %c0_109 = arith.constant 0 : index
    %117 = vector.load %arg9[%c0_108, %c0_109] : memref<8x512xf32, #tpu.memory_space<vmem>>, vector<8x512xf32>
    tpu.vector_store %arg9[%c0_108, %c0_109], %116 {strides = array<i32>} : memref<8x512xf32, #tpu.memory_space<vmem>>, vector<8x512xf32>,
    %c8 = arith.constant 8 : index
    %c0_110 = arith.constant 0 : index
    %c0_111 = arith.constant 0 : index
    %118 = vector.load %arg1[%c8, %c0_110, %c0_111] : memref<16x8x576xbf16, #tpu.memory_space<vmem>>, vector<1x8x576xbf16>
    %119 = vector.shape_cast %118 : vector<1x8x576xbf16> to vector<8x576xbf16>
    %c0_112 = arith.constant 0 : index
    %c0_113 = arith.constant 0 : index
    %120 = vector.load %arg2[%c0_112, %c0_113] : memref<576x64xbf16, #tpu.memory_space<vmem>>, vector<576x64xbf16>
    %cst_114 = arith.constant dense<0.000000e+00> : vector<8x64xf32>
    %121 = tpu.matmul %119, %120, %cst_114 {dimension_numbers = #tpu.dot_dimension_numbers<[1], [0], [0], [1], [0, 0, 1, 1], [], []>} : vector<8x576xbf16>, vector<576x64xbf16>, vector<8x64xf32> -> vector<8x64xf32>
    %c0_115 = arith.constant 0 : index
    %c0_116 = arith.constant 0 : index
    %122 = vector.load %arg3[%c0_115, %c0_116] : memref<1x64xf32, #tpu.memory_space<vmem>>, vector<1x64xf32>
    %123 = vector.broadcast %122 : vector<1x64xf32> to vector<8x64xf32>
    %124 = arith.addf %121, %123 : vector<8x64xf32>
    %cst_117 = arith.constant 0.000000e+00 : f32
    %125 = vector.broadcast %cst_117 : f32 to vector<8x64xf32>
    %126 = arith.maximumf %124, %125 : vector<8x64xf32>
    %127 = arith.truncf %126 : vector<8x64xf32> to vector<8x64xbf16>
    %c512 = arith.constant 512 : index
    %c0_118 = arith.constant 0 : index
    %128 = vector.load %arg4[%c512, %c0_118] : memref<1024x512xbf16, #tpu.memory_space<vmem>>, vector<64x512xbf16>
    %cst_119 = arith.constant dense<0.000000e+00> : vector<8x512xf32>
    %129 = tpu.matmul %127, %128, %cst_119 {dimension_numbers = #tpu.dot_dimension_numbers<[1], [0], [0], [1], [0, 0, 1, 1], [], []>} : vector<8x64xbf16>, vector<64x512xbf16>, vector<8x512xf32> -> vector<8x512xf32>
    %c0_120 = arith.constant 0 : index
    %c0_121 = arith.constant 0 : index
    %130 = vector.load %arg9[%c0_120, %c0_121] : memref<8x512xf32, #tpu.memory_space<vmem>>, vector<8x512xf32>
    %131 = arith.addf %130, %129 : vector<8x512xf32>
    %c0_122 = arith.constant 0 : index
    %c0_123 = arith.constant 0 : index
    %132 = vector.load %arg9[%c0_122, %c0_123] : memref<8x512xf32, #tpu.memory_space<vmem>>, vector<8x512xf32>
    tpu.vector_store %arg9[%c0_122, %c0_123], %131 {strides = array<i32>} : memref<8x512xf32, #tpu.memory_space<vmem>>, vector<8x512xf32>,
    %c9 = arith.constant 9 : index
    %c0_124 = arith.constant 0 : index
    %c0_125 = arith.constant 0 : index
    %133 = vector.load %arg1[%c9, %c0_124, %c0_125] : memref<16x8x576xbf16, #tpu.memory_space<vmem>>, vector<1x8x576xbf16>
    %134 = vector.shape_cast %133 : vector<1x8x576xbf16> to vector<8x576xbf16>
    %c0_126 = arith.constant 0 : index
    %c0_127 = arith.constant 0 : index
    %135 = vector.load %arg2[%c0_126, %c0_127] : memref<576x64xbf16, #tpu.memory_space<vmem>>, vector<576x64xbf16>
    %cst_128 = arith.constant dense<0.000000e+00> : vector<8x64xf32>
    %136 = tpu.matmul %134, %135, %cst_128 {dimension_numbers = #tpu.dot_dimension_numbers<[1], [0], [0], [1], [0, 0, 1, 1], [], []>} : vector<8x576xbf16>, vector<576x64xbf16>, vector<8x64xf32> -> vector<8x64xf32>
    %c0_129 = arith.constant 0 : index
    %c0_130 = arith.constant 0 : index
    %137 = vector.load %arg3[%c0_129, %c0_130] : memref<1x64xf32, #tpu.memory_space<vmem>>, vector<1x64xf32>
    %138 = vector.broadcast %137 : vector<1x64xf32> to vector<8x64xf32>
    %139 = arith.addf %136, %138 : vector<8x64xf32>
    %cst_131 = arith.constant 0.000000e+00 : f32
    %140 = vector.broadcast %cst_131 : f32 to vector<8x64xf32>
    %141 = arith.maximumf %139, %140 : vector<8x64xf32>
    %142 = arith.truncf %141 : vector<8x64xf32> to vector<8x64xbf16>
    %c576 = arith.constant 576 : index
    %c0_132 = arith.constant 0 : index
    %143 = vector.load %arg4[%c576, %c0_132] : memref<1024x512xbf16, #tpu.memory_space<vmem>>, vector<64x512xbf16>
    %cst_133 = arith.constant dense<0.000000e+00> : vector<8x512xf32>
    %144 = tpu.matmul %142, %143, %cst_133 {dimension_numbers = #tpu.dot_dimension_numbers<[1], [0], [0], [1], [0, 0, 1, 1], [], []>} : vector<8x64xbf16>, vector<64x512xbf16>, vector<8x512xf32> -> vector<8x512xf32>
    %c0_134 = arith.constant 0 : index
    %c0_135 = arith.constant 0 : index
    %145 = vector.load %arg9[%c0_134, %c0_135] : memref<8x512xf32, #tpu.memory_space<vmem>>, vector<8x512xf32>
    %146 = arith.addf %145, %144 : vector<8x512xf32>
    %c0_136 = arith.constant 0 : index
    %c0_137 = arith.constant 0 : index
    %147 = vector.load %arg9[%c0_136, %c0_137] : memref<8x512xf32, #tpu.memory_space<vmem>>, vector<8x512xf32>
    tpu.vector_store %arg9[%c0_136, %c0_137], %146 {strides = array<i32>} : memref<8x512xf32, #tpu.memory_space<vmem>>, vector<8x512xf32>,
    %c10 = arith.constant 10 : index
    %c0_138 = arith.constant 0 : index
    %c0_139 = arith.constant 0 : index
    %148 = vector.load %arg1[%c10, %c0_138, %c0_139] : memref<16x8x576xbf16, #tpu.memory_space<vmem>>, vector<1x8x576xbf16>
    %149 = vector.shape_cast %148 : vector<1x8x576xbf16> to vector<8x576xbf16>
    %c0_140 = arith.constant 0 : index
    %c0_141 = arith.constant 0 : index
    %150 = vector.load %arg2[%c0_140, %c0_141] : memref<576x64xbf16, #tpu.memory_space<vmem>>, vector<576x64xbf16>
    %cst_142 = arith.constant dense<0.000000e+00> : vector<8x64xf32>
    %151 = tpu.matmul %149, %150, %cst_142 {dimension_numbers = #tpu.dot_dimension_numbers<[1], [0], [0], [1], [0, 0, 1, 1], [], []>} : vector<8x576xbf16>, vector<576x64xbf16>, vector<8x64xf32> -> vector<8x64xf32>
    %c0_143 = arith.constant 0 : index
    %c0_144 = arith.constant 0 : index
    %152 = vector.load %arg3[%c0_143, %c0_144] : memref<1x64xf32, #tpu.memory_space<vmem>>, vector<1x64xf32>
    %153 = vector.broadcast %152 : vector<1x64xf32> to vector<8x64xf32>
    %154 = arith.addf %151, %153 : vector<8x64xf32>
    %cst_145 = arith.constant 0.000000e+00 : f32
    %155 = vector.broadcast %cst_145 : f32 to vector<8x64xf32>
    %156 = arith.maximumf %154, %155 : vector<8x64xf32>
    %157 = arith.truncf %156 : vector<8x64xf32> to vector<8x64xbf16>
    %c640 = arith.constant 640 : index
    %c0_146 = arith.constant 0 : index
    %158 = vector.load %arg4[%c640, %c0_146] : memref<1024x512xbf16, #tpu.memory_space<vmem>>, vector<64x512xbf16>
    %cst_147 = arith.constant dense<0.000000e+00> : vector<8x512xf32>
    %159 = tpu.matmul %157, %158, %cst_147 {dimension_numbers = #tpu.dot_dimension_numbers<[1], [0], [0], [1], [0, 0, 1, 1], [], []>} : vector<8x64xbf16>, vector<64x512xbf16>, vector<8x512xf32> -> vector<8x512xf32>
    %c0_148 = arith.constant 0 : index
    %c0_149 = arith.constant 0 : index
    %160 = vector.load %arg9[%c0_148, %c0_149] : memref<8x512xf32, #tpu.memory_space<vmem>>, vector<8x512xf32>
    %161 = arith.addf %160, %159 : vector<8x512xf32>
    %c0_150 = arith.constant 0 : index
    %c0_151 = arith.constant 0 : index
    %162 = vector.load %arg9[%c0_150, %c0_151] : memref<8x512xf32, #tpu.memory_space<vmem>>, vector<8x512xf32>
    tpu.vector_store %arg9[%c0_150, %c0_151], %161 {strides = array<i32>} : memref<8x512xf32, #tpu.memory_space<vmem>>, vector<8x512xf32>,
    %c11 = arith.constant 11 : index
    %c0_152 = arith.constant 0 : index
    %c0_153 = arith.constant 0 : index
    %163 = vector.load %arg1[%c11, %c0_152, %c0_153] : memref<16x8x576xbf16, #tpu.memory_space<vmem>>, vector<1x8x576xbf16>
    %164 = vector.shape_cast %163 : vector<1x8x576xbf16> to vector<8x576xbf16>
    %c0_154 = arith.constant 0 : index
    %c0_155 = arith.constant 0 : index
    %165 = vector.load %arg2[%c0_154, %c0_155] : memref<576x64xbf16, #tpu.memory_space<vmem>>, vector<576x64xbf16>
    %cst_156 = arith.constant dense<0.000000e+00> : vector<8x64xf32>
    %166 = tpu.matmul %164, %165, %cst_156 {dimension_numbers = #tpu.dot_dimension_numbers<[1], [0], [0], [1], [0, 0, 1, 1], [], []>} : vector<8x576xbf16>, vector<576x64xbf16>, vector<8x64xf32> -> vector<8x64xf32>
    %c0_157 = arith.constant 0 : index
    %c0_158 = arith.constant 0 : index
    %167 = vector.load %arg3[%c0_157, %c0_158] : memref<1x64xf32, #tpu.memory_space<vmem>>, vector<1x64xf32>
    %168 = vector.broadcast %167 : vector<1x64xf32> to vector<8x64xf32>
    %169 = arith.addf %166, %168 : vector<8x64xf32>
    %cst_159 = arith.constant 0.000000e+00 : f32
    %170 = vector.broadcast %cst_159 : f32 to vector<8x64xf32>
    %171 = arith.maximumf %169, %170 : vector<8x64xf32>
    %172 = arith.truncf %171 : vector<8x64xf32> to vector<8x64xbf16>
    %c704 = arith.constant 704 : index
    %c0_160 = arith.constant 0 : index
    %173 = vector.load %arg4[%c704, %c0_160] : memref<1024x512xbf16, #tpu.memory_space<vmem>>, vector<64x512xbf16>
    %cst_161 = arith.constant dense<0.000000e+00> : vector<8x512xf32>
    %174 = tpu.matmul %172, %173, %cst_161 {dimension_numbers = #tpu.dot_dimension_numbers<[1], [0], [0], [1], [0, 0, 1, 1], [], []>} : vector<8x64xbf16>, vector<64x512xbf16>, vector<8x512xf32> -> vector<8x512xf32>
    %c0_162 = arith.constant 0 : index
    %c0_163 = arith.constant 0 : index
    %175 = vector.load %arg9[%c0_162, %c0_163] : memref<8x512xf32, #tpu.memory_space<vmem>>, vector<8x512xf32>
    %176 = arith.addf %175, %174 : vector<8x512xf32>
    %c0_164 = arith.constant 0 : index
    %c0_165 = arith.constant 0 : index
    %177 = vector.load %arg9[%c0_164, %c0_165] : memref<8x512xf32, #tpu.memory_space<vmem>>, vector<8x512xf32>
    tpu.vector_store %arg9[%c0_164, %c0_165], %176 {strides = array<i32>} : memref<8x512xf32, #tpu.memory_space<vmem>>, vector<8x512xf32>,
    %c12 = arith.constant 12 : index
    %c0_166 = arith.constant 0 : index
    %c0_167 = arith.constant 0 : index
    %178 = vector.load %arg1[%c12, %c0_166, %c0_167] : memref<16x8x576xbf16, #tpu.memory_space<vmem>>, vector<1x8x576xbf16>
    %179 = vector.shape_cast %178 : vector<1x8x576xbf16> to vector<8x576xbf16>
    %c0_168 = arith.constant 0 : index
    %c0_169 = arith.constant 0 : index
    %180 = vector.load %arg2[%c0_168, %c0_169] : memref<576x64xbf16, #tpu.memory_space<vmem>>, vector<576x64xbf16>
    %cst_170 = arith.constant dense<0.000000e+00> : vector<8x64xf32>
    %181 = tpu.matmul %179, %180, %cst_170 {dimension_numbers = #tpu.dot_dimension_numbers<[1], [0], [0], [1], [0, 0, 1, 1], [], []>} : vector<8x576xbf16>, vector<576x64xbf16>, vector<8x64xf32> -> vector<8x64xf32>
    %c0_171 = arith.constant 0 : index
    %c0_172 = arith.constant 0 : index
    %182 = vector.load %arg3[%c0_171, %c0_172] : memref<1x64xf32, #tpu.memory_space<vmem>>, vector<1x64xf32>
    %183 = vector.broadcast %182 : vector<1x64xf32> to vector<8x64xf32>
    %184 = arith.addf %181, %183 : vector<8x64xf32>
    %cst_173 = arith.constant 0.000000e+00 : f32
    %185 = vector.broadcast %cst_173 : f32 to vector<8x64xf32>
    %186 = arith.maximumf %184, %185 : vector<8x64xf32>
    %187 = arith.truncf %186 : vector<8x64xf32> to vector<8x64xbf16>
    %c768 = arith.constant 768 : index
    %c0_174 = arith.constant 0 : index
    %188 = vector.load %arg4[%c768, %c0_174] : memref<1024x512xbf16, #tpu.memory_space<vmem>>, vector<64x512xbf16>
    %cst_175 = arith.constant dense<0.000000e+00> : vector<8x512xf32>
    %189 = tpu.matmul %187, %188, %cst_175 {dimension_numbers = #tpu.dot_dimension_numbers<[1], [0], [0], [1], [0, 0, 1, 1], [], []>} : vector<8x64xbf16>, vector<64x512xbf16>, vector<8x512xf32> -> vector<8x512xf32>
    %c0_176 = arith.constant 0 : index
    %c0_177 = arith.constant 0 : index
    %190 = vector.load %arg9[%c0_176, %c0_177] : memref<8x512xf32, #tpu.memory_space<vmem>>, vector<8x512xf32>
    %191 = arith.addf %190, %189 : vector<8x512xf32>
    %c0_178 = arith.constant 0 : index
    %c0_179 = arith.constant 0 : index
    %192 = vector.load %arg9[%c0_178, %c0_179] : memref<8x512xf32, #tpu.memory_space<vmem>>, vector<8x512xf32>
    tpu.vector_store %arg9[%c0_178, %c0_179], %191 {strides = array<i32>} : memref<8x512xf32, #tpu.memory_space<vmem>>, vector<8x512xf32>,
    %c13 = arith.constant 13 : index
    %c0_180 = arith.constant 0 : index
    %c0_181 = arith.constant 0 : index
    %193 = vector.load %arg1[%c13, %c0_180, %c0_181] : memref<16x8x576xbf16, #tpu.memory_space<vmem>>, vector<1x8x576xbf16>
    %194 = vector.shape_cast %193 : vector<1x8x576xbf16> to vector<8x576xbf16>
    %c0_182 = arith.constant 0 : index
    %c0_183 = arith.constant 0 : index
    %195 = vector.load %arg2[%c0_182, %c0_183] : memref<576x64xbf16, #tpu.memory_space<vmem>>, vector<576x64xbf16>
    %cst_184 = arith.constant dense<0.000000e+00> : vector<8x64xf32>
    %196 = tpu.matmul %194, %195, %cst_184 {dimension_numbers = #tpu.dot_dimension_numbers<[1], [0], [0], [1], [0, 0, 1, 1], [], []>} : vector<8x576xbf16>, vector<576x64xbf16>, vector<8x64xf32> -> vector<8x64xf32>
    %c0_185 = arith.constant 0 : index
    %c0_186 = arith.constant 0 : index
    %197 = vector.load %arg3[%c0_185, %c0_186] : memref<1x64xf32, #tpu.memory_space<vmem>>, vector<1x64xf32>
    %198 = vector.broadcast %197 : vector<1x64xf32> to vector<8x64xf32>
    %199 = arith.addf %196, %198 : vector<8x64xf32>
    %cst_187 = arith.constant 0.000000e+00 : f32
    %200 = vector.broadcast %cst_187 : f32 to vector<8x64xf32>
    %201 = arith.maximumf %199, %200 : vector<8x64xf32>
    %202 = arith.truncf %201 : vector<8x64xf32> to vector<8x64xbf16>
    %c832 = arith.constant 832 : index
    %c0_188 = arith.constant 0 : index
    %203 = vector.load %arg4[%c832, %c0_188] : memref<1024x512xbf16, #tpu.memory_space<vmem>>, vector<64x512xbf16>
    %cst_189 = arith.constant dense<0.000000e+00> : vector<8x512xf32>
    %204 = tpu.matmul %202, %203, %cst_189 {dimension_numbers = #tpu.dot_dimension_numbers<[1], [0], [0], [1], [0, 0, 1, 1], [], []>} : vector<8x64xbf16>, vector<64x512xbf16>, vector<8x512xf32> -> vector<8x512xf32>
    %c0_190 = arith.constant 0 : index
    %c0_191 = arith.constant 0 : index
    %205 = vector.load %arg9[%c0_190, %c0_191] : memref<8x512xf32, #tpu.memory_space<vmem>>, vector<8x512xf32>
    %206 = arith.addf %205, %204 : vector<8x512xf32>
    %c0_192 = arith.constant 0 : index
    %c0_193 = arith.constant 0 : index
    %207 = vector.load %arg9[%c0_192, %c0_193] : memref<8x512xf32, #tpu.memory_space<vmem>>, vector<8x512xf32>
    tpu.vector_store %arg9[%c0_192, %c0_193], %206 {strides = array<i32>} : memref<8x512xf32, #tpu.memory_space<vmem>>, vector<8x512xf32>,
    %c14 = arith.constant 14 : index
    %c0_194 = arith.constant 0 : index
    %c0_195 = arith.constant 0 : index
    %208 = vector.load %arg1[%c14, %c0_194, %c0_195] : memref<16x8x576xbf16, #tpu.memory_space<vmem>>, vector<1x8x576xbf16>
    %209 = vector.shape_cast %208 : vector<1x8x576xbf16> to vector<8x576xbf16>
    %c0_196 = arith.constant 0 : index
    %c0_197 = arith.constant 0 : index
    %210 = vector.load %arg2[%c0_196, %c0_197] : memref<576x64xbf16, #tpu.memory_space<vmem>>, vector<576x64xbf16>
    %cst_198 = arith.constant dense<0.000000e+00> : vector<8x64xf32>
    %211 = tpu.matmul %209, %210, %cst_198 {dimension_numbers = #tpu.dot_dimension_numbers<[1], [0], [0], [1], [0, 0, 1, 1], [], []>} : vector<8x576xbf16>, vector<576x64xbf16>, vector<8x64xf32> -> vector<8x64xf32>
    %c0_199 = arith.constant 0 : index
    %c0_200 = arith.constant 0 : index
    %212 = vector.load %arg3[%c0_199, %c0_200] : memref<1x64xf32, #tpu.memory_space<vmem>>, vector<1x64xf32>
    %213 = vector.broadcast %212 : vector<1x64xf32> to vector<8x64xf32>
    %214 = arith.addf %211, %213 : vector<8x64xf32>
    %cst_201 = arith.constant 0.000000e+00 : f32
    %215 = vector.broadcast %cst_201 : f32 to vector<8x64xf32>
    %216 = arith.maximumf %214, %215 : vector<8x64xf32>
    %217 = arith.truncf %216 : vector<8x64xf32> to vector<8x64xbf16>
    %c896 = arith.constant 896 : index
    %c0_202 = arith.constant 0 : index
    %218 = vector.load %arg4[%c896, %c0_202] : memref<1024x512xbf16, #tpu.memory_space<vmem>>, vector<64x512xbf16>
    %cst_203 = arith.constant dense<0.000000e+00> : vector<8x512xf32>
    %219 = tpu.matmul %217, %218, %cst_203 {dimension_numbers = #tpu.dot_dimension_numbers<[1], [0], [0], [1], [0, 0, 1, 1], [], []>} : vector<8x64xbf16>, vector<64x512xbf16>, vector<8x512xf32> -> vector<8x512xf32>
    %c0_204 = arith.constant 0 : index
    %c0_205 = arith.constant 0 : index
    %220 = vector.load %arg9[%c0_204, %c0_205] : memref<8x512xf32, #tpu.memory_space<vmem>>, vector<8x512xf32>
    %221 = arith.addf %220, %219 : vector<8x512xf32>
    %c0_206 = arith.constant 0 : index
    %c0_207 = arith.constant 0 : index
    %222 = vector.load %arg9[%c0_206, %c0_207] : memref<8x512xf32, #tpu.memory_space<vmem>>, vector<8x512xf32>
    tpu.vector_store %arg9[%c0_206, %c0_207], %221 {strides = array<i32>} : memref<8x512xf32, #tpu.memory_space<vmem>>, vector<8x512xf32>,
    %c15 = arith.constant 15 : index
    %c0_208 = arith.constant 0 : index
    %c0_209 = arith.constant 0 : index
    %223 = vector.load %arg1[%c15, %c0_208, %c0_209] : memref<16x8x576xbf16, #tpu.memory_space<vmem>>, vector<1x8x576xbf16>
    %224 = vector.shape_cast %223 : vector<1x8x576xbf16> to vector<8x576xbf16>
    %c0_210 = arith.constant 0 : index
    %c0_211 = arith.constant 0 : index
    %225 = vector.load %arg2[%c0_210, %c0_211] : memref<576x64xbf16, #tpu.memory_space<vmem>>, vector<576x64xbf16>
    %cst_212 = arith.constant dense<0.000000e+00> : vector<8x64xf32>
    %226 = tpu.matmul %224, %225, %cst_212 {dimension_numbers = #tpu.dot_dimension_numbers<[1], [0], [0], [1], [0, 0, 1, 1], [], []>} : vector<8x576xbf16>, vector<576x64xbf16>, vector<8x64xf32> -> vector<8x64xf32>
    %c0_213 = arith.constant 0 : index
    %c0_214 = arith.constant 0 : index
    %227 = vector.load %arg3[%c0_213, %c0_214] : memref<1x64xf32, #tpu.memory_space<vmem>>, vector<1x64xf32>
    %228 = vector.broadcast %227 : vector<1x64xf32> to vector<8x64xf32>
    %229 = arith.addf %226, %228 : vector<8x64xf32>
    %cst_215 = arith.constant 0.000000e+00 : f32
    %230 = vector.broadcast %cst_215 : f32 to vector<8x64xf32>
    %231 = arith.maximumf %229, %230 : vector<8x64xf32>
    %232 = arith.truncf %231 : vector<8x64xf32> to vector<8x64xbf16>
    %c960 = arith.constant 960 : index
    %c0_216 = arith.constant 0 : index
    %233 = vector.load %arg4[%c960, %c0_216] : memref<1024x512xbf16, #tpu.memory_space<vmem>>, vector<64x512xbf16>
    %cst_217 = arith.constant dense<0.000000e+00> : vector<8x512xf32>
    %234 = tpu.matmul %232, %233, %cst_217 {dimension_numbers = #tpu.dot_dimension_numbers<[1], [0], [0], [1], [0, 0, 1, 1], [], []>} : vector<8x64xbf16>, vector<64x512xbf16>, vector<8x512xf32> -> vector<8x512xf32>
    %c0_218 = arith.constant 0 : index
    %c0_219 = arith.constant 0 : index
    %235 = vector.load %arg9[%c0_218, %c0_219] : memref<8x512xf32, #tpu.memory_space<vmem>>, vector<8x512xf32>
    %236 = arith.addf %235, %234 : vector<8x512xf32>
    %c0_220 = arith.constant 0 : index
    %c0_221 = arith.constant 0 : index
    %237 = vector.load %arg9[%c0_220, %c0_221] : memref<8x512xf32, #tpu.memory_space<vmem>>, vector<8x512xf32>
    tpu.vector_store %arg9[%c0_220, %c0_221], %236 {strides = array<i32>} : memref<8x512xf32, #tpu.memory_space<vmem>>, vector<8x512xf32>,
    %c0_222 = arith.constant 0 : index
    %c0_223 = arith.constant 0 : index
    %238 = vector.load %arg9[%c0_222, %c0_223] : memref<8x512xf32, #tpu.memory_space<vmem>>, vector<8x512xf32>
    %c0_224 = arith.constant 0 : index
    %c0_225 = arith.constant 0 : index
    %239 = vector.load %arg5[%c0_224, %c0_225] : memref<1x512xf32, #tpu.memory_space<vmem>>, vector<1x512xf32>
    %240 = vector.broadcast %239 : vector<1x512xf32> to vector<8x512xf32>
    %241 = arith.addf %238, %240 : vector<8x512xf32>
    %cst_226 = arith.constant 0.000000e+00 : f32
    %242 = vector.broadcast %cst_226 : f32 to vector<8x512xf32>
    %243 = arith.maximumf %241, %242 : vector<8x512xf32>
    %244 = arith.truncf %243 : vector<8x512xf32> to vector<8x512xbf16>
    %c0_227 = arith.constant 0 : index
    %c0_228 = arith.constant 0 : index
    %245 = vector.load %arg6[%c0_227, %c0_228] : memref<512x128xbf16, #tpu.memory_space<vmem>>, vector<512x128xbf16>
    %cst_229 = arith.constant dense<0.000000e+00> : vector<8x128xf32>
    %246 = tpu.matmul %244, %245, %cst_229 {dimension_numbers = #tpu.dot_dimension_numbers<[1], [0], [0], [1], [0, 0, 1, 1], [], []>} : vector<8x512xbf16>, vector<512x128xbf16>, vector<8x128xf32> -> vector<8x128xf32>
    %c0_230 = arith.constant 0 : index
    %c0_231 = arith.constant 0 : index
    %247 = vector.load %arg7[%c0_230, %c0_231] : memref<1x128xf32, #tpu.memory_space<vmem>>, vector<1x128xf32>
    %248 = vector.broadcast %247 : vector<1x128xf32> to vector<8x128xf32>
    %249 = arith.addf %246, %248 : vector<8x128xf32>
    %c0_232 = arith.constant 0 : index
    %c0_233 = arith.constant 0 : index
    %250 = vector.load %arg8[%c0_232, %c0_233] : memref<8x128xf32, #tpu.memory_space<vmem>>, vector<8x128xf32>
    tpu.vector_store %arg8[%c0_232, %c0_233], %249 {strides = array<i32>} : memref<8x128xf32, #tpu.memory_space<vmem>>, vector<8x128xf32>,
    return
  }
  func.func @transform_0(%arg0: i32) -> (i32, i32, i32) {
    %c0_i32 = arith.constant 0 : i32
    %c0_i32_0 = arith.constant 0 : i32
    %c0_i32_1 = arith.constant 0 : i32
    return %c0_i32, %arg0, %c0_i32_0 : i32, i32, i32
  }
  func.func @transform_1(%arg0: i32) -> (i32, i32) {
    %c0_i32 = arith.constant 0 : i32
    %c0_i32_0 = arith.constant 0 : i32
    %c0_i32_1 = arith.constant 0 : i32
    return %c0_i32, %c0_i32_0 : i32, i32
  }
  func.func @transform_2(%arg0: i32) -> (i32, i32) {
    %c0_i32 = arith.constant 0 : i32
    %c0_i32_0 = arith.constant 0 : i32
    %c0_i32_1 = arith.constant 0 : i32
    return %c0_i32, %c0_i32_0 : i32, i32
  }
  func.func @transform_3(%arg0: i32) -> (i32, i32) {
    %c0_i32 = arith.constant 0 : i32
    %c0_i32_0 = arith.constant 0 : i32
    %c0_i32_1 = arith.constant 0 : i32
    return %c0_i32, %c0_i32_0 : i32, i32
  }
  func.func @transform_4(%arg0: i32) -> (i32, i32) {
    %c0_i32 = arith.constant 0 : i32
    %c0_i32_0 = arith.constant 0 : i32
    %c0_i32_1 = arith.constant 0 : i32
    return %c0_i32, %c0_i32_0 : i32, i32
  }
  func.func @transform_5(%arg0: i32) -> (i32, i32) {
    %c0_i32 = arith.constant 0 : i32
    %c0_i32_0 = arith.constant 0 : i32
    %c0_i32_1 = arith.constant 0 : i32
    return %c0_i32, %c0_i32_0 : i32, i32
  }
  func.func @transform_6(%arg0: i32) -> (i32, i32) {
    %c0_i32 = arith.constant 0 : i32
    %c0_i32_0 = arith.constant 0 : i32
    %c0_i32_1 = arith.constant 0 : i32
    return %c0_i32, %c0_i32_0 : i32, i32
  }
  func.func @transform_7(%arg0: i32) -> (i32, i32) {
    %c0_i32 = arith.constant 0 : i32
    %c0_i32_0 = arith.constant 0 : i32
    return %arg0, %c0_i32 : i32, i32
  }
}

</mosaic_0001>

<bundles_post_ra>
// kernel: dqn_forward.3
= control target key start
LH: loop header
LB: loop body
LE: loop exit
PB: predicated region body
PF: predicated region fallthrough
CT: control target
= control target key end

     0   :  { %s1002_s12 = smov 0   ;;  %s1202_s0 = inlined_call_operand.vmem [shape: bf16[464,64], index: 0, kind: input, shape index: {}]   ;;  %s1203_s1 = inlined_call_operand.vmem [shape: bf16[64,32], index: 1, kind: input, shape index: {}]   ;;  %s1204_s2 = inlined_call_operand.vmem [shape: f32[1,32], index: 2, kind: input, shape index: {}]   ;;  %s1205_s3 = inlined_call_operand.vmem [shape: bf16[464,32], index: 3, kind: output, shape index: {}]  }
   0x1 LB: > { %s746_s13 = sadd.s32 4294967295, %s978_s12   ;;  %p750_p0 = scmp.ge.s32.totalorder %s978_s12, 1  ;;  %s978_s12 = sphi %s1002_s12, %s13_s12  }
   0x2   : > { %p138_p1 = scmp.lt.s32.totalorder %s978_s12, 3 }
   0x4   : > { %p139_p2 = pnand %p750_p0, %p138_p1 }
   0x5   : > { %v953_v0 = vld [vmem:[%s1203_s1] sm:$0xff] (!%p139_p2)   ;;  %v980_v1 = vmov (!%p139_p2), 0.0   ;;  %v954_v2 = vld [vmem:[%s1203_s1 + $0x8] sm:$0xff] (!%p139_p2)   ;;  %s162_s18 = smul.u32 (!%p139_p2), 29, %s746_s13  ;;  %vm981_vm0 = vmmov (!%p139_p2), 0   ;;  %v955_v3 = vld [vmem:[%s1203_s1 + $0x10] sm:$0xff] (!%p139_p2)  }
   0x6   : > { %142 = sbr.rel (%p139_p2) target bundleno = 299 (0x12b), region = 32  ;;  %867 = vmatprep.subr.bf16.mxu0 (!%p139_p2), %v980_v1  ;;  %935 = vmatprep.subr.bf16.mxu1 (!%p139_p2), %v980_v1  ;;  %v956_v4 = vld [vmem:[%s1203_s1 + $0x18] sm:$0xff] (!%p139_p2)   ;;  %vm316_vm1 = vcmask (!%p139_p2), 523264   ;;  %v1103_v20 = vld [vmem:[%s1204_s2] ss:$0 sm:$0xff] (!%p139_p2)  ;;  %vm660_vm2 = vcmask (!%p139_p2), 257024  }
   0x7   : > { %868 = vmatpush3.bf16.msra.mxu0 (!%p139_p2), %v953_v0  ;;  %939 = vmatpush3.bf16.msra.mxu1 (!%p139_p2), %v953_v0  ;;  %p163_p3 = scmp.lt.s32.totalorder (!%p139_p2), %s162_s18, 57 }
   0x8   : > { %869 = vmatprep.subr.bf16.mxu0 (!%p139_p2), %v980_v1  ;;  %936 = vmatprep.subr.bf16.mxu1 (!%p139_p2), %v980_v1 }
   0x9   : > { %875 = vmatprep.mubr.msk.bf16.mxu0 (!%p139_p2), %vm981_vm0, %v980_v1  ;;  %907 = vmatprep.mubr.msk.bf16.mxu1 (!%p139_p2), %vm981_vm0, %v980_v1 }
   0xb   : > { %870 = vmatpush3.bf16.msra.mxu0 (!%p139_p2), %v954_v2  ;;  %940 = vmatpush3.bf16.msra.mxu1 (!%p139_p2), %v954_v2 }
   0xc   : > { %871 = vmatprep.subr.bf16.mxu0 (!%p139_p2), %v980_v1  ;;  %937 = vmatprep.subr.bf16.mxu1 (!%p139_p2), %v980_v1 }
   0xd   : > { %s1207_s18 = smov (!%p163_p3, %s162_s18), 57 }
   0xe   : > { %s751_s21 = sshll.u32 %s1207_s18, 2 }
   0xf   : > { %s1037_s24 = scalar_lea.vmem %s1202_s0, %s751_s21  ;;  %872 = vmatpush3.bf16.msra.mxu0 %v955_v3  ;;  %941 = vmatpush3.bf16.msra.mxu1 %v955_v3  ;;  %s1114_s4 = scalar_lea.vmem %s1205_s3, %s751_s21 }
  0x10   : > { %873 = vmatprep.subr.bf16.mxu0 %v980_v1  ;;  %938 = vmatprep.subr.bf16.mxu1 %v980_v1  ;;  %v957_v5 = vld [vmem:[%s1037_s24] sm:$0xff]   ;;  %v959_v7 = vld [vmem:[%s1037_s24 + $0x8] sm:$0xff]   ;;  %v961_v9 = vld [vmem:[%s1037_s24 + $0x10] sm:$0xff]  }
  0x11   : > { %v958_v6 = vld [vmem:[%s1037_s24 + $0x40] sm:$0xff]   ;;  %v960_v8 = vld [vmem:[%s1037_s24 + $0x48] sm:$0xff]   ;;  %v962_v10 = vld [vmem:[%s1037_s24 + $0x50] sm:$0xff]  }
  0x12   : > { %v963_v11 = vld [vmem:[%s1037_s24 + $0x18] sm:$0xff]   ;;  %v965_v13 = vld [vmem:[%s1037_s24 + $0x20] sm:$0xff]   ;;  %v967_v15 = vld [vmem:[%s1037_s24 + $0x28] sm:$0xff]  }
  0x13   : > { %874 = vmatpush3.bf16.msra.mxu0 %v956_v4  ;;  %942 = vmatpush3.bf16.msra.mxu1 %v956_v4  ;;  %v964_v12 = vld [vmem:[%s1037_s24 + $0x58] sm:$0xff]   ;;  %v966_v14 = vld [vmem:[%s1037_s24 + $0x60] sm:$0xff]   ;;  %v968_v16 = vld [vmem:[%s1037_s24 + $0x68] sm:$0xff]  }
  0x14   : > { %v969_v17 = vld [vmem:[%s1037_s24 + $0x30] sm:$0xff]   ;;  %v971_v19 = vld [vmem:[%s1037_s24 + $0x38] sm:$0xff]  }
  0x15   : > { %v970_v18 = vld [vmem:[%s1037_s24 + $0x70] ss:$0 sps:$4 sm:$0xff]  }
  0x16   : > { %876 = vmatmul.mubr.msk.bf16.vlgmr.msra.gmra.mrb[0].mxu0 %vm316_vm1, %v957_v5  ;;  %908 = vmatmul.mubr.msk.bf16.vlgmr.msra.gmra.mrb[0].mxu1 %vm316_vm1, %v958_v6 }
  0x17   : > { %879 = vmatprep.mubr.msk.bf16.mxu0 %vm981_vm0, %v980_v1  ;;  %911 = vmatprep.mubr.msk.bf16.mxu1 %vm981_vm0, %v980_v1 }
  0x1e   : > { %880 = vmatmul.mubr.msk.bf16.gmra.mrb[4].mxu0 %vm316_vm1, %v959_v7  ;;  %912 = vmatmul.mubr.msk.bf16.gmra.mrb[4].mxu1 %vm316_vm1, %v960_v8 }
  0x1f   : > { %883 = vmatprep.mubr.msk.bf16.mxu0 %vm981_vm0, %v980_v1  ;;  %915 = vmatprep.mubr.msk.bf16.mxu1 %vm981_vm0, %v980_v1 }
  0x26   : > { %884 = vmatmul.mubr.msk.bf16.gmra.mrb[8].mxu0 %vm316_vm1, %v961_v9  ;;  %916 = vmatmul.mubr.msk.bf16.gmra.mrb[8].mxu1 %vm316_vm1, %v962_v10 }
  0x27   : > { %887 = vmatprep.mubr.msk.bf16.mxu0 %vm981_vm0, %v980_v1  ;;  %919 = vmatprep.mubr.msk.bf16.mxu1 %vm981_vm0, %v980_v1 }
  0x2e   : > { %888 = vmatmul.mubr.msk.bf16.gmra.mrb[12].mxu0 %vm316_vm1, %v963_v11  ;;  %920 = vmatmul.mubr.msk.bf16.gmra.mrb[12].mxu1 %vm316_vm1, %v964_v12 }
  0x2f   : > { %891 = vmatprep.mubr.msk.bf16.mxu0 %vm981_vm0, %v980_v1  ;;  %923 = vmatprep.mubr.msk.bf16.mxu1 %vm981_vm0, %v980_v1 }
  0x36   : > { %892 = vmatmul.mubr.msk.bf16.gmra.mrb[16].mxu0 %vm316_vm1, %v965_v13  ;;  %924 = vmatmul.mubr.msk.bf16.gmra.mrb[16].mxu1 %vm316_vm1, %v966_v14 }
  0x37   : > { %895 = vmatprep.mubr.msk.bf16.mxu0 %vm981_vm0, %v980_v1  ;;  %927 = vmatprep.mubr.msk.bf16.mxu1 %vm981_vm0, %v980_v1 }
  0x3e   : > { %896 = vmatmul.mubr.msk.bf16.gmra.mrb[20].mxu0 %vm316_vm1, %v967_v15  ;;  %928 = vmatmul.mubr.msk.bf16.gmra.mrb[20].mxu1 %vm316_vm1, %v968_v16 }
  0x3f   : > { %899 = vmatprep.mubr.msk.bf16.mxu0 %vm981_vm0, %v980_v1  ;;  %931 = vmatprep.mubr.msk.bf16.mxu1 %vm981_vm0, %v980_v1 }
  0x46   : > { %900 = vmatmul.mubr.msk.bf16.gmra.mrb[24].mxu0 %vm316_vm1, %v969_v17  ;;  %932 = vmatmul.mubr.msk.bf16.gmra.mrb[24].mxu1 %vm316_vm1, %v970_v18 }
  0x47   : > { %903 = vmatprep.mubr.msk.bf16.mxu0 %vm981_vm0, %v980_v1 }
  0x4e   : > { %904 = vmatmul.mubr.msk.bf16.gmra.mrb[28].mxu0 %vm316_vm1, %v971_v19 }
  0xe9   : > { %v396_v21 = vpop.f32.mrb[0].mxu0  ;;  %v460_v22 = vpop.f32.mrb[0].mxu1 }
  0xea   : > { %v397_v23 = vadd.f32 %v1103_v20, %v396_v21  ;;  %v877_v24 = vpop.f32.mrb[1].mxu0  ;;  %v461_v25 = vadd.f32 %v1103_v20, %v460_v22  ;;  %v909_v26 = vpop.f32.mrb[1].mxu1 }
  0xeb   : > { %v399_v27 = vpop.f32.mrb[2].mxu0  ;;  %v463_v28 = vpop.f32.mrb[2].mxu1 }
  0xec   : > { %v514_v29 = vmax.f32 %v397_v23, 0.0  ;;  %v400_v30 = vadd.f32 %v1103_v20, %v399_v27  ;;  %v878_v31 = vpop.f32.mrb[3].mxu0  ;;  %v530_v32 = vmax.f32 %v461_v25, 0.0  ;;  %v464_v33 = vadd.f32 %v1103_v20, %v463_v28  ;;  %v910_v34 = vpop.f32.mrb[3].mxu1 }
  0xee   : > { %v819_v35 = vpack.c.bf16 %v514_v29, %v514_v29  ;;  %v515_v36 = vmax.f32 %v400_v30, 0.0  ;;  %v835_v37 = vpack.c.bf16 %v530_v32, %v530_v32  ;;  %v531_v38 = vmax.f32 %v464_v33, 0.0 }
  0xf0   : > { %661 = vst.msk [vmem:[%s1114_s4] sm:$0xf] %vm660_vm2, %v819_v35  ;;  %v820_v39 = vpack.c.bf16 %v515_v36, %v515_v36  ;;  %677 = vst.msk [vmem:[%s1114_s4 + $0x40] sm:$0xf] %vm660_vm2, %v835_v37  ;;  %v836_v40 = vpack.c.bf16 %v531_v38, %v531_v38 }
  0xf1   : > { %v404_v41 = vpop.f32.mrb[4].mxu0  ;;  %v468_v42 = vpop.f32.mrb[4].mxu1 }
  0xf2   : > { %662 = vst.msk [vmem:[%s1114_s4 + $0x4] sm:$0xf] %vm660_vm2, %v820_v39  ;;  %v405_v43 = vadd.f32 %v1103_v20, %v404_v41  ;;  %v881_v44 = vpop.f32.mrb[5].mxu0  ;;  %678 = vst.msk [vmem:[%s1114_s4 + $0x44] sm:$0xf] %vm660_vm2, %v836_v40  ;;  %v469_v45 = vadd.f32 %v1103_v20, %v468_v42  ;;  %v913_v46 = vpop.f32.mrb[5].mxu1 }
  0xf3   : > { %v407_v47 = vpop.f32.mrb[6].mxu0  ;;  %v471_v48 = vpop.f32.mrb[6].mxu1 }
  0xf4   : > { %v516_v49 = vmax.f32 %v405_v43, 0.0  ;;  %v408_v50 = vadd.f32 %v1103_v20, %v407_v47  ;;  %v882_v51 = vpop.f32.mrb[7].mxu0  ;;  %v532_v52 = vmax.f32 %v469_v45, 0.0  ;;  %v472_v53 = vadd.f32 %v1103_v20, %v471_v48  ;;  %v914_v54 = vpop.f32.mrb[7].mxu1 }
  0xf6   : > { %v821_v55 = vpack.c.bf16 %v516_v49, %v516_v49  ;;  %v517_v56 = vmax.f32 %v408_v50, 0.0  ;;  %v837_v57 = vpack.c.bf16 %v532_v52, %v532_v52  ;;  %v533_v58 = vmax.f32 %v472_v53, 0.0 }
  0xf8   : > { %663 = vst.msk [vmem:[%s1114_s4 + $0x8] sm:$0xf] %vm660_vm2, %v821_v55  ;;  %v822_v59 = vpack.c.bf16 %v517_v56, %v517_v56  ;;  %679 = vst.msk [vmem:[%s1114_s4 + $0x48] sm:$0xf] %vm660_vm2, %v837_v57  ;;  %v838_v60 = vpack.c.bf16 %v533_v58, %v533_v58 }
  0xf9   : > { %v412_v61 = vpop.f32.mrb[8].mxu0  ;;  %v476_v62 = vpop.f32.mrb[8].mxu1 }
  0xfa   : > { %664 = vst.msk [vmem:[%s1114_s4 + $0xc] sm:$0xf] %vm660_vm2, %v822_v59  ;;  %v413_v63 = vadd.f32 %v1103_v20, %v412_v61  ;;  %v885_v0 = vpop.f32.mrb[9].mxu0  ;;  %680 = vst.msk [vmem:[%s1114_s4 + $0x4c] sm:$0xf] %vm660_vm2, %v838_v60  ;;  %v477_v1 = vadd.f32 %v1103_v20, %v476_v62  ;;  %v917_v2 = vpop.f32.mrb[9].mxu1 }
  0xfb   : > { %v415_v3 = vpop.f32.mrb[10].mxu0  ;;  %v479_v4 = vpop.f32.mrb[10].mxu1 }
  0xfc   : > { %v518_v5 = vmax.f32 %v413_v63, 0.0  ;;  %v416_v6 = vadd.f32 %v1103_v20, %v415_v3  ;;  %v886_v7 = vpop.f32.mrb[11].mxu0  ;;  %v534_v8 = vmax.f32 %v477_v1, 0.0  ;;  %v480_v9 = vadd.f32 %v1103_v20, %v479_v4  ;;  %v918_v10 = vpop.f32.mrb[11].mxu1 }
  0xfe   : > { %v823_v11 = vpack.c.bf16 %v518_v5, %v518_v5  ;;  %v519_v12 = vmax.f32 %v416_v6, 0.0  ;;  %v839_v13 = vpack.c.bf16 %v534_v8, %v534_v8  ;;  %v535_v14 = vmax.f32 %v480_v9, 0.0 }
 0x100   : > { %665 = vst.msk [vmem:[%s1114_s4 + $0x10] sm:$0xf] %vm660_vm2, %v823_v11  ;;  %v824_v15 = vpack.c.bf16 %v519_v12, %v519_v12  ;;  %681 = vst.msk [vmem:[%s1114_s4 + $0x50] sm:$0xf] %vm660_vm2, %v839_v13  ;;  %v840_v16 = vpack.c.bf16 %v535_v14, %v535_v14 }
 0x101   : > { %v420_v17 = vpop.f32.mrb[12].mxu0  ;;  %v484_v18 = vpop.f32.mrb[12].mxu1 }
 0x102   : > { %666 = vst.msk [vmem:[%s1114_s4 + $0x14] sm:$0xf] %vm660_vm2, %v824_v15  ;;  %v421_v19 = vadd.f32 %v1103_v20, %v420_v17  ;;  %v889_v21 = vpop.f32.mrb[13].mxu0  ;;  %682 = vst.msk [vmem:[%s1114_s4 + $0x54] sm:$0xf] %vm660_vm2, %v840_v16  ;;  %v485_v22 = vadd.f32 %v1103_v20, %v484_v18  ;;  %v921_v23 = vpop.f32.mrb[13].mxu1 }
 0x103   : > { %v423_v24 = vpop.f32.mrb[14].mxu0  ;;  %v487_v25 = vpop.f32.mrb[14].mxu1 }
 0x104   : > { %v520_v26 = vmax.f32 %v421_v19, 0.0  ;;  %v424_v27 = vadd.f32 %v1103_v20, %v423_v24  ;;  %v890_v28 = vpop.f32.mrb[15].mxu0  ;;  %v536_v29 = vmax.f32 %v485_v22, 0.0  ;;  %v488_v30 = vadd.f32 %v1103_v20, %v487_v25  ;;  %v922_v31 = vpop.f32.mrb[15].mxu1 }
 0x106   : > { %v825_v32 = vpack.c.bf16 %v520_v26, %v520_v26  ;;  %v521_v33 = vmax.f32 %v424_v27, 0.0  ;;  %v841_v34 = vpack.c.bf16 %v536_v29, %v536_v29  ;;  %v537_v35 = vmax.f32 %v488_v30, 0.0 }
 0x108   : > { %667 = vst.msk [vmem:[%s1114_s4 + $0x18] sm:$0xf] %vm660_vm2, %v825_v32  ;;  %v826_v36 = vpack.c.bf16 %v521_v33, %v521_v33  ;;  %683 = vst.msk [vmem:[%s1114_s4 + $0x58] sm:$0xf] %vm660_vm2, %v841_v34  ;;  %v842_v37 = vpack.c.bf16 %v537_v35, %v537_v35 }
 0x109   : > { %v428_v38 = vpop.f32.mrb[16].mxu0  ;;  %v492_v39 = vpop.f32.mrb[16].mxu1 }
 0x10a   : > { %668 = vst.msk [vmem:[%s1114_s4 + $0x1c] sm:$0xf] %vm660_vm2, %v826_v36  ;;  %v429_v40 = vadd.f32 %v1103_v20, %v428_v38  ;;  %v893_v41 = vpop.f32.mrb[17].mxu0  ;;  %684 = vst.msk [vmem:[%s1114_s4 + $0x5c] sm:$0xf] %vm660_vm2, %v842_v37  ;;  %v493_v42 = vadd.f32 %v1103_v20, %v492_v39  ;;  %v925_v43 = vpop.f32.mrb[17].mxu1 }
 0x10b   : > { %v431_v44 = vpop.f32.mrb[18].mxu0  ;;  %v495_v45 = vpop.f32.mrb[18].mxu1 }
 0x10c   : > { %v522_v46 = vmax.f32 %v429_v40, 0.0  ;;  %v432_v47 = vadd.f32 %v1103_v20, %v431_v44  ;;  %v894_v48 = vpop.f32.mrb[19].mxu0  ;;  %v538_v49 = vmax.f32 %v493_v42, 0.0  ;;  %v496_v50 = vadd.f32 %v1103_v20, %v495_v45  ;;  %v926_v51 = vpop.f32.mrb[19].mxu1 }
 0x10e   : > { %v827_v52 = vpack.c.bf16 %v522_v46, %v522_v46  ;;  %v523_v53 = vmax.f32 %v432_v47, 0.0  ;;  %v843_v54 = vpack.c.bf16 %v538_v49, %v538_v49  ;;  %v539_v55 = vmax.f32 %v496_v50, 0.0 }
 0x110   : > { %669 = vst.msk [vmem:[%s1114_s4 + $0x20] sm:$0xf] %vm660_vm2, %v827_v52  ;;  %v828_v56 = vpack.c.bf16 %v523_v53, %v523_v53  ;;  %685 = vst.msk [vmem:[%s1114_s4 + $0x60] sm:$0xf] %vm660_vm2, %v843_v54  ;;  %v844_v57 = vpack.c.bf16 %v539_v55, %v539_v55 }
 0x111   : > { %v436_v58 = vpop.f32.mrb[20].mxu0  ;;  %v500_v59 = vpop.f32.mrb[20].mxu1 }
 0x112   : > { %670 = vst.msk [vmem:[%s1114_s4 + $0x24] sm:$0xf] %vm660_vm2, %v828_v56  ;;  %v437_v60 = vadd.f32 %v1103_v20, %v436_v58  ;;  %v897_v61 = vpop.f32.mrb[21].mxu0  ;;  %686 = vst.msk [vmem:[%s1114_s4 + $0x64] sm:$0xf] %vm660_vm2, %v844_v57  ;;  %v501_v62 = vadd.f32 %v1103_v20, %v500_v59  ;;  %v929_v63 = vpop.f32.mrb[21].mxu1 }
 0x113   : > { %v439_v0 = vpop.f32.mrb[22].mxu0  ;;  %v503_v1 = vpop.f32.mrb[22].mxu1 }
 0x114   : > { %v524_v2 = vmax.f32 %v437_v60, 0.0  ;;  %v440_v3 = vadd.f32 %v1103_v20, %v439_v0  ;;  %v898_v4 = vpop.f32.mrb[23].mxu0  ;;  %v540_v5 = vmax.f32 %v501_v62, 0.0  ;;  %v504_v6 = vadd.f32 %v1103_v20, %v503_v1  ;;  %v930_v7 = vpop.f32.mrb[23].mxu1 }
 0x116   : > { %v829_v8 = vpack.c.bf16 %v524_v2, %v524_v2  ;;  %v525_v9 = vmax.f32 %v440_v3, 0.0  ;;  %v845_v10 = vpack.c.bf16 %v540_v5, %v540_v5  ;;  %v541_v11 = vmax.f32 %v504_v6, 0.0 }
 0x118   : > { %671 = vst.msk [vmem:[%s1114_s4 + $0x28] sm:$0xf] %vm660_vm2, %v829_v8  ;;  %v830_v12 = vpack.c.bf16 %v525_v9, %v525_v9  ;;  %687 = vst.msk [vmem:[%s1114_s4 + $0x68] sm:$0xf] %vm660_vm2, %v845_v10  ;;  %v846_v13 = vpack.c.bf16 %v541_v11, %v541_v11 }
 0x119   : > { %v444_v14 = vpop.f32.mrb[24].mxu0  ;;  %v508_v15 = vpop.f32.mrb[24].mxu1 }
 0x11a   : > { %672 = vst.msk [vmem:[%s1114_s4 + $0x2c] sm:$0xf] %vm660_vm2, %v830_v12  ;;  %v445_v16 = vadd.f32 %v1103_v20, %v444_v14  ;;  %v901_v17 = vpop.f32.mrb[25].mxu0  ;;  %688 = vst.msk [vmem:[%s1114_s4 + $0x6c] sm:$0xf] %vm660_vm2, %v846_v13  ;;  %v509_v18 = vadd.f32 %v1103_v20, %v508_v15  ;;  %v933_v19 = vpop.f32.mrb[25].mxu1 }
 0x11b   : > { %v447_v21 = vpop.f32.mrb[26].mxu0  ;;  %v511_v22 = vpop.f32.mrb[26].mxu1 }
 0x11c   : > { %v526_v23 = vmax.f32 %v445_v16, 0.0  ;;  %v448_v24 = vadd.f32 %v1103_v20, %v447_v21  ;;  %v902_v25 = vpop.f32.mrb[27].mxu0  ;;  %v542_v26 = vmax.f32 %v509_v18, 0.0  ;;  %v934_v27 = vpop.f32.mrb[27].mxu1 }
 0x11e   : > { %v831_v28 = vpack.c.bf16 %v526_v23, %v526_v23  ;;  %v527_v29 = vmax.f32 %v448_v24, 0.0  ;;  %v847_v30 = vpack.c.bf16 %v542_v26, %v542_v26 }
 0x120   : > { %673 = vst.msk [vmem:[%s1114_s4 + $0x30] sm:$0xf] %vm660_vm2, %v831_v28  ;;  %v832_v31 = vpack.c.bf16 %v527_v29, %v527_v29  ;;  %689 = vst.msk [vmem:[%s1114_s4 + $0x70] sm:$0xf] %vm660_vm2, %v847_v30 }
 0x121   : > { %v452_v32 = vpop.f32.mrb[28].mxu0 }
 0x122   : > { %674 = vst.msk [vmem:[%s1114_s4 + $0x34] sm:$0xf] %vm660_vm2, %v832_v31  ;;  %v453_v33 = vadd.f32 %v1103_v20, %v452_v32  ;;  %v905_v34 = vpop.f32.mrb[29].mxu0 }
 0x123   : > { %v455_v35 = vpop.f32.mrb[30].mxu0 }
 0x124   : > { %v528_v36 = vmax.f32 %v453_v33, 0.0  ;;  %v456_v37 = vadd.f32 %v1103_v20, %v455_v35  ;;  %v906_v38 = vpop.f32.mrb[31].mxu0 }
 0x126   : > { %v833_v39 = vpack.c.bf16 %v528_v36, %v528_v36  ;;  %v529_v40 = vmax.f32 %v456_v37, 0.0 }
 0x128   : > { %675 = vst.msk [vmem:[%s1114_s4 + $0x38] sm:$0xf] %vm660_vm2, %v833_v39  ;;  %v834_v41 = vpack.c.bf16 %v529_v40, %v529_v40 }
 0x12a   : > { %676 = vst.msk [vmem:[%s1114_s4 + $0x3c] sm:$0xf] %vm660_vm2, %v834_v41 }
 0x12b PF: > { %s13_s12 = sadd.s32 1, %s978_s12  }
 0x12c   : > { %p10_p4 = scmp.ge.s32.totalorder %s13_s12, 4  }
 0x12e   :  { %12 = sbr.rel (!%p10_p4) target bundleno = 1 (0x1), region = 62 }

// kernel: dqn_forward.4
= control target key start
LH: loop header
LB: loop body
LE: loop exit
PB: predicated region body
PF: predicated region fallthrough
CT: control target
= control target key end

     0   :  { %vm580_vm0 = vcmask 519168   ;;  %s1037_s1 = inlined_call_operand.vmem [shape: bf16[512,64], index: 1, kind: input, shape index: {}]   ;;  %s1038_s0 = inlined_call_operand.vmem [shape: bf16[72,512], index: 0, kind: input, shape index: {}]   ;;  %s1039_s2 = inlined_call_operand.vmem [shape: f32[1,64], index: 2, kind: input, shape index: {}]   ;;  %s1040_s3 = inlined_call_operand.vmem [shape: bf16[72,64], index: 3, kind: output, shape index: {}]  }
   0x1   :  { %v757_v0 = vld [vmem:[%s1037_s1 + $0x40] sm:$0xff]   ;;  %v761_v4 = vld [vmem:[%s1037_s1 + $0x48] sm:$0xff]   ;;  %v765_v8 = vld [vmem:[%s1037_s1 + $0x50] sm:$0xff]  }
   0x2   :  { %v758_v1 = vld [vmem:[%s1037_s1 + $0xc0] sm:$0xff]   ;;  %665 = vmatprep.subr.bf16.mxu0 %v757_v0  ;;  %v762_v5 = vld [vmem:[%s1037_s1 + $0xc8] sm:$0xff]   ;;  %v766_v9 = vld [vmem:[%s1037_s1 + $0xd0] sm:$0xff]  }
   0x3   :  { %v759_v2 = vld [vmem:[%s1037_s1] sm:$0xff]   ;;  %711 = vmatprep.subr.bf16.mxu1 %v758_v1  ;;  %v763_v6 = vld [vmem:[%s1037_s1 + $0x8] sm:$0xff]   ;;  %v767_v10 = vld [vmem:[%s1037_s1 + $0x10] sm:$0xff]  }
   0x4   :  { %v760_v3 = vld [vmem:[%s1037_s1 + $0x80] sm:$0xff]   ;;  %666 = vmatpush3.bf16.msra.mxu0 %v759_v2  ;;  %v764_v7 = vld [vmem:[%s1037_s1 + $0x88] sm:$0xff]   ;;  %v768_v11 = vld [vmem:[%s1037_s1 + $0x90] sm:$0xff]  }
   0x5   :  { %712 = vmatpush3.bf16.msra.mxu1 %v760_v3  ;;  %667 = vmatprep.subr.bf16.mxu0 %v761_v4  ;;  %v769_v12 = vld [vmem:[%s1037_s1 + $0x58] sm:$0xff]   ;;  %v773_v16 = vld [vmem:[%s1037_s1 + $0x60] sm:$0xff]   ;;  %v777_v20 = vld [vmem:[%s1037_s1 + $0x68] sm:$0xff]  }
   0x6   :  { %713 = vmatprep.subr.bf16.mxu1 %v762_v5  ;;  %v770_v13 = vld [vmem:[%s1037_s1 + $0xd8] sm:$0xff]   ;;  %v774_v17 = vld [vmem:[%s1037_s1 + $0xe0] sm:$0xff]   ;;  %v778_v21 = vld [vmem:[%s1037_s1 + $0xe8] sm:$0xff]  }
   0x7   :  { %v771_v14 = vld [vmem:[%s1037_s1 + $0x18] sm:$0xff]   ;;  %v775_v18 = vld [vmem:[%s1037_s1 + $0x20] sm:$0xff]   ;;  %v779_v22 = vld [vmem:[%s1037_s1 + $0x28] sm:$0xff]  }
   0x8   :  { %668 = vmatpush3.bf16.msra.mxu0 %v763_v6  ;;  %v772_v15 = vld [vmem:[%s1037_s1 + $0x98] sm:$0xff]   ;;  %v776_v19 = vld [vmem:[%s1037_s1 + $0xa0] sm:$0xff]   ;;  %v780_v23 = vld [vmem:[%s1037_s1 + $0xa8] sm:$0xff]  }
   0x9   :  { %714 = vmatpush3.bf16.msra.mxu1 %v764_v7  ;;  %669 = vmatprep.subr.bf16.mxu0 %v765_v8  ;;  %v781_v24 = vld [vmem:[%s1037_s1 + $0x70] sm:$0xff]   ;;  %v785_v28 = vld [vmem:[%s1037_s1 + $0x78] sm:$0xff]   ;;  %v31_v46 = vld [vmem:[%s1038_s0 + $0x80] sm:$0xff] }
   0xa   :  { %715 = vmatprep.subr.bf16.mxu1 %v766_v9  ;;  %v782_v25 = vld [vmem:[%s1037_s1 + $0xf0] sm:$0xff]   ;;  %v786_v29 = vld [vmem:[%s1037_s1 + $0xf8] sm:$0xff]   ;;  %v32_v47 = vld [vmem:[%s1038_s0 + $0x88] sm:$0xff]  ;;  %v612_v50 = vcombine.high %v31_v46, %v31_v46  ;;  %v611_v52 = vcombine.low %v31_v46, %v31_v46 }
   0xb   :  { %v783_v26 = vld [vmem:[%s1037_s1 + $0x30] sm:$0xff]   ;;  %v787_v30 = vld [vmem:[%s1037_s1 + $0x38] sm:$0xff]   ;;  %v614_v51 = vcombine.high %v32_v47, %v32_v47  ;;  %v613_v53 = vcombine.low %v32_v47, %v32_v47  ;;  %v990_v56 = vld [vmem:[%s1039_s2] ss:$0 sm:$0xff] }
   0xc   :  { %670 = vmatpush3.bf16.msra.mxu0 %v767_v10  ;;  %v784_v27 = vld [vmem:[%s1037_s1 + $0xb0] sm:$0xff]   ;;  %v788_v31 = vld [vmem:[%s1037_s1 + $0xb8] sm:$0xff]  }
   0xd   :  { %716 = vmatpush3.bf16.msra.mxu1 %v768_v11  ;;  %671 = vmatprep.subr.bf16.mxu0 %v769_v12  ;;  %v789_v32 = vld [vmem:[%s1038_s0] ss:$16 sps:$4 sm:$0xff]   ;;  %v791_v33 = vld [vmem:[%s1038_s0 + $0x4] ss:$16 sps:$4 sm:$0xff]   ;;  %v792_v34 = vld [vmem:[%s1038_s0 + $0x8] ss:$16 sps:$4 sm:$0xff]  }
   0xe   :  { %717 = vmatprep.subr.bf16.mxu1 %v770_v13  ;;  %v794_v35 = vld [vmem:[%s1038_s0 + $0xc] ss:$16 sps:$4 sm:$0xff]   ;;  %422 = vmatprep.mubr.bf16.mxu0 %v791_v33  ;;  %v795_v36 = vld [vmem:[%s1038_s0 + $0x24] ss:$16 sps:$4 sm:$0xff]   ;;  %v799_v38 = vld [vmem:[%s1038_s0 + $0x20] ss:$16 sps:$4 sm:$0xff]  }
   0xf   :  { %494 = vmatprep.mubr.bf16.mxu1 %v794_v35  ;;  %v797_v37 = vld [vmem:[%s1038_s0 + $0x2c] ss:$16 sps:$4 sm:$0xff]   ;;  %v800_v39 = vld [vmem:[%s1038_s0 + $0x28] ss:$16 sps:$4 sm:$0xff]   ;;  %v801_v40 = vld [vmem:[%s1038_s0 + $0x44] ss:$16 sps:$4 sm:$0xff]  }
  0x10   :  { %672 = vmatpush3.bf16.msra.mxu0 %v771_v14  ;;  %v803_v41 = vld [vmem:[%s1038_s0 + $0x4c] ss:$16 sps:$4 sm:$0xff]   ;;  %v805_v42 = vld [vmem:[%s1038_s0 + $0x40] ss:$16 sps:$4 sm:$0xff]   ;;  %v806_v43 = vld [vmem:[%s1038_s0 + $0x48] ss:$16 sps:$4 sm:$0xff]  }
  0x11   :  { %718 = vmatpush3.bf16.msra.mxu1 %v772_v15  ;;  %673 = vmatprep.subr.bf16.mxu0 %v773_v16  ;;  %v807_v44 = vld [vmem:[%s1038_s0 + $0x64] ss:$16 sps:$4 sm:$0xff]   ;;  %v809_v45 = vld [vmem:[%s1038_s0 + $0x6c] ss:$16 sps:$4 sm:$0xff]   ;;  %v811_v48 = vld [vmem:[%s1038_s0 + $0x60] ss:$16 sps:$4 sm:$0xff]  }
  0x12   :  { %719 = vmatprep.subr.bf16.mxu1 %v774_v17  ;;  %v812_v49 = vld [vmem:[%s1038_s0 + $0x68] ss:$16 sps:$4 sm:$0xff]  }
  0x14   :  { %674 = vmatpush3.bf16.msra.mxu0 %v775_v18 }
  0x15   :  { %720 = vmatpush3.bf16.msra.mxu1 %v776_v19  ;;  %675 = vmatprep.subr.bf16.mxu0 %v777_v20 }
  0x16   :  { %721 = vmatprep.subr.bf16.mxu1 %v778_v21 }
  0x18   :  { %676 = vmatpush3.bf16.msra.mxu0 %v779_v22 }
  0x19   :  { %722 = vmatpush3.bf16.msra.mxu1 %v780_v23  ;;  %677 = vmatprep.subr.bf16.mxu0 %v781_v24 }
  0x1a   :  { %723 = vmatprep.subr.bf16.mxu1 %v782_v25 }
  0x1c   :  { %678 = vmatpush3.bf16.msra.mxu0 %v783_v26 }
  0x1d   :  { %724 = vmatpush3.bf16.msra.mxu1 %v784_v27  ;;  %679 = vmatprep.subr.bf16.mxu0 %v785_v28 }
  0x1e   :  { %725 = vmatprep.subr.bf16.mxu1 %v786_v29 }
  0x20   :  { %680 = vmatpush3.bf16.msra.mxu0 %v787_v30 }
  0x21   :  { %726 = vmatpush3.bf16.msra.mxu1 %v788_v31 }
  0x23   :  { %423 = vmatmul.mubr.bf16.vlgmr.msra.gmra.mrb[0].mxu0 %v789_v32 }
  0x24   :  { %495 = vmatmul.mubr.bf16.vlgmr.msra.gmra.mrb[0].mxu1 %v792_v34  ;;  %430 = vmatprep.mubr.bf16.mxu0 %v795_v36 }
  0x25   :  { %502 = vmatprep.mubr.bf16.mxu1 %v797_v37 }
  0x2b   :  { %431 = vmatmul.mubr.bf16.gmra.mrb[4].mxu0 %v799_v38 }
  0x2c   :  { %503 = vmatmul.mubr.bf16.gmra.mrb[4].mxu1 %v800_v39  ;;  %438 = vmatprep.mubr.bf16.mxu0 %v801_v40 }
  0x2d   :  { %510 = vmatprep.mubr.bf16.mxu1 %v803_v41 }
  0x33   :  { %439 = vmatmul.mubr.bf16.gmra.mrb[8].mxu0 %v805_v42 }
  0x34   :  { %511 = vmatmul.mubr.bf16.gmra.mrb[8].mxu1 %v806_v43  ;;  %446 = vmatprep.mubr.bf16.mxu0 %v807_v44 }
  0x35   :  { %518 = vmatprep.mubr.bf16.mxu1 %v809_v45 }
  0x3b   :  { %447 = vmatmul.mubr.bf16.gmra.mrb[12].mxu0 %v811_v48 }
  0x3c   :  { %519 = vmatmul.mubr.bf16.gmra.mrb[12].mxu1 %v812_v49  ;;  %454 = vmatprep.mubr.bf16.mxu0 %v612_v50 }
  0x3d   :  { %526 = vmatprep.mubr.bf16.mxu1 %v614_v51 }
  0x43   :  { %455 = vmatmul.mubr.bf16.gmra.mrb[16].mxu0 %v611_v52 }
  0x44   :  { %527 = vmatmul.mubr.bf16.gmra.mrb[16].mxu1 %v613_v53 }
  0xf6   :  { %v681_v54 = vpop.f32.mrb[0].mxu0 }
  0xf7   :  { %v727_v55 = vpop.f32.mrb[0].mxu1  ;;  %v682_v57 = vpop.f32.mrb[1].mxu0 }
  0xf8   :  { %v683_v58 = vadd.f32 %v682_v57, %v681_v54  ;;  %v728_v59 = vpop.f32.mrb[1].mxu1  ;;  %v684_v60 = vpop.f32.mrb[2].mxu0 }
  0xf9   :  { %v729_v61 = vadd.f32 %v728_v59, %v727_v55  ;;  %v730_v62 = vpop.f32.mrb[2].mxu1  ;;  %v685_v63 = vpop.f32.mrb[3].mxu0 }
  0xfa   :  { %v425_v0 = vadd.f32 %v683_v58, %v990_v56  ;;  %v686_v1 = vadd.f32 %v685_v63, %v684_v60  ;;  %v731_v2 = vpop.f32.mrb[3].mxu1 }
  0xfb   :  { %v732_v3 = vadd.f32 %v731_v2, %v730_v62 }
  0xfc   :  { %v497_v4 = vadd.f32 %v729_v61, %v425_v0  ;;  %v428_v5 = vadd.f32 %v686_v1, %v990_v56 }
  0xfe   :  { %v534_v6 = vmax.f32 %v497_v4, 0.0  ;;  %v500_v7 = vadd.f32 %v732_v3, %v428_v5  ;;  %v687_v8 = vpop.f32.mrb[4].mxu0 }
  0xff   :  { %v733_v9 = vpop.f32.mrb[4].mxu1  ;;  %v688_v10 = vpop.f32.mrb[5].mxu0 }
 0x100   :  { %v656_v11 = vpack.c.bf16 %v534_v6, %v534_v6  ;;  %v535_v12 = vmax.f32 %v500_v7, 0.0  ;;  %v689_v13 = vadd.f32 %v688_v10, %v687_v8  ;;  %v734_v14 = vpop.f32.mrb[5].mxu1  ;;  %v690_v15 = vpop.f32.mrb[6].mxu0 }
 0x101   :  { %v735_v16 = vadd.f32 %v734_v14, %v733_v9  ;;  %v736_v17 = vpop.f32.mrb[6].mxu1  ;;  %v691_v18 = vpop.f32.mrb[7].mxu0 }
 0x102   :  { %581 = vst.msk [vmem:[%s1040_s3] sm:$0xf] %vm580_vm0, %v656_v11  ;;  %v657_v19 = vpack.c.bf16 %v535_v12, %v535_v12  ;;  %v433_v20 = vadd.f32 %v689_v13, %v990_v56  ;;  %v692_v21 = vadd.f32 %v691_v18, %v690_v15  ;;  %v737_v22 = vpop.f32.mrb[7].mxu1 }
 0x103   :  { %v738_v23 = vadd.f32 %v737_v22, %v736_v17 }
 0x104   :  { %582 = vst.msk [vmem:[%s1040_s3 + $0x4] sm:$0xf] %vm580_vm0, %v657_v19  ;;  %v505_v24 = vadd.f32 %v735_v16, %v433_v20  ;;  %v436_v25 = vadd.f32 %v692_v21, %v990_v56 }
 0x106   :  { %v536_v26 = vmax.f32 %v505_v24, 0.0  ;;  %v508_v27 = vadd.f32 %v738_v23, %v436_v25  ;;  %v693_v28 = vpop.f32.mrb[8].mxu0 }
 0x107   :  { %v739_v29 = vpop.f32.mrb[8].mxu1  ;;  %v694_v30 = vpop.f32.mrb[9].mxu0 }
 0x108   :  { %v658_v31 = vpack.c.bf16 %v536_v26, %v536_v26  ;;  %v537_v32 = vmax.f32 %v508_v27, 0.0  ;;  %v695_v33 = vadd.f32 %v694_v30, %v693_v28  ;;  %v740_v34 = vpop.f32.mrb[9].mxu1  ;;  %v696_v35 = vpop.f32.mrb[10].mxu0 }
 0x109   :  { %v741_v36 = vadd.f32 %v740_v34, %v739_v29  ;;  %v742_v37 = vpop.f32.mrb[10].mxu1  ;;  %v697_v38 = vpop.f32.mrb[11].mxu0 }
 0x10a   :  { %583 = vst.msk [vmem:[%s1040_s3 + $0x8] sm:$0xf] %vm580_vm0, %v658_v31  ;;  %v659_v39 = vpack.c.bf16 %v537_v32, %v537_v32  ;;  %v441_v40 = vadd.f32 %v695_v33, %v990_v56  ;;  %v698_v41 = vadd.f32 %v697_v38, %v696_v35  ;;  %v743_v42 = vpop.f32.mrb[11].mxu1 }
 0x10b   :  { %v744_v43 = vadd.f32 %v743_v42, %v742_v37 }
 0x10c   :  { %584 = vst.msk [vmem:[%s1040_s3 + $0xc] sm:$0xf] %vm580_vm0, %v659_v39  ;;  %v513_v44 = vadd.f32 %v741_v36, %v441_v40  ;;  %v444_v45 = vadd.f32 %v698_v41, %v990_v56 }
 0x10e   :  { %v538_v46 = vmax.f32 %v513_v44, 0.0  ;;  %v516_v47 = vadd.f32 %v744_v43, %v444_v45  ;;  %v699_v48 = vpop.f32.mrb[12].mxu0 }
 0x10f   :  { %v745_v49 = vpop.f32.mrb[12].mxu1  ;;  %v700_v50 = vpop.f32.mrb[13].mxu0 }
 0x110   :  { %v660_v51 = vpack.c.bf16 %v538_v46, %v538_v46  ;;  %v539_v52 = vmax.f32 %v516_v47, 0.0  ;;  %v701_v53 = vadd.f32 %v700_v50, %v699_v48  ;;  %v746_v54 = vpop.f32.mrb[13].mxu1  ;;  %v702_v55 = vpop.f32.mrb[14].mxu0 }
 0x111   :  { %v747_v57 = vadd.f32 %v746_v54, %v745_v49  ;;  %v748_v58 = vpop.f32.mrb[14].mxu1  ;;  %v703_v59 = vpop.f32.mrb[15].mxu0 }
 0x112   :  { %585 = vst.msk [vmem:[%s1040_s3 + $0x10] sm:$0xf] %vm580_vm0, %v660_v51  ;;  %v661_v60 = vpack.c.bf16 %v539_v52, %v539_v52  ;;  %v449_v61 = vadd.f32 %v701_v53, %v990_v56  ;;  %v704_v62 = vadd.f32 %v703_v59, %v702_v55  ;;  %v749_v63 = vpop.f32.mrb[15].mxu1 }
 0x113   :  { %v750_v0 = vadd.f32 %v749_v63, %v748_v58 }
 0x114   :  { %586 = vst.msk [vmem:[%s1040_s3 + $0x14] sm:$0xf] %vm580_vm0, %v661_v60  ;;  %v521_v1 = vadd.f32 %v747_v57, %v449_v61  ;;  %v452_v2 = vadd.f32 %v704_v62, %v990_v56 }
 0x116   :  { %v540_v3 = vmax.f32 %v521_v1, 0.0  ;;  %v524_v4 = vadd.f32 %v750_v0, %v452_v2  ;;  %v705_v5 = vpop.f32.mrb[16].mxu0 }
 0x117   :  { %v751_v6 = vpop.f32.mrb[16].mxu1  ;;  %v706_v7 = vpop.f32.mrb[17].mxu0 }
 0x118   :  { %v662_v8 = vpack.c.bf16 %v540_v3, %v540_v3  ;;  %v541_v9 = vmax.f32 %v524_v4, 0.0  ;;  %v707_v10 = vadd.f32 %v706_v7, %v705_v5  ;;  %v752_v11 = vpop.f32.mrb[17].mxu1  ;;  %v708_v12 = vpop.f32.mrb[18].mxu0 }
 0x119   :  { %v753_v13 = vadd.f32 %v752_v11, %v751_v6  ;;  %v754_v14 = vpop.f32.mrb[18].mxu1  ;;  %v709_v15 = vpop.f32.mrb[19].mxu0 }
 0x11a   :  { %587 = vst.msk [vmem:[%s1040_s3 + $0x18] sm:$0xf] %vm580_vm0, %v662_v8  ;;  %v663_v16 = vpack.c.bf16 %v541_v9, %v541_v9  ;;  %v457_v17 = vadd.f32 %v707_v10, %v990_v56  ;;  %v755_v18 = vpop.f32.mrb[19].mxu1 }
 0x11c   :  { %588 = vst.msk [vmem:[%s1040_s3 + $0x1c] sm:$0xf] %vm580_vm0, %v663_v16  ;;  %v529_v19 = vadd.f32 %v753_v13, %v457_v17 }
 0x11e   :  { %v542_v20 = vmax.f32 %v529_v19, 0.0 }
 0x120   :  { %v664_v21 = vpack.c.bf16 %v542_v20, %v542_v20 }
 0x122   :  { %589 = vst.msk [vmem:[%s1040_s3 + $0x20] sm:$0xf] %vm580_vm0, %v664_v21 }

// kernel: dqn_forward.5
= control target key start
LH: loop header
LB: loop body
LE: loop exit
PB: predicated region body
PF: predicated region fallthrough
CT: control target
= control target key end

     0   :  { %v13699_v35 = vmov 0.0   ;;  %vm13700_vm0 = vmmov 0   ;;  %vm342_vm1 = vcmask 523264   ;;  %v13701_v61 = vmov 0   ;;  %s17068_s1 = inlined_call_operand.vmem [shape: bf16[576,64], index: 1, kind: input, shape index: {}]   ;;  %s17069_s0 = inlined_call_operand.vmem [shape: bf16[16,8,576], index: 0, kind: input, shape index: {}]   ;;  %s17070_s3 = inlined_call_operand.vmem [shape: bf16[1024,512], index: 3, kind: input, shape index: {}]   ;;  %s17071_s2 = inlined_call_operand.vmem [shape: f32[1,64], index: 2, kind: input, shape index: {}]   ;;  %s17072_s5 = inlined_call_operand.vmem [shape: bf16[512,128], index: 5, kind: input, shape index: {}]   ;;  %s17073_s4 = inlined_call_operand.vmem [shape: f32[1,512], index: 4, kind: input, shape index: {}]   ;;  %s17074_s6 = inlined_call_operand.vmem [shape: f32[1,128], index: 6, kind: input, shape index: {}]   ;;  %s17075_s7 = inlined_call_operand.vmem [shape: f32[8,128], index: 7, kind: output, shape index: {}]  }
   0x1   :  { %v12626_v0 = vld [vmem:[%s17068_s1 + $0x40] sm:$0xff]   ;;  %v12630_v4 = vld [vmem:[%s17068_s1 + $0x48] sm:$0xff]   ;;  %v12634_v8 = vld [vmem:[%s17068_s1 + $0x50] sm:$0xff]  }
   0x2   :  { %v12627_v1 = vld [vmem:[%s17068_s1] sm:$0xff]   ;;  %11603 = vmatprep.subr.bf16.mxu0 %v12626_v0  ;;  %v12631_v5 = vld [vmem:[%s17068_s1 + $0x8] sm:$0xff]   ;;  %v12635_v9 = vld [vmem:[%s17068_s1 + $0x10] sm:$0xff]  }
   0x3   :  { %v12628_v2 = vld [vmem:[%s17068_s1 + $0xc0] sm:$0xff]   ;;  %11604 = vmatpush3.bf16.msra.mxu0 %v12627_v1  ;;  %v12632_v6 = vld [vmem:[%s17068_s1 + $0xc8] sm:$0xff]   ;;  %v12636_v10 = vld [vmem:[%s17068_s1 + $0xd0] sm:$0xff]  }
   0x4   :  { %v12629_v3 = vld [vmem:[%s17068_s1 + $0x80] sm:$0xff]   ;;  %11625 = vmatprep.subr.bf16.mxu1 %v12628_v2  ;;  %11605 = vmatprep.subr.bf16.mxu0 %v12630_v4  ;;  %v12633_v7 = vld [vmem:[%s17068_s1 + $0x88] sm:$0xff]   ;;  %v12637_v11 = vld [vmem:[%s17068_s1 + $0x90] sm:$0xff]  }
   0x5   :  { %11626 = vmatpush3.bf16.msra.mxu1 %v12629_v3  ;;  %v12638_v12 = vld [vmem:[%s17068_s1 + $0x58] sm:$0xff]   ;;  %v12642_v16 = vld [vmem:[%s17068_s1 + $0x60] sm:$0xff]   ;;  %v12646_v20 = vld [vmem:[%s17068_s1 + $0x68] sm:$0xff]  }
   0x6   :  { %11627 = vmatprep.subr.bf16.mxu1 %v12632_v6  ;;  %v12639_v13 = vld [vmem:[%s17068_s1 + $0x18] sm:$0xff]   ;;  %v12643_v17 = vld [vmem:[%s17068_s1 + $0x20] sm:$0xff]   ;;  %v12647_v21 = vld [vmem:[%s17068_s1 + $0x28] sm:$0xff]  }
   0x7   :  { %11606 = vmatpush3.bf16.msra.mxu0 %v12631_v5  ;;  %v12640_v14 = vld [vmem:[%s17068_s1 + $0xd8] sm:$0xff]   ;;  %v12644_v18 = vld [vmem:[%s17068_s1 + $0xe0] sm:$0xff]   ;;  %v12648_v22 = vld [vmem:[%s17068_s1 + $0xe8] sm:$0xff]  }
   0x8   :  { %11607 = vmatprep.subr.bf16.mxu0 %v12634_v8  ;;  %v12641_v15 = vld [vmem:[%s17068_s1 + $0x98] sm:$0xff]   ;;  %v12645_v19 = vld [vmem:[%s17068_s1 + $0xa0] sm:$0xff]   ;;  %v12649_v23 = vld [vmem:[%s17068_s1 + $0xa8] sm:$0xff]  }
   0x9   :  { %11628 = vmatpush3.bf16.msra.mxu1 %v12633_v7  ;;  %v12650_v24 = vld [vmem:[%s17068_s1 + $0x70] sm:$0xff]   ;;  %v12654_v28 = vld [vmem:[%s17068_s1 + $0x78] sm:$0xff]   ;;  %v27_v31 = vld [vmem:[%s17069_s0] sm:$0xff] }
   0xa   :  { %11629 = vmatprep.subr.bf16.mxu1 %v12636_v10  ;;  %v12651_v25 = vld [vmem:[%s17068_s1 + $0x30] sm:$0xff]   ;;  %v12655_v29 = vld [vmem:[%s17068_s1 + $0x38] sm:$0xff]   ;;  %v10550_v32 = vcombine.low %v27_v31, %v27_v31  ;;  %v10551_v33 = vcombine.high %v27_v31, %v27_v31  ;;  %v28_v36 = vld [vmem:[%s17069_s0 + $0x8] sm:$0xff] }
   0xb   :  { %11608 = vmatpush3.bf16.msra.mxu0 %v12635_v9  ;;  %v12652_v26 = vld [vmem:[%s17068_s1 + $0xf0] sm:$0xff]   ;;  %v12656_v30 = vld [vmem:[%s17068_s1 + $0xf8] sm:$0xff]   ;;  %v10552_v37 = vcombine.low %v28_v36, %v28_v36  ;;  %v10553_v38 = vcombine.high %v28_v36, %v28_v36  ;;  %v12662_v39 = vld [vmem:[%s17068_s1 + $0x100] sm:$0xff]  }
   0xc   :  { %11609 = vmatprep.subr.bf16.mxu0 %v12638_v12  ;;  %v12653_v27 = vld [vmem:[%s17068_s1 + $0xb0] sm:$0xff]   ;;  %v12659_v34 = vld [vmem:[%s17068_s1 + $0xb8] sm:$0xff]   ;;  %378 = vmatprep.mubr.bf16.mxu0 %v10551_v33  ;;  %v12663_v40 = vld [vmem:[%s17068_s1 + $0x108] sm:$0xff]  }
   0xd   :  { %11630 = vmatpush3.bf16.msra.mxu1 %v12637_v11  ;;  %418 = vmatprep.mubr.bf16.mxu1 %v10553_v38  ;;  %v12664_v41 = vld [vmem:[%s17068_s1 + $0x110] sm:$0xff]   ;;  %v12665_v42 = vld [vmem:[%s17068_s1 + $0x118] sm:$0xff]   ;;  %v12691_v60 = vld [vmem:[%s17068_s1 + $0x40] sm:$0xff]  }
   0xe   :  { %11631 = vmatprep.subr.bf16.mxu1 %v12640_v14  ;;  %v12666_v43 = vld [vmem:[%s17069_s0 + $0x10] ss:$0 sps:$4 sm:$0xff]   ;;  %v12669_v45 = vld [vmem:[%s17070_s3 + $0x4] ss:$16 sps:$4 sm:$0xff]   ;;  %v12670_v46 = vld [vmem:[%s17070_s3 + $0x8] ss:$16 sps:$4 sm:$0xff]  }
   0xf   :  { %11610 = vmatpush3.bf16.msra.mxu0 %v12639_v13  ;;  %v12667_v44 = vld [vmem:[%s17070_s3] ss:$16 sps:$4 sm:$0xff]   ;;  %v12672_v47 = vld [vmem:[%s17070_s3 + $0xc] ss:$16 sps:$4 sm:$0xff]   ;;  %v12675_v49 = vld [vmem:[%s17070_s3 + $0x24] ss:$16 sps:$4 sm:$0xff]  }
  0x10   :  { %11611 = vmatprep.subr.bf16.mxu0 %v12642_v16  ;;  %v12673_v48 = vld [vmem:[%s17070_s3 + $0x20] ss:$16 sps:$4 sm:$0xff]   ;;  %v12676_v50 = vld [vmem:[%s17070_s3 + $0x28] ss:$16 sps:$4 sm:$0xff]   ;;  %v12678_v51 = vld [vmem:[%s17070_s3 + $0x2c] ss:$16 sps:$4 sm:$0xff]  }
  0x11   :  { %11632 = vmatpush3.bf16.msra.mxu1 %v12641_v15  ;;  %v12679_v52 = vld [vmem:[%s17070_s3 + $0x40] ss:$16 sps:$4 sm:$0xff]   ;;  %v12681_v53 = vld [vmem:[%s17070_s3 + $0x44] ss:$16 sps:$4 sm:$0xff]   ;;  %v12682_v54 = vld [vmem:[%s17070_s3 + $0x48] ss:$16 sps:$4 sm:$0xff]  }
  0x12   :  { %11633 = vmatprep.subr.bf16.mxu1 %v12644_v18  ;;  %v12684_v55 = vld [vmem:[%s17070_s3 + $0x4c] ss:$16 sps:$4 sm:$0xff]   ;;  %v12687_v56 = vld [vmem:[%s17070_s3 + $0x64] ss:$16 sps:$4 sm:$0xff]   ;;  %v12685_v57 = vld [vmem:[%s17070_s3 + $0x60] ss:$16 sps:$4 sm:$0xff]  }
  0x13   :  { %11612 = vmatpush3.bf16.msra.mxu0 %v12643_v17  ;;  %v12690_v58 = vld [vmem:[%s17070_s3 + $0x6c] ss:$16 sps:$4 sm:$0xff]   ;;  %v12688_v59 = vld [vmem:[%s17070_s3 + $0x68] ss:$16 sps:$4 sm:$0xff]   ;;  %v12693_v62 = vld [vmem:[%s17068_s1 + $0xc0] sm:$0xff]  }
  0x14   :  { %11613 = vmatprep.subr.bf16.mxu0 %v12646_v20  ;;  %v10549_v63 = vld [vmem:[%s17071_s2] ss:$0 sm:$0xff]  ;;  %v13928_v15 = vld [vmem:[%s17069_s0 + $0x14] sm:$0xff] }
  0x15   :  { %11634 = vmatpush3.bf16.msra.mxu1 %v12645_v19  ;;  %v13933_v16 = vld [vmem:[%s17069_s0 + $0x1c] sm:$0xff]  ;;  %v12700_v31 = vld [vmem:[%s17068_s1 + $0x10] sm:$0xff]  }
  0x16   :  { %11635 = vmatprep.subr.bf16.mxu1 %v12648_v22  ;;  %v12692_v18 = vld [vmem:[%s17068_s1] sm:$0xff]   ;;  %v12695_v22 = vld [vmem:[%s17068_s1 + $0x48] sm:$0xff]   ;;  %v12703_v33 = vld [vmem:[%s17068_s1 + $0x58] sm:$0xff]  }
  0x17   :  { %11614 = vmatpush3.bf16.msra.mxu0 %v12647_v21  ;;  %v12694_v19 = vld [vmem:[%s17068_s1 + $0x80] sm:$0xff]   ;;  %v12704_v36 = vld [vmem:[%s17068_s1 + $0x18] sm:$0xff]  }
  0x18   :  { %11615 = vmatprep.subr.bf16.mxu0 %v12650_v24  ;;  %v12707_v38 = vld [vmem:[%s17068_s1 + $0x60] sm:$0xff]  }
  0x19   :  { %11636 = vmatpush3.bf16.msra.mxu1 %v12649_v23  ;;  %v12697_v23 = vld [vmem:[%s17068_s1 + $0xc8] sm:$0xff]  }
  0x1a   :  { %11637 = vmatprep.subr.bf16.mxu1 %v12652_v26  ;;  %v12698_v26 = vld [vmem:[%s17068_s1 + $0x88] sm:$0xff]  }
  0x1b   :  { %11616 = vmatpush3.bf16.msra.mxu0 %v12651_v25  ;;  %v12696_v25 = vld [vmem:[%s17068_s1 + $0x8] sm:$0xff]  }
  0x1c   :  { %11617 = vmatprep.subr.bf16.mxu0 %v12654_v28  ;;  %v10617_v28 = vcombine.high %v13933_v16, %v13933_v16 }
  0x1d   :  { %11638 = vmatpush3.bf16.msra.mxu1 %v12653_v27  ;;  %v10615_v27 = vcombine.high %v13928_v15, %v13928_v15 }
  0x1e   :  { %11639 = vmatprep.subr.bf16.mxu1 %v12656_v30  ;;  %v12701_v30 = vld [vmem:[%s17068_s1 + $0xd0] sm:$0xff]  }
  0x1f   :  { %11618 = vmatpush3.bf16.msra.mxu0 %v12655_v29  ;;  %v12699_v29 = vld [vmem:[%s17068_s1 + $0x50] sm:$0xff]  }
  0x20   :  { %12431 = vmatprep.subr.bf16.mxu0 %v13699_v35 }
  0x21   :  { %11640 = vmatpush3.bf16.msra.mxu1 %v12659_v34  ;;  %v12705_v34 = vld [vmem:[%s17068_s1 + $0xd8] sm:$0xff]  }
  0x22   :  { %379 = vmatmul.mubr.bf16.vlgmr.msra.gmra.mrb[0].mxu0 %v10550_v32  ;;  %567 = vmatprep.subr.bf16.mxu1 %v12669_v45  ;;  %v12702_v32 = vld [vmem:[%s17068_s1 + $0x90] sm:$0xff]   ;;  %v12714_v45 = vld [vmem:[%s17068_s1 + $0xa8] sm:$0xff]  }
  0x23   :  { %12432 = vmatpush3.bf16.msra.mxu0 %v12662_v39  ;;  %12439 = vmatprep.mubr.msk.bf16.mxu0 %vm13700_vm0, %v13699_v35  ;;  %v12709_v39 = vld [vmem:[%s17068_s1 + $0xe0] sm:$0xff]  }
  0x24   :  { %419 = vmatmul.mubr.bf16.vlgmr.msra.gmra.mrb[0].mxu1 %v10552_v37  ;;  %12433 = vmatprep.subr.bf16.mxu0 %v13699_v35  ;;  %v12706_v37 = vld [vmem:[%s17068_s1 + $0x98] sm:$0xff]  }
  0x25   :  { %568 = vmatpush1.bf16.msra.mxu1 %v12667_v44  ;;  %599 = vmatprep.mubr.bf16.mxu1 %v13701_v61  ;;  %v12712_v44 = vld [vmem:[%s17068_s1 + $0x28] sm:$0xff]  }
  0x26   :  { %569 = vmatprep.subr.bf16.mxu1 %v12675_v49  ;;  %v12718_v49 = vld [vmem:[%s17068_s1 + $0xb0] sm:$0xff]  }
  0x27   :  { %12434 = vmatpush3.bf16.msra.mxu0 %v12663_v40  ;;  %v12708_v40 = vld [vmem:[%s17068_s1 + $0x20] sm:$0xff]  }
  0x28   :  { %12435 = vmatprep.subr.bf16.mxu0 %v13699_v35 }
  0x29   :  { %570 = vmatpush1.bf16.msra.mxu1 %v12673_v48  ;;  %v12716_v48 = vld [vmem:[%s17068_s1 + $0x30] sm:$0xff]  }
  0x2a   :  { %571 = vmatprep.subr.bf16.mxu1 %v12681_v53  ;;  %v12724_v53 = vld [vmem:[%s17068_s1 + $0xb8] sm:$0xff]  }
  0x2b   :  { %12436 = vmatpush3.bf16.msra.mxu0 %v12664_v41  ;;  %v12710_v41 = vld [vmem:[%s17068_s1 + $0xa0] sm:$0xff]  }
  0x2c   :  { %12437 = vmatprep.subr.bf16.mxu0 %v13699_v35 }
  0x2d   :  { %572 = vmatpush1.bf16.msra.mxu1 %v12679_v52  ;;  %v12720_v52 = vld [vmem:[%s17068_s1 + $0x38] sm:$0xff]  }
  0x2e   :  { %573 = vmatprep.subr.bf16.mxu1 %v12687_v56  ;;  %v10616_v56 = vcombine.low %v13933_v16, %v13933_v16 }
  0x2f   :  { %12438 = vmatpush3.bf16.msra.mxu0 %v12665_v42  ;;  %v12711_v42 = vld [vmem:[%s17068_s1 + $0x68] sm:$0xff]  }
  0x30   :  { %608 = vmatprep.subr.bf16.mxu0 %v12672_v47  ;;  %v12717_v47 = vld [vmem:[%s17068_s1 + $0xf0] sm:$0xff]  }
  0x31   :  { %574 = vmatpush1.bf16.msra.mxu1 %v12685_v57  ;;  %v12728_v57 = vld [vmem:[%s17068_s1 + $0x108] sm:$0xff]  }
  0x32   :  { %12440 = vmatmul.mubr.msk.bf16.vlgmr.msra.gmra.mrb[4].mxu0 %vm342_vm1, %v12666_v43  ;;  %11652 = vmatprep.subr.bf16.mxu1 %v12691_v60  ;;  %v12713_v43 = vld [vmem:[%s17068_s1 + $0xe8] sm:$0xff]   ;;  %v12731_v60 = vld [vmem:[%s17069_s0 + $0x24] ss:$0 sps:$4 sm:$0xff]  }
  0x33   :  { %609 = vmatpush1.bf16.msra.mxu0 %v12670_v46  ;;  %640 = vmatprep.mubr.bf16.mxu0 %v13701_v61  ;;  %v12715_v46 = vld [vmem:[%s17068_s1 + $0x70] sm:$0xff]  }
  0x34   :  { %610 = vmatprep.subr.bf16.mxu0 %v12678_v51  ;;  %v12721_v51 = vld [vmem:[%s17068_s1 + $0xf8] sm:$0xff]  }
  0x37   :  { %611 = vmatpush1.bf16.msra.mxu0 %v12676_v50  ;;  %v12719_v50 = vld [vmem:[%s17068_s1 + $0x78] sm:$0xff]  }
  0x38   :  { %612 = vmatprep.subr.bf16.mxu0 %v12684_v55  ;;  %v10614_v55 = vcombine.low %v13928_v15, %v13928_v15  ;;  %v12758_v15 = vld [vmem:[%s17068_s1 + $0xc0] sm:$0xff]  }
  0x3b   :  { %613 = vmatpush1.bf16.msra.mxu0 %v12682_v54  ;;  %v12727_v54 = vld [vmem:[%s17068_s1 + $0x100] sm:$0xff]  }
  0x3c   :  { %614 = vmatprep.subr.bf16.mxu0 %v12690_v58  ;;  %v12729_v58 = vld [vmem:[%s17068_s1 + $0x110] sm:$0xff]  }
  0x3f   :  { %615 = vmatpush1.bf16.msra.mxu0 %v12688_v59  ;;  %v12730_v59 = vld [vmem:[%s17068_s1 + $0x118] sm:$0xff]  }
  0x40   :  { %11674 = vmatprep.subr.bf16.mxu0 %v12693_v62  ;;  %v12732_v62 = vld [vmem:[%s17070_s3 + $0x80] ss:$16 sps:$4 sm:$0xff]  }
  0xf5   :  { %v11619_v0 = vpop.f32.mrb[0].mxu0 }
  0xf6   :  { %v11620_v1 = vpop.f32.mrb[1].mxu0 }
  0xf7   :  { %v11621_v2 = vadd.f32 %v11620_v1, %v11619_v0  ;;  %v11622_v3 = vpop.f32.mrb[2].mxu0  ;;  %v11641_v4 = vpop.f32.mrb[0].mxu1  ;;  %v12735_v0 = vld [vmem:[%s17070_s3 + $0x88] ss:$16 sps:$4 sm:$0xff]   ;;  %v12737_v1 = vld [vmem:[%s17070_s3 + $0x8c] ss:$16 sps:$4 sm:$0xff]  }
  0xf8   :  { %v11623_v5 = vpop.f32.mrb[3].mxu0  ;;  %v11642_v6 = vpop.f32.mrb[1].mxu1  ;;  %v12738_v3 = vld [vmem:[%s17070_s3 + $0xa0] ss:$16 sps:$4 sm:$0xff]  }
  0xf9   :  { %v381_v7 = vadd.f32 %v11621_v2, %v10549_v63  ;;  %v11643_v8 = vadd.f32 %v11642_v6, %v11641_v4  ;;  %v11644_v9 = vpop.f32.mrb[2].mxu1  ;;  %v12734_v63 = vld [vmem:[%s17070_s3 + $0x84] ss:$16 sps:$4 sm:$0xff]   ;;  %v12743_v4 = vld [vmem:[%s17070_s3 + $0xac] ss:$16 sps:$4 sm:$0xff]  }
  0xfa   :  { %v11645_v10 = vpop.f32.mrb[3].mxu1  ;;  %v12740_v2 = vld [vmem:[%s17070_s3 + $0xa4] ss:$16 sps:$4 sm:$0xff]   ;;  %v12741_v5 = vld [vmem:[%s17070_s3 + $0xa8] ss:$16 sps:$4 sm:$0xff]  }
  0xfb   :  { %v421_v11 = vadd.f32 %v11643_v8, %v381_v7  ;;  %v12746_v6 = vld [vmem:[%s17070_s3 + $0xc4] ss:$16 sps:$4 sm:$0xff]   ;;  %v12749_v7 = vld [vmem:[%s17070_s3 + $0xcc] ss:$16 sps:$4 sm:$0xff]   ;;  %v12744_v8 = vld [vmem:[%s17070_s3 + $0xc0] ss:$16 sps:$4 sm:$0xff]  }
  0xfc   :  { %v12747_v9 = vld [vmem:[%s17070_s3 + $0xc8] ss:$16 sps:$4 sm:$0xff]   ;;  %v12752_v10 = vld [vmem:[%s17070_s3 + $0xe4] ss:$16 sps:$4 sm:$0xff]  }
 0x105   :  { %v460_v12 = vpop.f32.mrb[4].mxu0 }
 0x106   :  { %v461_v13 = vadd.f32 %v460_v12, %v421_v11  ;;  %v12441_v14 = vpop.f32.mrb[5].mxu0  ;;  %v12750_v11 = vld [vmem:[%s17070_s3 + $0xe0] ss:$16 sps:$4 sm:$0xff]   ;;  %v12755_v12 = vld [vmem:[%s17070_s3 + $0xec] ss:$16 sps:$4 sm:$0xff]  }
 0x107   :  { %v463_v17 = vpop.f32.mrb[6].mxu0  ;;  %v12756_v14 = vld [vmem:[%s17068_s1 + $0x40] sm:$0xff]  }
 0x108   :  { %v466_v20 = vmax.f32 %v461_v13, 0.0  ;;  %v12442_v21 = vpop.f32.mrb[7].mxu0  ;;  %v12753_v13 = vld [vmem:[%s17070_s3 + $0xe8] ss:$16 sps:$4 sm:$0xff]  }
 0x10a   :  { %v467_v24 = vpack.c.bf16 %v466_v20, %v466_v20 }
 0x10c   :  { %10608 = vmatmul.mubr.msk.bf16.vlgmr.msra.gmra.mrb[4].mxu1 %vm342_vm1, %v467_v24  ;;  %10609 = vmatmul.mubr.msk.bf16.vlgmr.msra.gmra.mrb[8].mxu0 %vm342_vm1, %v467_v24 }
 0x10d   :  { %11653 = vmatpush3.bf16.msra.mxu1 %v12692_v18  ;;  %11675 = vmatpush3.bf16.msra.mxu0 %v12694_v19 }
 0x10e   :  { %11654 = vmatprep.subr.bf16.mxu1 %v12695_v22  ;;  %11676 = vmatprep.subr.bf16.mxu0 %v12697_v23 }
 0x10f   :  { %1004 = vmatprep.mubr.bf16.mxu1 %v10615_v27  ;;  %1044 = vmatprep.mubr.bf16.mxu0 %v10617_v28 }
 0x111   :  { %11655 = vmatpush3.bf16.msra.mxu1 %v12696_v25  ;;  %11677 = vmatpush3.bf16.msra.mxu0 %v12698_v26 }
 0x112   :  { %11656 = vmatprep.subr.bf16.mxu1 %v12699_v29  ;;  %11678 = vmatprep.subr.bf16.mxu0 %v12701_v30 }
 0x115   :  { %11657 = vmatpush3.bf16.msra.mxu1 %v12700_v31  ;;  %11679 = vmatpush3.bf16.msra.mxu0 %v12702_v32 }
 0x116   :  { %11658 = vmatprep.subr.bf16.mxu1 %v12703_v33  ;;  %11680 = vmatprep.subr.bf16.mxu0 %v12705_v34  ;;  %v14124_v34 = vld [vmem:[%s17071_s2] ss:$0 sm:$0xff] }
 0x119   :  { %11659 = vmatpush3.bf16.msra.mxu1 %v12704_v36  ;;  %11681 = vmatpush3.bf16.msra.mxu0 %v12706_v37 }
 0x11a   :  { %11660 = vmatprep.subr.bf16.mxu1 %v12707_v38  ;;  %11682 = vmatprep.subr.bf16.mxu0 %v12709_v39 }
 0x11d   :  { %11661 = vmatpush3.bf16.msra.mxu1 %v12708_v40  ;;  %11683 = vmatpush3.bf16.msra.mxu0 %v12710_v41 }
 0x11e   :  { %11662 = vmatprep.subr.bf16.mxu1 %v12711_v42  ;;  %11684 = vmatprep.subr.bf16.mxu0 %v12713_v43 }
 0x121   :  { %11663 = vmatpush3.bf16.msra.mxu1 %v12712_v44  ;;  %11685 = vmatpush3.bf16.msra.mxu0 %v12714_v45  ;;  %v14130_v44 = vld [vmem:[%s17069_s0 + $0x28] sm:$0xff]  ;;  %v14135_v45 = vld [vmem:[%s17069_s0 + $0x30] sm:$0xff] }
 0x122   :  { %11664 = vmatprep.subr.bf16.mxu1 %v12715_v46  ;;  %11686 = vmatprep.subr.bf16.mxu0 %v12717_v47  ;;  %v12757_v46 = vld [vmem:[%s17068_s1] sm:$0xff]  }
 0x123   :  { %v12759_v47 = vld [vmem:[%s17068_s1 + $0x80] sm:$0xff]  }
 0x125   :  { %11665 = vmatpush3.bf16.msra.mxu1 %v12716_v48  ;;  %11687 = vmatpush3.bf16.msra.mxu0 %v12718_v49  ;;  %v12760_v49 = vld [vmem:[%s17068_s1 + $0x48] sm:$0xff]  }
 0x126   :  { %11666 = vmatprep.subr.bf16.mxu1 %v12719_v50  ;;  %11688 = vmatprep.subr.bf16.mxu0 %v12721_v51  ;;  %v12762_v50 = vld [vmem:[%s17068_s1 + $0xc8] sm:$0xff]   ;;  %v10679_v51 = vcombine.high %v14130_v44, %v14130_v44 }
 0x129   :  { %11667 = vmatpush3.bf16.msra.mxu1 %v12720_v52  ;;  %11689 = vmatpush3.bf16.msra.mxu0 %v12724_v53  ;;  %v10681_v52 = vcombine.high %v14135_v45, %v14135_v45  ;;  %v12761_v53 = vld [vmem:[%s17068_s1 + $0x8] sm:$0xff]  }
 0x12a   :  { %12443 = vmatprep.subr.bf16.mxu1 %v13699_v35  ;;  %1193 = vmatprep.subr.bf16.mxu0 %v12734_v63  ;;  %v12771_v63 = vld [vmem:[%s17068_s1 + $0x98] sm:$0xff]  }
 0x12c   :  { %1005 = vmatmul.mubr.bf16.vlgmr.msra.gmra.mrb[8].mxu1 %v10614_v55  ;;  %1045 = vmatmul.mubr.bf16.vlgmr.msra.gmra.mrb[12].mxu0 %v10616_v56  ;;  %v12764_v55 = vld [vmem:[%s17068_s1 + $0x50] sm:$0xff]  }
 0x12d   :  { %12444 = vmatpush3.bf16.msra.mxu1 %v12727_v54  ;;  %12451 = vmatprep.mubr.msk.bf16.mxu1 %vm13700_vm0, %v13699_v35  ;;  %v12763_v54 = vld [vmem:[%s17068_s1 + $0x88] sm:$0xff]   ;;  %v12766_v56 = vld [vmem:[%s17068_s1 + $0xd0] sm:$0xff]  }
 0x12e   :  { %12445 = vmatprep.subr.bf16.mxu1 %v13699_v35  ;;  %1225 = vmatprep.mubr.bf16.mxu0 %v13701_v61 }
 0x12f   :  { %1194 = vmatpush1.bf16.msra.mxu0 %v12732_v62  ;;  %v12769_v62 = vld [vmem:[%s17068_s1 + $0x18] sm:$0xff]  }
 0x130   :  { %1195 = vmatprep.subr.bf16.mxu0 %v12740_v2  ;;  %v12773_v2 = vld [vmem:[%s17068_s1 + $0x20] sm:$0xff]  }
 0x131   :  { %12446 = vmatpush3.bf16.msra.mxu1 %v12728_v57  ;;  %v12765_v57 = vld [vmem:[%s17068_s1 + $0x10] sm:$0xff]  }
 0x132   :  { %12447 = vmatprep.subr.bf16.mxu1 %v13699_v35 }
 0x133   :  { %1196 = vmatpush1.bf16.msra.mxu0 %v12738_v3  ;;  %v12775_v3 = vld [vmem:[%s17068_s1 + $0xa0] sm:$0xff]  }
 0x134   :  { %1197 = vmatprep.subr.bf16.mxu0 %v12746_v6  ;;  %v12777_v6 = vld [vmem:[%s17068_s1 + $0x28] sm:$0xff]  }
 0x135   :  { %12448 = vmatpush3.bf16.msra.mxu1 %v12729_v58  ;;  %v12767_v58 = vld [vmem:[%s17068_s1 + $0x90] sm:$0xff]  }
 0x136   :  { %12449 = vmatprep.subr.bf16.mxu1 %v13699_v35 }
 0x137   :  { %1198 = vmatpush1.bf16.msra.mxu0 %v12744_v8  ;;  %v12780_v8 = vld [vmem:[%s17068_s1 + $0x70] sm:$0xff]  }
 0x138   :  { %1199 = vmatprep.subr.bf16.mxu0 %v12752_v10  ;;  %v12781_v10 = vld [vmem:[%s17068_s1 + $0x30] sm:$0xff]  }
 0x139   :  { %12450 = vmatpush3.bf16.msra.mxu1 %v12730_v59  ;;  %v12768_v59 = vld [vmem:[%s17068_s1 + $0x58] sm:$0xff]  }
 0x13a   :  { %1234 = vmatprep.subr.bf16.mxu1 %v12737_v1  ;;  %v12774_v1 = vld [vmem:[%s17068_s1 + $0xe0] sm:$0xff]  }
 0x13b   :  { %1200 = vmatpush1.bf16.msra.mxu0 %v12750_v11  ;;  %v12783_v11 = vld [vmem:[%s17068_s1 + $0xb0] sm:$0xff]  }
 0x13c   :  { %12452 = vmatmul.mubr.msk.bf16.vlgmr.msra.gmra.mrb[12].mxu1 %vm342_vm1, %v12731_v60  ;;  %11701 = vmatprep.subr.bf16.mxu0 %v12756_v14  ;;  %v12770_v60 = vld [vmem:[%s17068_s1 + $0xd8] sm:$0xff]  }
 0x13d   :  { %1266 = vmatprep.mubr.bf16.mxu1 %v13701_v61  ;;  %1235 = vmatpush1.bf16.msra.mxu1 %v12735_v0  ;;  %v12772_v0 = vld [vmem:[%s17068_s1 + $0x60] sm:$0xff]   ;;  %v12785_v14 = vld [vmem:[%s17068_s1 + $0x38] sm:$0xff]  }
 0x13e   :  { %1236 = vmatprep.subr.bf16.mxu1 %v12743_v4  ;;  %v12776_v4 = vld [vmem:[%s17068_s1 + $0x68] sm:$0xff]  }
 0x141   :  { %1237 = vmatpush1.bf16.msra.mxu1 %v12741_v5  ;;  %v12778_v5 = vld [vmem:[%s17068_s1 + $0xe8] sm:$0xff]  }
 0x142   :  { %1238 = vmatprep.subr.bf16.mxu1 %v12749_v7  ;;  %v12779_v7 = vld [vmem:[%s17068_s1 + $0xa8] sm:$0xff]  }
 0x145   :  { %1239 = vmatpush1.bf16.msra.mxu1 %v12747_v9  ;;  %v12782_v9 = vld [vmem:[%s17068_s1 + $0xf0] sm:$0xff]  }
 0x146   :  { %1240 = vmatprep.subr.bf16.mxu1 %v12755_v12  ;;  %v12784_v12 = vld [vmem:[%s17068_s1 + $0x78] sm:$0xff]  }
 0x149   :  { %1241 = vmatpush1.bf16.msra.mxu1 %v12753_v13  ;;  %v12786_v13 = vld [vmem:[%s17068_s1 + $0xf8] sm:$0xff]  }
 0x14a   :  { %11723 = vmatprep.subr.bf16.mxu1 %v12758_v15  ;;  %v12789_v15 = vld [vmem:[%s17068_s1 + $0xb8] sm:$0xff]  }
 0x1df   :  { %v14113_v16 = vpop.f32.mrb[4].mxu1  ;;  %v14115_v17 = vpop.f32.mrb[8].mxu0 }
 0x1e0   :  { %v14117_v18 = vpop.f32.mrb[5].mxu1  ;;  %v14119_v19 = vpop.f32.mrb[9].mxu0 }
 0x1e1   :  { %v605_v20 = vpop.f32.mrb[6].mxu1  ;;  %v646_v21 = vpop.f32.mrb[10].mxu0 }
 0x1e2   :  { %v606_v22 = vpop.f32.mrb[7].mxu1  ;;  %v647_v23 = vpop.f32.mrb[11].mxu0  ;;  %v10678_v20 = vcombine.low %v14130_v44, %v14130_v44  ;;  %v10680_v21 = vcombine.low %v14135_v45, %v14135_v45  ;;  %v12818_v44 = vld [vmem:[%s17070_s3 + $0x168] ss:$16 sps:$4 sm:$0xff]   ;;  %v12821_v45 = vld [vmem:[%s17068_s1 + $0x40] sm:$0xff]  }
 0x1e3   :  { %v12792_v22 = vld [vmem:[%s17068_s1 + $0x100] sm:$0xff]   ;;  %v12793_v23 = vld [vmem:[%s17068_s1 + $0x108] sm:$0xff]  }
 0x1ff   :  { %v11668_v24 = vpop.f32.mrb[8].mxu1  ;;  %v11690_v25 = vpop.f32.mrb[12].mxu0 }
 0x200   :  { %v11669_v26 = vpop.f32.mrb[9].mxu1  ;;  %v11691_v27 = vpop.f32.mrb[13].mxu0 }
 0x201   :  { %v11670_v28 = vadd.f32 %v11669_v26, %v11668_v24  ;;  %v11671_v29 = vpop.f32.mrb[10].mxu1  ;;  %v11692_v30 = vadd.f32 %v11691_v27, %v11690_v25  ;;  %v11693_v31 = vpop.f32.mrb[14].mxu0  ;;  %v12794_v24 = vld [vmem:[%s17068_s1 + $0x110] sm:$0xff]   ;;  %v12795_v25 = vld [vmem:[%s17068_s1 + $0x118] sm:$0xff]  }
 0x202   :  { %v11672_v32 = vpop.f32.mrb[11].mxu1  ;;  %v11694_v33 = vpop.f32.mrb[15].mxu0  ;;  %v12796_v26 = vld [vmem:[%s17069_s0 + $0x38] ss:$0 sps:$4 sm:$0xff]   ;;  %v12797_v27 = vld [vmem:[%s17070_s3 + $0x100] ss:$16 sps:$4 sm:$0xff]  }
 0x203   :  { %v1007_v36 = vadd.f32 %v14124_v34, %v11670_v28  ;;  %v12799_v28 = vld [vmem:[%s17070_s3 + $0x104] ss:$16 sps:$4 sm:$0xff]   ;;  %v12800_v29 = vld [vmem:[%s17070_s3 + $0x108] ss:$16 sps:$4 sm:$0xff]   ;;  %v12808_v32 = vld [vmem:[%s17070_s3 + $0x12c] ss:$16 sps:$4 sm:$0xff]  }
 0x204   :  { %v12805_v31 = vld [vmem:[%s17070_s3 + $0x124] ss:$16 sps:$4 sm:$0xff]   ;;  %v12803_v33 = vld [vmem:[%s17070_s3 + $0x120] ss:$16 sps:$4 sm:$0xff]  }
 0x205   :  { %v1047_v37 = vadd.f32 %v11692_v30, %v1007_v36  ;;  %v12802_v30 = vld [vmem:[%s17070_s3 + $0x10c] ss:$16 sps:$4 sm:$0xff]   ;;  %v12806_v36 = vld [vmem:[%s17070_s3 + $0x128] ss:$16 sps:$4 sm:$0xff]  }
 0x20f   :  { %v1086_v38 = vpop.f32.mrb[12].mxu1 }
 0x210   :  { %v1087_v39 = vadd.f32 %v1086_v38, %v1047_v37  ;;  %v12453_v40 = vpop.f32.mrb[13].mxu1  ;;  %v12811_v37 = vld [vmem:[%s17070_s3 + $0x144] ss:$16 sps:$4 sm:$0xff]   ;;  %v12814_v38 = vld [vmem:[%s17070_s3 + $0x14c] ss:$16 sps:$4 sm:$0xff]  }
 0x211   :  { %v1089_v41 = vpop.f32.mrb[14].mxu1  ;;  %v12812_v40 = vld [vmem:[%s17070_s3 + $0x148] ss:$16 sps:$4 sm:$0xff]  }
 0x212   :  { %v1092_v42 = vmax.f32 %v1087_v39, 0.0  ;;  %v12454_v43 = vpop.f32.mrb[15].mxu1  ;;  %v12809_v39 = vld [vmem:[%s17070_s3 + $0x140] ss:$16 sps:$4 sm:$0xff]   ;;  %v12817_v41 = vld [vmem:[%s17070_s3 + $0x164] ss:$16 sps:$4 sm:$0xff]  }
 0x213   :  { %v12820_v43 = vld [vmem:[%s17070_s3 + $0x16c] ss:$16 sps:$4 sm:$0xff]  }
 0x214   :  { %v1093_v48 = vpack.c.bf16 %v1092_v42, %v1092_v42  ;;  %v12815_v42 = vld [vmem:[%s17070_s3 + $0x160] ss:$16 sps:$4 sm:$0xff]  }
 0x216   :  { %10672 = vmatmul.mubr.msk.bf16.vlgmr.msra.gmra.mrb[16].mxu0 %vm342_vm1, %v1093_v48  ;;  %10673 = vmatmul.mubr.msk.bf16.vlgmr.msra.gmra.mrb[16].mxu1 %vm342_vm1, %v1093_v48 }
 0x217   :  { %11702 = vmatpush3.bf16.msra.mxu0 %v12757_v46  ;;  %11724 = vmatpush3.bf16.msra.mxu1 %v12759_v47  ;;  %v12823_v46 = vld [vmem:[%s17068_s1 + $0xc0] sm:$0xff]  }
 0x218   :  { %11703 = vmatprep.subr.bf16.mxu0 %v12760_v49  ;;  %11725 = vmatprep.subr.bf16.mxu1 %v12762_v50 }
 0x219   :  { %1638 = vmatprep.mubr.bf16.mxu0 %v10679_v51  ;;  %1678 = vmatprep.mubr.bf16.mxu1 %v10681_v52 }
 0x21b   :  { %11704 = vmatpush3.bf16.msra.mxu0 %v12761_v53  ;;  %11726 = vmatpush3.bf16.msra.mxu1 %v12763_v54 }
 0x21c   :  { %11705 = vmatprep.subr.bf16.mxu0 %v12764_v55  ;;  %11727 = vmatprep.subr.bf16.mxu1 %v12766_v56 }
 0x21f   :  { %11706 = vmatpush3.bf16.msra.mxu0 %v12765_v57  ;;  %11728 = vmatpush3.bf16.msra.mxu1 %v12767_v58 }
 0x220   :  { %11707 = vmatprep.subr.bf16.mxu0 %v12768_v59  ;;  %11729 = vmatprep.subr.bf16.mxu1 %v12770_v60 }
 0x223   :  { %11708 = vmatpush3.bf16.msra.mxu0 %v12769_v62  ;;  %11730 = vmatpush3.bf16.msra.mxu1 %v12771_v63 }
 0x224   :  { %11709 = vmatprep.subr.bf16.mxu0 %v12772_v0  ;;  %11731 = vmatprep.subr.bf16.mxu1 %v12774_v1 }
 0x227   :  { %11710 = vmatpush3.bf16.msra.mxu0 %v12773_v2  ;;  %11732 = vmatpush3.bf16.msra.mxu1 %v12775_v3 }
 0x228   :  { %11711 = vmatprep.subr.bf16.mxu0 %v12776_v4  ;;  %11733 = vmatprep.subr.bf16.mxu1 %v12778_v5 }
 0x22b   :  { %11712 = vmatpush3.bf16.msra.mxu0 %v12777_v6  ;;  %11734 = vmatpush3.bf16.msra.mxu1 %v12779_v7 }
 0x22c   :  { %11713 = vmatprep.subr.bf16.mxu0 %v12780_v8  ;;  %11735 = vmatprep.subr.bf16.mxu1 %v12782_v9 }
 0x22f   :  { %11714 = vmatpush3.bf16.msra.mxu0 %v12781_v10  ;;  %11736 = vmatpush3.bf16.msra.mxu1 %v12783_v11  ;;  %v14331_v10 = vld [vmem:[%s17069_s0 + $0x3c] sm:$0xff]  ;;  %v14336_v11 = vld [vmem:[%s17069_s0 + $0x44] sm:$0xff] }
 0x230   :  { %11715 = vmatprep.subr.bf16.mxu0 %v12784_v12  ;;  %11737 = vmatprep.subr.bf16.mxu1 %v12786_v13  ;;  %v12824_v12 = vld [vmem:[%s17068_s1 + $0x80] sm:$0xff]  }
 0x233   :  { %11716 = vmatpush3.bf16.msra.mxu0 %v12785_v14  ;;  %11738 = vmatpush3.bf16.msra.mxu1 %v12789_v15  ;;  %v12825_v14 = vld [vmem:[%s17068_s1 + $0x48] sm:$0xff]  }
 0x234   :  { %12455 = vmatprep.subr.bf16.mxu0 %v13699_v35  ;;  %1827 = vmatprep.subr.bf16.mxu1 %v12799_v28  ;;  %v12827_v15 = vld [vmem:[%s17068_s1 + $0xc8] sm:$0xff]   ;;  %v12833_v28 = vld [vmem:[%s17068_s1 + $0x58] sm:$0xff]  }
 0x236   :  { %1639 = vmatmul.mubr.bf16.vlgmr.msra.gmra.mrb[20].mxu0 %v10678_v20  ;;  %1679 = vmatmul.mubr.bf16.vlgmr.msra.gmra.mrb[20].mxu1 %v10680_v21  ;;  %v10743_v20 = vcombine.high %v14331_v10, %v14331_v10  ;;  %v10745_v21 = vcombine.high %v14336_v11, %v14336_v11 }
 0x237   :  { %12456 = vmatpush3.bf16.msra.mxu0 %v12792_v22  ;;  %12463 = vmatprep.mubr.msk.bf16.mxu0 %vm13700_vm0, %v13699_v35  ;;  %v12826_v22 = vld [vmem:[%s17068_s1 + $0x8] sm:$0xff]  }
 0x238   :  { %12457 = vmatprep.subr.bf16.mxu0 %v13699_v35  ;;  %1859 = vmatprep.mubr.bf16.mxu1 %v13701_v61 }
 0x239   :  { %1828 = vmatpush1.bf16.msra.mxu1 %v12797_v27  ;;  %v12832_v27 = vld [vmem:[%s17068_s1 + $0x90] sm:$0xff]  }
 0x23a   :  { %1829 = vmatprep.subr.bf16.mxu1 %v12805_v31  ;;  %v12836_v31 = vld [vmem:[%s17068_s1 + $0x98] sm:$0xff]  }
 0x23b   :  { %12458 = vmatpush3.bf16.msra.mxu0 %v12793_v23  ;;  %v12828_v23 = vld [vmem:[%s17068_s1 + $0x88] sm:$0xff]  }
 0x23c   :  { %12459 = vmatprep.subr.bf16.mxu0 %v13699_v35 }
 0x23d   :  { %1830 = vmatpush1.bf16.msra.mxu1 %v12803_v33  ;;  %v12839_v33 = vld [vmem:[%s17068_s1 + $0xe0] sm:$0xff]  }
 0x23e   :  { %1831 = vmatprep.subr.bf16.mxu1 %v12811_v37  ;;  %v12840_v37 = vld [vmem:[%s17068_s1 + $0xa0] sm:$0xff]  }
 0x23f   :  { %12460 = vmatpush3.bf16.msra.mxu0 %v12794_v24  ;;  %v12829_v24 = vld [vmem:[%s17068_s1 + $0x50] sm:$0xff]  }
 0x240   :  { %12461 = vmatprep.subr.bf16.mxu0 %v13699_v35 }
 0x241   :  { %1832 = vmatpush1.bf16.msra.mxu1 %v12809_v39  ;;  %v12843_v39 = vld [vmem:[%s17068_s1 + $0xe8] sm:$0xff]  }
 0x242   :  { %1833 = vmatprep.subr.bf16.mxu1 %v12817_v41  ;;  %v12844_v41 = vld [vmem:[%s17068_s1 + $0xa8] sm:$0xff]  }
 0x243   :  { %12462 = vmatpush3.bf16.msra.mxu0 %v12795_v25  ;;  %v12831_v25 = vld [vmem:[%s17068_s1 + $0xd0] sm:$0xff]  }
 0x244   :  { %1868 = vmatprep.subr.bf16.mxu0 %v12802_v30  ;;  %v12834_v30 = vld [vmem:[%s17068_s1 + $0x18] sm:$0xff]  }
 0x245   :  { %1834 = vmatpush1.bf16.msra.mxu1 %v12815_v42  ;;  %v12845_v42 = vld [vmem:[%s17068_s1 + $0x70] sm:$0xff]  }
 0x246   :  { %12464 = vmatmul.mubr.msk.bf16.vlgmr.msra.gmra.mrb[24].mxu0 %vm342_vm1, %v12796_v26  ;;  %11750 = vmatprep.subr.bf16.mxu1 %v12821_v45  ;;  %v12830_v26 = vld [vmem:[%s17068_s1 + $0x10] sm:$0xff]  }
 0x247   :  { %1900 = vmatprep.mubr.bf16.mxu0 %v13701_v61  ;;  %1869 = vmatpush1.bf16.msra.mxu0 %v12800_v29  ;;  %v12835_v29 = vld [vmem:[%s17068_s1 + $0xd8] sm:$0xff]   ;;  %v12848_v45 = vld [vmem:[%s17068_s1 + $0xb0] sm:$0xff]  }
 0x248   :  { %1870 = vmatprep.subr.bf16.mxu0 %v12808_v32  ;;  %v12837_v32 = vld [vmem:[%s17068_s1 + $0x60] sm:$0xff]  }
 0x24b   :  { %1871 = vmatpush1.bf16.msra.mxu0 %v12806_v36  ;;  %v12838_v36 = vld [vmem:[%s17068_s1 + $0x20] sm:$0xff]  }
 0x24c   :  { %1872 = vmatprep.subr.bf16.mxu0 %v12814_v38  ;;  %v12841_v38 = vld [vmem:[%s17068_s1 + $0x68] sm:$0xff]  }
 0x24f   :  { %1873 = vmatpush1.bf16.msra.mxu0 %v12812_v40  ;;  %v12842_v40 = vld [vmem:[%s17068_s1 + $0x28] sm:$0xff]  }
 0x250   :  { %1874 = vmatprep.subr.bf16.mxu0 %v12820_v43  ;;  %v12847_v43 = vld [vmem:[%s17068_s1 + $0xf0] sm:$0xff]  }
 0x253   :  { %1875 = vmatpush1.bf16.msra.mxu0 %v12818_v44  ;;  %v12846_v44 = vld [vmem:[%s17068_s1 + $0x30] sm:$0xff]  }
 0x254   :  { %11772 = vmatprep.subr.bf16.mxu0 %v12823_v46  ;;  %v12849_v46 = vld [vmem:[%s17068_s1 + $0x78] sm:$0xff]  }
 0x2e9   :  { %v1227_v47 = vpop.f32.mrb[16].mxu0  ;;  %v1268_v48 = vpop.f32.mrb[16].mxu1 }
 0x2ea   :  { %v14316_v49 = vadd.f32 %v1227_v47, %v14113_v16  ;;  %v14319_v50 = vadd.f32 %v1268_v48, %v14115_v17  ;;  %v1229_v51 = vpop.f32.mrb[17].mxu0  ;;  %v1270_v52 = vpop.f32.mrb[17].mxu1  ;;  %v12851_v47 = vld [vmem:[%s17068_s1 + $0xf8] sm:$0xff]  }
 0x2eb   :  { %v14322_v53 = vadd.f32 %v1229_v51, %v14117_v18  ;;  %v14325_v54 = vadd.f32 %v1270_v52, %v14119_v19  ;;  %v1231_v55 = vpop.f32.mrb[18].mxu0  ;;  %v1272_v56 = vpop.f32.mrb[18].mxu1  ;;  %v12850_v48 = vld [vmem:[%s17068_s1 + $0x38] sm:$0xff]   ;;  %v10742_v52 = vcombine.low %v14331_v10, %v14331_v10  ;;  %v12886_v10 = vld [vmem:[%s17068_s1 + $0x40] sm:$0xff]  }
 0x2ec   :  { %v1232_v57 = vpop.f32.mrb[19].mxu0  ;;  %v1273_v58 = vpop.f32.mrb[19].mxu1  ;;  %v12854_v51 = vld [vmem:[%s17068_s1 + $0xb8] sm:$0xff]   ;;  %v10744_v55 = vcombine.low %v14336_v11, %v14336_v11  ;;  %v12857_v56 = vld [vmem:[%s17068_s1 + $0x100] sm:$0xff]  }
 0x2ed   :  { %v12858_v57 = vld [vmem:[%s17068_s1 + $0x108] sm:$0xff]   ;;  %v12859_v58 = vld [vmem:[%s17068_s1 + $0x110] sm:$0xff]   ;;  %v12888_v11 = vld [vmem:[%s17068_s1 + $0xc0] sm:$0xff]  }
 0x309   :  { %v11717_v59 = vpop.f32.mrb[20].mxu0  ;;  %v11739_v60 = vpop.f32.mrb[20].mxu1 }
 0x30a   :  { %v11718_v62 = vpop.f32.mrb[21].mxu0  ;;  %v11740_v16 = vpop.f32.mrb[21].mxu1 }
 0x30b   :  { %v11719_v63 = vadd.f32 %v11718_v62, %v11717_v59  ;;  %v11720_v0 = vpop.f32.mrb[22].mxu0  ;;  %v11741_v17 = vadd.f32 %v11740_v16, %v11739_v60  ;;  %v11742_v1 = vpop.f32.mrb[22].mxu1  ;;  %v12860_v59 = vld [vmem:[%s17068_s1 + $0x118] sm:$0xff]   ;;  %v12861_v60 = vld [vmem:[%s17069_s0 + $0x4c] ss:$0 sps:$4 sm:$0xff]  }
 0x30c   :  { %v11721_v2 = vpop.f32.mrb[23].mxu0  ;;  %v11743_v3 = vpop.f32.mrb[23].mxu1  ;;  %v12862_v62 = vld [vmem:[%s17070_s3 + $0x180] ss:$16 sps:$4 sm:$0xff]   ;;  %v12864_v16 = vld [vmem:[%s17070_s3 + $0x184] ss:$16 sps:$4 sm:$0xff]  }
 0x30d   :  { %v1641_v18 = vadd.f32 %v14124_v34, %v11719_v63  ;;  %v12822_v34 = vld [vmem:[%s17068_s1] sm:$0xff]   ;;  %v12865_v63 = vld [vmem:[%s17070_s3 + $0x188] ss:$16 sps:$4 sm:$0xff]   ;;  %v12867_v0 = vld [vmem:[%s17070_s3 + $0x18c] ss:$16 sps:$4 sm:$0xff]  }
 0x30e   :  { %v12873_v1 = vld [vmem:[%s17070_s3 + $0x1ac] ss:$16 sps:$4 sm:$0xff]   ;;  %v12868_v2 = vld [vmem:[%s17070_s3 + $0x1a0] ss:$16 sps:$4 sm:$0xff]   ;;  %v12871_v3 = vld [vmem:[%s17070_s3 + $0x1a8] ss:$16 sps:$4 sm:$0xff]  }
 0x30f   :  { %v1681_v4 = vadd.f32 %v11741_v17, %v1641_v18  ;;  %v12870_v17 = vld [vmem:[%s17070_s3 + $0x1a4] ss:$16 sps:$4 sm:$0xff]  }
 0x310   :  { %v12876_v18 = vld [vmem:[%s17070_s3 + $0x1c4] ss:$16 sps:$4 sm:$0xff]  }
 0x319   :  { %v1720_v5 = vpop.f32.mrb[24].mxu0 }
 0x31a   :  { %v1721_v19 = vadd.f32 %v1720_v5, %v1681_v4  ;;  %v12465_v6 = vpop.f32.mrb[25].mxu0  ;;  %v12879_v4 = vld [vmem:[%s17070_s3 + $0x1cc] ss:$16 sps:$4 sm:$0xff]   ;;  %v12874_v5 = vld [vmem:[%s17070_s3 + $0x1c0] ss:$16 sps:$4 sm:$0xff]  }
 0x31b   :  { %v1723_v7 = vpop.f32.mrb[26].mxu0  ;;  %v12882_v6 = vld [vmem:[%s17070_s3 + $0x1e4] ss:$16 sps:$4 sm:$0xff]  }
 0x31c   :  { %v1726_v8 = vmax.f32 %v1721_v19, 0.0  ;;  %v12466_v9 = vpop.f32.mrb[27].mxu0  ;;  %v12877_v19 = vld [vmem:[%s17070_s3 + $0x1c8] ss:$16 sps:$4 sm:$0xff]   ;;  %v12880_v7 = vld [vmem:[%s17070_s3 + $0x1e0] ss:$16 sps:$4 sm:$0xff]  }
 0x31d   :  { %v12883_v9 = vld [vmem:[%s17070_s3 + $0x1e8] ss:$16 sps:$4 sm:$0xff]  }
 0x31e   :  { %v1727_v13 = vpack.c.bf16 %v1726_v8, %v1726_v8  ;;  %v12885_v8 = vld [vmem:[%s17070_s3 + $0x1ec] ss:$16 sps:$4 sm:$0xff]  }
 0x320   :  { %10736 = vmatmul.mubr.msk.bf16.vlgmr.msra.gmra.mrb[24].mxu1 %vm342_vm1, %v1727_v13  ;;  %10737 = vmatmul.mubr.msk.bf16.vlgmr.msra.gmra.mrb[28].mxu0 %vm342_vm1, %v1727_v13 }
 0x321   :  { %11751 = vmatpush3.bf16.msra.mxu1 %v12822_v34  ;;  %11773 = vmatpush3.bf16.msra.mxu0 %v12824_v12 }
 0x322   :  { %11752 = vmatprep.subr.bf16.mxu1 %v12825_v14  ;;  %11774 = vmatprep.subr.bf16.mxu0 %v12827_v15 }
 0x323   :  { %2272 = vmatprep.mubr.bf16.mxu1 %v10743_v20  ;;  %2312 = vmatprep.mubr.bf16.mxu0 %v10745_v21 }
 0x325   :  { %11753 = vmatpush3.bf16.msra.mxu1 %v12826_v22  ;;  %11775 = vmatpush3.bf16.msra.mxu0 %v12828_v23 }
 0x326   :  { %11754 = vmatprep.subr.bf16.mxu1 %v12829_v24  ;;  %11776 = vmatprep.subr.bf16.mxu0 %v12831_v25 }
 0x329   :  { %11755 = vmatpush3.bf16.msra.mxu1 %v12830_v26  ;;  %11777 = vmatpush3.bf16.msra.mxu0 %v12832_v27 }
 0x32a   :  { %11756 = vmatprep.subr.bf16.mxu1 %v12833_v28  ;;  %11778 = vmatprep.subr.bf16.mxu0 %v12835_v29 }
 0x32d   :  { %11757 = vmatpush3.bf16.msra.mxu1 %v12834_v30  ;;  %11779 = vmatpush3.bf16.msra.mxu0 %v12836_v31 }
 0x32e   :  { %11758 = vmatprep.subr.bf16.mxu1 %v12837_v32  ;;  %11780 = vmatprep.subr.bf16.mxu0 %v12839_v33 }
 0x331   :  { %11759 = vmatpush3.bf16.msra.mxu1 %v12838_v36  ;;  %11781 = vmatpush3.bf16.msra.mxu0 %v12840_v37 }
 0x332   :  { %11760 = vmatprep.subr.bf16.mxu1 %v12841_v38  ;;  %11782 = vmatprep.subr.bf16.mxu0 %v12843_v39 }
 0x335   :  { %11761 = vmatpush3.bf16.msra.mxu1 %v12842_v40  ;;  %11783 = vmatpush3.bf16.msra.mxu0 %v12844_v41 }
 0x336   :  { %11762 = vmatprep.subr.bf16.mxu1 %v12845_v42  ;;  %11784 = vmatprep.subr.bf16.mxu0 %v12847_v43 }
 0x339   :  { %11763 = vmatpush3.bf16.msra.mxu1 %v12846_v44  ;;  %11785 = vmatpush3.bf16.msra.mxu0 %v12848_v45  ;;  %v14537_v44 = vld [vmem:[%s17069_s0 + $0x50] sm:$0xff]  ;;  %v14542_v45 = vld [vmem:[%s17069_s0 + $0x58] sm:$0xff] }
 0x33a   :  { %11764 = vmatprep.subr.bf16.mxu1 %v12849_v46  ;;  %11786 = vmatprep.subr.bf16.mxu0 %v12851_v47  ;;  %v12887_v46 = vld [vmem:[%s17068_s1] sm:$0xff]  }
 0x33b   :  { %v12889_v47 = vld [vmem:[%s17068_s1 + $0x80] sm:$0xff]  }
 0x33d   :  { %11765 = vmatpush3.bf16.msra.mxu1 %v12850_v48  ;;  %11787 = vmatpush3.bf16.msra.mxu0 %v12854_v51  ;;  %v12890_v51 = vld [vmem:[%s17068_s1 + $0x48] sm:$0xff]  }
 0x33e   :  { %12467 = vmatprep.subr.bf16.mxu1 %v13699_v35  ;;  %2461 = vmatprep.subr.bf16.mxu0 %v12864_v16  ;;  %v12897_v16 = vld [vmem:[%s17068_s1 + $0x90] sm:$0xff]  }
 0x340   :  { %2273 = vmatmul.mubr.bf16.vlgmr.msra.gmra.mrb[28].mxu1 %v10742_v52  ;;  %2313 = vmatmul.mubr.bf16.vlgmr.msra.gmra.mrb[32].mxu0 %v10744_v55  ;;  %v12892_v52 = vld [vmem:[%s17068_s1 + $0xc8] sm:$0xff]   ;;  %v10807_v55 = vcombine.high %v14537_v44, %v14537_v44 }
 0x341   :  { %12468 = vmatpush3.bf16.msra.mxu1 %v12857_v56  ;;  %12475 = vmatprep.mubr.msk.bf16.mxu1 %vm13700_vm0, %v13699_v35  ;;  %v10809_v56 = vcombine.high %v14542_v45, %v14542_v45 }
 0x342   :  { %12469 = vmatprep.subr.bf16.mxu1 %v13699_v35  ;;  %2493 = vmatprep.mubr.bf16.mxu0 %v13701_v61 }
 0x343   :  { %2462 = vmatpush1.bf16.msra.mxu0 %v12862_v62  ;;  %v12895_v62 = vld [vmem:[%s17068_s1 + $0x10] sm:$0xff]  }
 0x344   :  { %2463 = vmatprep.subr.bf16.mxu0 %v12870_v17  ;;  %v12899_v17 = vld [vmem:[%s17068_s1 + $0x18] sm:$0xff]  }
 0x345   :  { %12470 = vmatpush3.bf16.msra.mxu1 %v12858_v57  ;;  %v12891_v57 = vld [vmem:[%s17068_s1 + $0x8] sm:$0xff]  }
 0x346   :  { %12471 = vmatprep.subr.bf16.mxu1 %v13699_v35 }
 0x347   :  { %2464 = vmatpush1.bf16.msra.mxu0 %v12868_v2  ;;  %v12902_v2 = vld [vmem:[%s17068_s1 + $0x60] sm:$0xff]  }
 0x348   :  { %2465 = vmatprep.subr.bf16.mxu0 %v12876_v18  ;;  %v12903_v18 = vld [vmem:[%s17068_s1 + $0x20] sm:$0xff]  }
 0x349   :  { %12472 = vmatpush3.bf16.msra.mxu1 %v12859_v58  ;;  %v12893_v58 = vld [vmem:[%s17068_s1 + $0x88] sm:$0xff]  }
 0x34a   :  { %12473 = vmatprep.subr.bf16.mxu1 %v13699_v35 }
 0x34b   :  { %2466 = vmatpush1.bf16.msra.mxu0 %v12874_v5  ;;  %v12906_v5 = vld [vmem:[%s17068_s1 + $0x68] sm:$0xff]  }
 0x34c   :  { %2467 = vmatprep.subr.bf16.mxu0 %v12882_v6  ;;  %v12907_v6 = vld [vmem:[%s17068_s1 + $0x28] sm:$0xff]  }
 0x34d   :  { %12474 = vmatpush3.bf16.msra.mxu1 %v12860_v59  ;;  %v12894_v59 = vld [vmem:[%s17068_s1 + $0x50] sm:$0xff]  }
 0x34e   :  { %2502 = vmatprep.subr.bf16.mxu1 %v12867_v0  ;;  %v12900_v0 = vld [vmem:[%s17068_s1 + $0xd8] sm:$0xff]  }
 0x34f   :  { %2468 = vmatpush1.bf16.msra.mxu0 %v12880_v7  ;;  %v12909_v7 = vld [vmem:[%s17068_s1 + $0xa8] sm:$0xff]  }
 0x350   :  { %12476 = vmatmul.mubr.msk.bf16.vlgmr.msra.gmra.mrb[32].mxu1 %vm342_vm1, %v12861_v60  ;;  %11799 = vmatprep.subr.bf16.mxu0 %v12886_v10  ;;  %v12896_v60 = vld [vmem:[%s17068_s1 + $0xd0] sm:$0xff]  }
 0x351   :  { %2534 = vmatprep.mubr.bf16.mxu1 %v13701_v61  ;;  %2503 = vmatpush1.bf16.msra.mxu1 %v12865_v63  ;;  %v12898_v63 = vld [vmem:[%s17068_s1 + $0x58] sm:$0xff]   ;;  %v12911_v10 = vld [vmem:[%s17068_s1 + $0x30] sm:$0xff]  }
 0x352   :  { %2504 = vmatprep.subr.bf16.mxu1 %v12873_v1  ;;  %v12901_v1 = vld [vmem:[%s17068_s1 + $0x98] sm:$0xff]  }
 0x355   :  { %2505 = vmatpush1.bf16.msra.mxu1 %v12871_v3  ;;  %v12904_v3 = vld [vmem:[%s17068_s1 + $0xe0] sm:$0xff]  }
 0x356   :  { %2506 = vmatprep.subr.bf16.mxu1 %v12879_v4  ;;  %v12905_v4 = vld [vmem:[%s17068_s1 + $0xa0] sm:$0xff]  }
 0x359   :  { %2507 = vmatpush1.bf16.msra.mxu1 %v12877_v19  ;;  %v12908_v19 = vld [vmem:[%s17068_s1 + $0xe8] sm:$0xff]  }
 0x35a   :  { %2508 = vmatprep.subr.bf16.mxu1 %v12885_v8  ;;  %v12910_v8 = vld [vmem:[%s17068_s1 + $0x70] sm:$0xff]  }
 0x35d   :  { %2509 = vmatpush1.bf16.msra.mxu1 %v12883_v9  ;;  %v12912_v9 = vld [vmem:[%s17068_s1 + $0xf0] sm:$0xff]  }
 0x35e   :  { %11821 = vmatprep.subr.bf16.mxu1 %v12888_v11  ;;  %v12913_v11 = vld [vmem:[%s17068_s1 + $0xb0] sm:$0xff]  }
 0x3f3   :  { %v1861_v34 = vpop.f32.mrb[24].mxu1  ;;  %v1902_v12 = vpop.f32.mrb[28].mxu0 }
 0x3f4   :  { %v14517_v13 = vadd.f32 %v1861_v34, %v14316_v49  ;;  %v14520_v14 = vadd.f32 %v1902_v12, %v14319_v50  ;;  %v1863_v15 = vpop.f32.mrb[25].mxu1  ;;  %v1904_v20 = vpop.f32.mrb[29].mxu0  ;;  %v14531_v49 = vld [vmem:[%s17071_s2] ss:$0 sm:$0xff]  ;;  %v12914_v34 = vld [vmem:[%s17068_s1 + $0x78] sm:$0xff]  }
 0x3f5   :  { %v14523_v21 = vadd.f32 %v1863_v15, %v14322_v53  ;;  %v14526_v22 = vadd.f32 %v1904_v20, %v14325_v54  ;;  %v1865_v23 = vpop.f32.mrb[26].mxu1  ;;  %v1906_v24 = vpop.f32.mrb[30].mxu0  ;;  %v12916_v12 = vld [vmem:[%s17068_s1 + $0xf8] sm:$0xff]  }
 0x3f6   :  { %v1866_v25 = vpop.f32.mrb[27].mxu1  ;;  %v1907_v26 = vpop.f32.mrb[31].mxu0  ;;  %v12915_v15 = vld [vmem:[%s17068_s1 + $0x38] sm:$0xff]   ;;  %v10806_v23 = vcombine.low %v14537_v44, %v14537_v44  ;;  %v10808_v24 = vcombine.low %v14542_v45, %v14542_v45  ;;  %v12951_v45 = vld [vmem:[%s17068_s1 + $0x40] sm:$0xff]  }
 0x3f7   :  { %v12919_v20 = vld [vmem:[%s17068_s1 + $0xb8] sm:$0xff]   ;;  %v12922_v25 = vld [vmem:[%s17068_s1 + $0x100] sm:$0xff]   ;;  %v12923_v26 = vld [vmem:[%s17068_s1 + $0x108] sm:$0xff]  }
 0x3f8   :  { %v12948_v44 = vld [vmem:[%s17070_s3 + $0x268] ss:$16 sps:$4 sm:$0xff]  }
 0x413   :  { %v11766_v27 = vpop.f32.mrb[28].mxu1  ;;  %v11788_v28 = vpop.f32.mrb[32].mxu0 }
 0x414   :  { %v11767_v50 = vpop.f32.mrb[29].mxu1  ;;  %v11789_v29 = vpop.f32.mrb[33].mxu0 }
 0x415   :  { %v11768_v30 = vadd.f32 %v11767_v50, %v11766_v27  ;;  %v11769_v31 = vpop.f32.mrb[30].mxu1  ;;  %v11790_v53 = vadd.f32 %v11789_v29, %v11788_v28  ;;  %v11791_v32 = vpop.f32.mrb[34].mxu0  ;;  %v12924_v27 = vld [vmem:[%s17068_s1 + $0x110] sm:$0xff]   ;;  %v12925_v28 = vld [vmem:[%s17068_s1 + $0x118] sm:$0xff]   ;;  %v12926_v50 = vld [vmem:[%s17069_s0 + $0x60] ss:$0 sps:$4 sm:$0xff]  }
 0x416   :  { %v11770_v33 = vpop.f32.mrb[31].mxu1  ;;  %v11792_v54 = vpop.f32.mrb[35].mxu0  ;;  %v12927_v29 = vld [vmem:[%s17070_s3 + $0x200] ss:$16 sps:$4 sm:$0xff]   ;;  %v12930_v31 = vld [vmem:[%s17070_s3 + $0x208] ss:$16 sps:$4 sm:$0xff]  }
 0x417   :  { %v2275_v36 = vadd.f32 %v11768_v30, %v14531_v49  ;;  %v12929_v30 = vld [vmem:[%s17070_s3 + $0x204] ss:$16 sps:$4 sm:$0xff]   ;;  %v12938_v33 = vld [vmem:[%s17070_s3 + $0x22c] ss:$16 sps:$4 sm:$0xff]   ;;  %v12933_v54 = vld [vmem:[%s17070_s3 + $0x220] ss:$16 sps:$4 sm:$0xff]  }
 0x418   :  { %v12935_v32 = vld [vmem:[%s17070_s3 + $0x224] ss:$16 sps:$4 sm:$0xff]  }
 0x419   :  { %v2315_v37 = vadd.f32 %v11790_v53, %v2275_v36  ;;  %v12932_v53 = vld [vmem:[%s17070_s3 + $0x20c] ss:$16 sps:$4 sm:$0xff]   ;;  %v12936_v36 = vld [vmem:[%s17070_s3 + $0x228] ss:$16 sps:$4 sm:$0xff]  }
 0x423   :  { %v2354_v38 = vpop.f32.mrb[32].mxu1 }
 0x424   :  { %v2355_v39 = vadd.f32 %v2354_v38, %v2315_v37  ;;  %v12477_v40 = vpop.f32.mrb[33].mxu1  ;;  %v12941_v37 = vld [vmem:[%s17070_s3 + $0x244] ss:$16 sps:$4 sm:$0xff]   ;;  %v12944_v38 = vld [vmem:[%s17070_s3 + $0x24c] ss:$16 sps:$4 sm:$0xff]  }
 0x425   :  { %v2357_v41 = vpop.f32.mrb[34].mxu1  ;;  %v12942_v40 = vld [vmem:[%s17070_s3 + $0x248] ss:$16 sps:$4 sm:$0xff]  }
 0x426   :  { %v2360_v42 = vmax.f32 %v2355_v39, 0.0  ;;  %v12478_v43 = vpop.f32.mrb[35].mxu1  ;;  %v12939_v39 = vld [vmem:[%s17070_s3 + $0x240] ss:$16 sps:$4 sm:$0xff]   ;;  %v12947_v41 = vld [vmem:[%s17070_s3 + $0x264] ss:$16 sps:$4 sm:$0xff]  }
 0x427   :  { %v12950_v43 = vld [vmem:[%s17070_s3 + $0x26c] ss:$16 sps:$4 sm:$0xff]  }
 0x428   :  { %v2361_v48 = vpack.c.bf16 %v2360_v42, %v2360_v42  ;;  %v12945_v42 = vld [vmem:[%s17070_s3 + $0x260] ss:$16 sps:$4 sm:$0xff]  }
 0x42a   :  { %10800 = vmatmul.mubr.msk.bf16.vlgmr.msra.gmra.mrb[36].mxu0 %vm342_vm1, %v2361_v48  ;;  %10801 = vmatmul.mubr.msk.bf16.vlgmr.msra.gmra.mrb[36].mxu1 %vm342_vm1, %v2361_v48 }
 0x42b   :  { %11800 = vmatpush3.bf16.msra.mxu0 %v12887_v46  ;;  %11822 = vmatpush3.bf16.msra.mxu1 %v12889_v47  ;;  %v12953_v46 = vld [vmem:[%s17068_s1 + $0xc0] sm:$0xff]  }
 0x42c   :  { %11801 = vmatprep.subr.bf16.mxu0 %v12890_v51  ;;  %11823 = vmatprep.subr.bf16.mxu1 %v12892_v52 }
 0x42d   :  { %2906 = vmatprep.mubr.bf16.mxu0 %v10807_v55  ;;  %2946 = vmatprep.mubr.bf16.mxu1 %v10809_v56 }
 0x42f   :  { %11802 = vmatpush3.bf16.msra.mxu0 %v12891_v57  ;;  %11824 = vmatpush3.bf16.msra.mxu1 %v12893_v58 }
 0x430   :  { %11803 = vmatprep.subr.bf16.mxu0 %v12894_v59  ;;  %11825 = vmatprep.subr.bf16.mxu1 %v12896_v60 }
 0x433   :  { %11804 = vmatpush3.bf16.msra.mxu0 %v12895_v62  ;;  %11826 = vmatpush3.bf16.msra.mxu1 %v12897_v16 }
 0x434   :  { %11805 = vmatprep.subr.bf16.mxu0 %v12898_v63  ;;  %11827 = vmatprep.subr.bf16.mxu1 %v12900_v0 }
 0x437   :  { %11806 = vmatpush3.bf16.msra.mxu0 %v12899_v17  ;;  %11828 = vmatpush3.bf16.msra.mxu1 %v12901_v1 }
 0x438   :  { %11807 = vmatprep.subr.bf16.mxu0 %v12902_v2  ;;  %11829 = vmatprep.subr.bf16.mxu1 %v12904_v3 }
 0x43b   :  { %11808 = vmatpush3.bf16.msra.mxu0 %v12903_v18  ;;  %11830 = vmatpush3.bf16.msra.mxu1 %v12905_v4 }
 0x43c   :  { %11809 = vmatprep.subr.bf16.mxu0 %v12906_v5  ;;  %11831 = vmatprep.subr.bf16.mxu1 %v12908_v19 }
 0x43f   :  { %11810 = vmatpush3.bf16.msra.mxu0 %v12907_v6  ;;  %11832 = vmatpush3.bf16.msra.mxu1 %v12909_v7 }
 0x440   :  { %11811 = vmatprep.subr.bf16.mxu0 %v12910_v8  ;;  %11833 = vmatprep.subr.bf16.mxu1 %v12912_v9 }
 0x443   :  { %11812 = vmatpush3.bf16.msra.mxu0 %v12911_v10  ;;  %11834 = vmatpush3.bf16.msra.mxu1 %v12913_v11  ;;  %v14738_v10 = vld [vmem:[%s17069_s0 + $0x64] sm:$0xff]  ;;  %v14743_v11 = vld [vmem:[%s17069_s0 + $0x6c] sm:$0xff] }
 0x444   :  { %11813 = vmatprep.subr.bf16.mxu0 %v12914_v34  ;;  %11835 = vmatprep.subr.bf16.mxu1 %v12916_v12  ;;  %v12952_v34 = vld [vmem:[%s17068_s1] sm:$0xff]  }
 0x445   :  { %v12954_v12 = vld [vmem:[%s17068_s1 + $0x80] sm:$0xff]  }
 0x447   :  { %11814 = vmatpush3.bf16.msra.mxu0 %v12915_v15  ;;  %11836 = vmatpush3.bf16.msra.mxu1 %v12919_v20  ;;  %v12955_v20 = vld [vmem:[%s17068_s1 + $0x48] sm:$0xff]  }
 0x448   :  { %12479 = vmatprep.subr.bf16.mxu0 %v13699_v35  ;;  %3095 = vmatprep.subr.bf16.mxu1 %v12929_v30  ;;  %v12962_v30 = vld [vmem:[%s17068_s1 + $0x90] sm:$0xff]  }
 0x44a   :  { %2907 = vmatmul.mubr.bf16.vlgmr.msra.gmra.mrb[40].mxu0 %v10806_v23  ;;  %2947 = vmatmul.mubr.bf16.vlgmr.msra.gmra.mrb[40].mxu1 %v10808_v24  ;;  %v12957_v23 = vld [vmem:[%s17068_s1 + $0xc8] sm:$0xff]   ;;  %v10871_v24 = vcombine.high %v14738_v10, %v14738_v10 }
 0x44b   :  { %12480 = vmatpush3.bf16.msra.mxu0 %v12922_v25  ;;  %12487 = vmatprep.mubr.msk.bf16.mxu0 %vm13700_vm0, %v13699_v35  ;;  %v10873_v25 = vcombine.high %v14743_v11, %v14743_v11 }
 0x44c   :  { %12481 = vmatprep.subr.bf16.mxu0 %v13699_v35  ;;  %3127 = vmatprep.mubr.bf16.mxu1 %v13701_v61 }
 0x44d   :  { %3096 = vmatpush1.bf16.msra.mxu1 %v12927_v29  ;;  %v12960_v29 = vld [vmem:[%s17068_s1 + $0x10] sm:$0xff]  }
 0x44e   :  { %3097 = vmatprep.subr.bf16.mxu1 %v12935_v32  ;;  %v12964_v32 = vld [vmem:[%s17068_s1 + $0x18] sm:$0xff]  }
 0x44f   :  { %12482 = vmatpush3.bf16.msra.mxu0 %v12923_v26  ;;  %v12956_v26 = vld [vmem:[%s17068_s1 + $0x8] sm:$0xff]  }
 0x450   :  { %12483 = vmatprep.subr.bf16.mxu0 %v13699_v35 }
 0x451   :  { %3098 = vmatpush1.bf16.msra.mxu1 %v12933_v54  ;;  %v12967_v54 = vld [vmem:[%s17068_s1 + $0x60] sm:$0xff]  }
 0x452   :  { %3099 = vmatprep.subr.bf16.mxu1 %v12941_v37  ;;  %v12968_v37 = vld [vmem:[%s17068_s1 + $0x20] sm:$0xff]  }
 0x453   :  { %12484 = vmatpush3.bf16.msra.mxu0 %v12924_v27  ;;  %v12958_v27 = vld [vmem:[%s17068_s1 + $0x88] sm:$0xff]  }
 0x454   :  { %12485 = vmatprep.subr.bf16.mxu0 %v13699_v35 }
 0x455   :  { %3100 = vmatpush1.bf16.msra.mxu1 %v12939_v39  ;;  %v12971_v39 = vld [vmem:[%s17068_s1 + $0x68] sm:$0xff]  }
 0x456   :  { %3101 = vmatprep.subr.bf16.mxu1 %v12947_v41  ;;  %v12972_v41 = vld [vmem:[%s17068_s1 + $0x28] sm:$0xff]  }
 0x457   :  { %12486 = vmatpush3.bf16.msra.mxu0 %v12925_v28  ;;  %v12959_v28 = vld [vmem:[%s17068_s1 + $0x50] sm:$0xff]  }
 0x458   :  { %3136 = vmatprep.subr.bf16.mxu0 %v12932_v53  ;;  %v12965_v53 = vld [vmem:[%s17068_s1 + $0xd8] sm:$0xff]  }
 0x459   :  { %3102 = vmatpush1.bf16.msra.mxu1 %v12945_v42  ;;  %v12974_v42 = vld [vmem:[%s17068_s1 + $0xa8] sm:$0xff]  }
 0x45a   :  { %12488 = vmatmul.mubr.msk.bf16.vlgmr.msra.gmra.mrb[44].mxu0 %vm342_vm1, %v12926_v50  ;;  %11848 = vmatprep.subr.bf16.mxu1 %v12951_v45  ;;  %v12961_v50 = vld [vmem:[%s17068_s1 + $0xd0] sm:$0xff]  }
 0x45b   :  { %3168 = vmatprep.mubr.bf16.mxu0 %v13701_v61  ;;  %3137 = vmatpush1.bf16.msra.mxu0 %v12930_v31  ;;  %v12963_v31 = vld [vmem:[%s17068_s1 + $0x58] sm:$0xff]   ;;  %v12976_v45 = vld [vmem:[%s17068_s1 + $0x30] sm:$0xff]  }
 0x45c   :  { %3138 = vmatprep.subr.bf16.mxu0 %v12938_v33  ;;  %v12966_v33 = vld [vmem:[%s17068_s1 + $0x98] sm:$0xff]  }
 0x45f   :  { %3139 = vmatpush1.bf16.msra.mxu0 %v12936_v36  ;;  %v12969_v36 = vld [vmem:[%s17068_s1 + $0xe0] sm:$0xff]  }
 0x460   :  { %3140 = vmatprep.subr.bf16.mxu0 %v12944_v38  ;;  %v12970_v38 = vld [vmem:[%s17068_s1 + $0xa0] sm:$0xff]  }
 0x463   :  { %3141 = vmatpush1.bf16.msra.mxu0 %v12942_v40  ;;  %v12973_v40 = vld [vmem:[%s17068_s1 + $0xe8] sm:$0xff]  }
 0x464   :  { %3142 = vmatprep.subr.bf16.mxu0 %v12950_v43  ;;  %v12975_v43 = vld [vmem:[%s17068_s1 + $0x70] sm:$0xff]  }
 0x467   :  { %3143 = vmatpush1.bf16.msra.mxu0 %v12948_v44  ;;  %v12977_v44 = vld [vmem:[%s17068_s1 + $0xf0] sm:$0xff]  }
 0x468   :  { %11870 = vmatprep.subr.bf16.mxu0 %v12953_v46  ;;  %v12978_v46 = vld [vmem:[%s17068_s1 + $0xb0] sm:$0xff]  }
 0x4fd   :  { %v2495_v47 = vpop.f32.mrb[36].mxu0  ;;  %v2536_v48 = vpop.f32.mrb[36].mxu1 }
 0x4fe   :  { %v14723_v51 = vadd.f32 %v2495_v47, %v14517_v13  ;;  %v14726_v52 = vadd.f32 %v2536_v48, %v14520_v14  ;;  %v2497_v55 = vpop.f32.mrb[37].mxu0  ;;  %v2538_v56 = vpop.f32.mrb[37].mxu1  ;;  %v12979_v47 = vld [vmem:[%s17068_s1 + $0x78] sm:$0xff]  }
 0x4ff   :  { %v14729_v57 = vadd.f32 %v2497_v55, %v14523_v21  ;;  %v14732_v58 = vadd.f32 %v2538_v56, %v14526_v22  ;;  %v2499_v59 = vpop.f32.mrb[38].mxu0  ;;  %v2540_v60 = vpop.f32.mrb[38].mxu1  ;;  %v12981_v48 = vld [vmem:[%s17068_s1 + $0xf8] sm:$0xff]  }
 0x500   :  { %v2500_v62 = vpop.f32.mrb[39].mxu0  ;;  %v2541_v16 = vpop.f32.mrb[39].mxu1  ;;  %v12980_v55 = vld [vmem:[%s17068_s1 + $0x38] sm:$0xff]   ;;  %v10870_v59 = vcombine.low %v14738_v10, %v14738_v10  ;;  %v10872_v60 = vcombine.low %v14743_v11, %v14743_v11  ;;  %v13016_v11 = vld [vmem:[%s17068_s1 + $0x40] sm:$0xff]  }
 0x501   :  { %v12984_v56 = vld [vmem:[%s17068_s1 + $0xb8] sm:$0xff]   ;;  %v12987_v62 = vld [vmem:[%s17068_s1 + $0x100] sm:$0xff]   ;;  %v12988_v16 = vld [vmem:[%s17068_s1 + $0x108] sm:$0xff]  }
 0x502   :  { %v13013_v10 = vld [vmem:[%s17070_s3 + $0x2e8] ss:$16 sps:$4 sm:$0xff]  }
 0x51d   :  { %v11815_v63 = vpop.f32.mrb[40].mxu0  ;;  %v11837_v0 = vpop.f32.mrb[40].mxu1 }
 0x51e   :  { %v11816_v17 = vpop.f32.mrb[41].mxu0  ;;  %v11838_v13 = vpop.f32.mrb[41].mxu1 }
 0x51f   :  { %v11817_v1 = vadd.f32 %v11816_v17, %v11815_v63  ;;  %v11818_v2 = vpop.f32.mrb[42].mxu0  ;;  %v11839_v14 = vadd.f32 %v11838_v13, %v11837_v0  ;;  %v11840_v3 = vpop.f32.mrb[42].mxu1  ;;  %v12989_v63 = vld [vmem:[%s17068_s1 + $0x110] sm:$0xff]   ;;  %v12990_v0 = vld [vmem:[%s17068_s1 + $0x118] sm:$0xff]  }
 0x520   :  { %v11819_v18 = vpop.f32.mrb[43].mxu0  ;;  %v11841_v4 = vpop.f32.mrb[43].mxu1  ;;  %v12991_v17 = vld [vmem:[%s17069_s0 + $0x74] ss:$0 sps:$4 sm:$0xff]   ;;  %v12992_v13 = vld [vmem:[%s17070_s3 + $0x280] ss:$16 sps:$4 sm:$0xff]  }
 0x521   :  { %v2909_v21 = vadd.f32 %v11817_v1, %v14531_v49  ;;  %v12994_v1 = vld [vmem:[%s17070_s3 + $0x284] ss:$16 sps:$4 sm:$0xff]   ;;  %v12995_v2 = vld [vmem:[%s17070_s3 + $0x288] ss:$16 sps:$4 sm:$0xff]   ;;  %v13003_v18 = vld [vmem:[%s17070_s3 + $0x2ac] ss:$16 sps:$4 sm:$0xff]  }
 0x522   :  { %v13000_v3 = vld [vmem:[%s17070_s3 + $0x2a4] ss:$16 sps:$4 sm:$0xff]   ;;  %v12998_v4 = vld [vmem:[%s17070_s3 + $0x2a0] ss:$16 sps:$4 sm:$0xff]  }
 0x523   :  { %v2949_v5 = vadd.f32 %v11839_v14, %v2909_v21  ;;  %v12997_v14 = vld [vmem:[%s17070_s3 + $0x28c] ss:$16 sps:$4 sm:$0xff]   ;;  %v13001_v21 = vld [vmem:[%s17070_s3 + $0x2a8] ss:$16 sps:$4 sm:$0xff]  }
 0x52d   :  { %v2988_v19 = vpop.f32.mrb[44].mxu0 }
 0x52e   :  { %v2989_v22 = vadd.f32 %v2988_v19, %v2949_v5  ;;  %v12489_v6 = vpop.f32.mrb[45].mxu0  ;;  %v13006_v5 = vld [vmem:[%s17070_s3 + $0x2c4] ss:$16 sps:$4 sm:$0xff]   ;;  %v13009_v19 = vld [vmem:[%s17070_s3 + $0x2cc] ss:$16 sps:$4 sm:$0xff]  }
 0x52f   :  { %v2991_v7 = vpop.f32.mrb[46].mxu0  ;;  %v13007_v6 = vld [vmem:[%s17070_s3 + $0x2c8] ss:$16 sps:$4 sm:$0xff]  }
 0x530   :  { %v2994_v8 = vmax.f32 %v2989_v22, 0.0  ;;  %v12490_v9 = vpop.f32.mrb[47].mxu0  ;;  %v13004_v22 = vld [vmem:[%s17070_s3 + $0x2c0] ss:$16 sps:$4 sm:$0xff]   ;;  %v13012_v7 = vld [vmem:[%s17070_s3 + $0x2e4] ss:$16 sps:$4 sm:$0xff]  }
 0x531   :  { %v13015_v9 = vld [vmem:[%s17070_s3 + $0x2ec] ss:$16 sps:$4 sm:$0xff]  }
 0x532   :  { %v2995_v15 = vpack.c.bf16 %v2994_v8, %v2994_v8  ;;  %v13010_v8 = vld [vmem:[%s17070_s3 + $0x2e0] ss:$16 sps:$4 sm:$0xff]  }
 0x534   :  { %10864 = vmatmul.mubr.msk.bf16.vlgmr.msra.gmra.mrb[44].mxu1 %vm342_vm1, %v2995_v15  ;;  %10865 = vmatmul.mubr.msk.bf16.vlgmr.msra.gmra.mrb[48].mxu0 %vm342_vm1, %v2995_v15 }
 0x535   :  { %11849 = vmatpush3.bf16.msra.mxu1 %v12952_v34  ;;  %11871 = vmatpush3.bf16.msra.mxu0 %v12954_v12  ;;  %v13018_v34 = vld [vmem:[%s17068_s1 + $0xc0] sm:$0xff]  }
 0x536   :  { %11850 = vmatprep.subr.bf16.mxu1 %v12955_v20  ;;  %11872 = vmatprep.subr.bf16.mxu0 %v12957_v23 }
 0x537   :  { %3540 = vmatprep.mubr.bf16.mxu1 %v10871_v24  ;;  %3580 = vmatprep.mubr.bf16.mxu0 %v10873_v25 }
 0x539   :  { %11851 = vmatpush3.bf16.msra.mxu1 %v12956_v26  ;;  %11873 = vmatpush3.bf16.msra.mxu0 %v12958_v27 }
 0x53a   :  { %11852 = vmatprep.subr.bf16.mxu1 %v12959_v28  ;;  %11874 = vmatprep.subr.bf16.mxu0 %v12961_v50 }
 0x53d   :  { %11853 = vmatpush3.bf16.msra.mxu1 %v12960_v29  ;;  %11875 = vmatpush3.bf16.msra.mxu0 %v12962_v30 }
 0x53e   :  { %11854 = vmatprep.subr.bf16.mxu1 %v12963_v31  ;;  %11876 = vmatprep.subr.bf16.mxu0 %v12965_v53 }
 0x541   :  { %11855 = vmatpush3.bf16.msra.mxu1 %v12964_v32  ;;  %11877 = vmatpush3.bf16.msra.mxu0 %v12966_v33 }
 0x542   :  { %11856 = vmatprep.subr.bf16.mxu1 %v12967_v54  ;;  %11878 = vmatprep.subr.bf16.mxu0 %v12969_v36 }
 0x545   :  { %11857 = vmatpush3.bf16.msra.mxu1 %v12968_v37  ;;  %11879 = vmatpush3.bf16.msra.mxu0 %v12970_v38 }
 0x546   :  { %11858 = vmatprep.subr.bf16.mxu1 %v12971_v39  ;;  %11880 = vmatprep.subr.bf16.mxu0 %v12973_v40 }
 0x549   :  { %11859 = vmatpush3.bf16.msra.mxu1 %v12972_v41  ;;  %11881 = vmatpush3.bf16.msra.mxu0 %v12974_v42 }
 0x54a   :  { %11860 = vmatprep.subr.bf16.mxu1 %v12975_v43  ;;  %11882 = vmatprep.subr.bf16.mxu0 %v12977_v44 }
 0x54d   :  { %11861 = vmatpush3.bf16.msra.mxu1 %v12976_v45  ;;  %11883 = vmatpush3.bf16.msra.mxu0 %v12978_v46  ;;  %v14939_v45 = vld [vmem:[%s17069_s0 + $0x78] sm:$0xff]  ;;  %v14944_v46 = vld [vmem:[%s17069_s0 + $0x80] sm:$0xff] }
 0x54e   :  { %11862 = vmatprep.subr.bf16.mxu1 %v12979_v47  ;;  %11884 = vmatprep.subr.bf16.mxu0 %v12981_v48  ;;  %v13019_v47 = vld [vmem:[%s17068_s1 + $0x80] sm:$0xff]  }
 0x551   :  { %11863 = vmatpush3.bf16.msra.mxu1 %v12980_v55  ;;  %11885 = vmatpush3.bf16.msra.mxu0 %v12984_v56  ;;  %v13020_v55 = vld [vmem:[%s17068_s1 + $0x48] sm:$0xff]  }
 0x552   :  { %12491 = vmatprep.subr.bf16.mxu1 %v13699_v35  ;;  %3729 = vmatprep.subr.bf16.mxu0 %v12994_v1  ;;  %v13022_v56 = vld [vmem:[%s17068_s1 + $0xc8] sm:$0xff]   ;;  %v13028_v1 = vld [vmem:[%s17068_s1 + $0x58] sm:$0xff]  }
 0x554   :  { %3541 = vmatmul.mubr.bf16.vlgmr.msra.gmra.mrb[48].mxu1 %v10870_v59  ;;  %3581 = vmatmul.mubr.bf16.vlgmr.msra.gmra.mrb[52].mxu0 %v10872_v60  ;;  %v10935_v59 = vcombine.high %v14939_v45, %v14939_v45  ;;  %v10937_v60 = vcombine.high %v14944_v46, %v14944_v46 }
 0x555   :  { %12492 = vmatpush3.bf16.msra.mxu1 %v12987_v62  ;;  %12499 = vmatprep.mubr.msk.bf16.mxu1 %vm13700_vm0, %v13699_v35  ;;  %v13021_v62 = vld [vmem:[%s17068_s1 + $0x8] sm:$0xff]  }
 0x556   :  { %12493 = vmatprep.subr.bf16.mxu1 %v13699_v35  ;;  %3761 = vmatprep.mubr.bf16.mxu0 %v13701_v61 }
 0x557   :  { %3730 = vmatpush1.bf16.msra.mxu0 %v12992_v13  ;;  %v13027_v13 = vld [vmem:[%s17068_s1 + $0x90] sm:$0xff]  }
 0x558   :  { %3731 = vmatprep.subr.bf16.mxu0 %v13000_v3  ;;  %v13031_v3 = vld [vmem:[%s17068_s1 + $0x98] sm:$0xff]  }
 0x559   :  { %12494 = vmatpush3.bf16.msra.mxu1 %v12988_v16  ;;  %v13023_v16 = vld [vmem:[%s17068_s1 + $0x88] sm:$0xff]  }
 0x55a   :  { %12495 = vmatprep.subr.bf16.mxu1 %v13699_v35 }
 0x55b   :  { %3732 = vmatpush1.bf16.msra.mxu0 %v12998_v4  ;;  %v13034_v4 = vld [vmem:[%s17068_s1 + $0xe0] sm:$0xff]  }
 0x55c   :  { %3733 = vmatprep.subr.bf16.mxu0 %v13006_v5  ;;  %v13035_v5 = vld [vmem:[%s17068_s1 + $0xa0] sm:$0xff]  }
 0x55d   :  { %12496 = vmatpush3.bf16.msra.mxu1 %v12989_v63  ;;  %v13024_v63 = vld [vmem:[%s17068_s1 + $0x50] sm:$0xff]  }
 0x55e   :  { %12497 = vmatprep.subr.bf16.mxu1 %v13699_v35 }
 0x55f   :  { %3734 = vmatpush1.bf16.msra.mxu0 %v13004_v22  ;;  %v13038_v22 = vld [vmem:[%s17068_s1 + $0xe8] sm:$0xff]  }
 0x560   :  { %3735 = vmatprep.subr.bf16.mxu0 %v13012_v7  ;;  %v13039_v7 = vld [vmem:[%s17068_s1 + $0xa8] sm:$0xff]  }
 0x561   :  { %12498 = vmatpush3.bf16.msra.mxu1 %v12990_v0  ;;  %v13026_v0 = vld [vmem:[%s17068_s1 + $0xd0] sm:$0xff]  }
 0x562   :  { %3770 = vmatprep.subr.bf16.mxu1 %v12997_v14  ;;  %v13029_v14 = vld [vmem:[%s17068_s1 + $0x18] sm:$0xff]  }
 0x563   :  { %3736 = vmatpush1.bf16.msra.mxu0 %v13010_v8  ;;  %v13040_v8 = vld [vmem:[%s17068_s1 + $0x70] sm:$0xff]  }
 0x564   :  { %12500 = vmatmul.mubr.msk.bf16.vlgmr.msra.gmra.mrb[52].mxu1 %vm342_vm1, %v12991_v17  ;;  %11897 = vmatprep.subr.bf16.mxu0 %v13016_v11  ;;  %v13025_v17 = vld [vmem:[%s17068_s1 + $0x10] sm:$0xff]  }
 0x565   :  { %3802 = vmatprep.mubr.bf16.mxu1 %v13701_v61  ;;  %3771 = vmatpush1.bf16.msra.mxu1 %v12995_v2  ;;  %v13030_v2 = vld [vmem:[%s17068_s1 + $0xd8] sm:$0xff]   ;;  %v13043_v11 = vld [vmem:[%s17068_s1 + $0xb0] sm:$0xff]  }
 0x566   :  { %3772 = vmatprep.subr.bf16.mxu1 %v13003_v18  ;;  %v13032_v18 = vld [vmem:[%s17068_s1 + $0x60] sm:$0xff]  }
 0x569   :  { %3773 = vmatpush1.bf16.msra.mxu1 %v13001_v21  ;;  %v13033_v21 = vld [vmem:[%s17068_s1 + $0x20] sm:$0xff]  }
 0x56a   :  { %3774 = vmatprep.subr.bf16.mxu1 %v13009_v19  ;;  %v13036_v19 = vld [vmem:[%s17068_s1 + $0x68] sm:$0xff]  }
 0x56d   :  { %3775 = vmatpush1.bf16.msra.mxu1 %v13007_v6  ;;  %v13037_v6 = vld [vmem:[%s17068_s1 + $0x28] sm:$0xff]  }
 0x56e   :  { %3776 = vmatprep.subr.bf16.mxu1 %v13015_v9  ;;  %v13042_v9 = vld [vmem:[%s17068_s1 + $0xf0] sm:$0xff]  }
 0x571   :  { %3777 = vmatpush1.bf16.msra.mxu1 %v13013_v10  ;;  %v13041_v10 = vld [vmem:[%s17068_s1 + $0x30] sm:$0xff]  }
 0x572   :  { %11919 = vmatprep.subr.bf16.mxu1 %v13018_v34  ;;  %v13044_v34 = vld [vmem:[%s17068_s1 + $0x78] sm:$0xff]  }
 0x607   :  { %v3129_v12 = vpop.f32.mrb[44].mxu1  ;;  %v3170_v15 = vpop.f32.mrb[48].mxu0 }
 0x608   :  { %v14924_v20 = vadd.f32 %v3129_v12, %v14723_v51  ;;  %v14927_v23 = vadd.f32 %v3170_v15, %v14726_v52  ;;  %v3131_v24 = vpop.f32.mrb[45].mxu1  ;;  %v3172_v25 = vpop.f32.mrb[49].mxu0  ;;  %v13046_v12 = vld [vmem:[%s17068_s1 + $0xf8] sm:$0xff]  }
 0x609   :  { %v14930_v26 = vadd.f32 %v3131_v24, %v14729_v57  ;;  %v14933_v27 = vadd.f32 %v3172_v25, %v14732_v58  ;;  %v3133_v28 = vpop.f32.mrb[46].mxu1  ;;  %v3174_v50 = vpop.f32.mrb[50].mxu0  ;;  %v13045_v15 = vld [vmem:[%s17068_s1 + $0x38] sm:$0xff]   ;;  %v10934_v25 = vcombine.low %v14939_v45, %v14939_v45  ;;  %v13081_v45 = vld [vmem:[%s17068_s1 + $0x40] sm:$0xff]  }
 0x60a   :  { %v3134_v29 = vpop.f32.mrb[47].mxu1  ;;  %v3175_v30 = vpop.f32.mrb[51].mxu0  ;;  %v13049_v24 = vld [vmem:[%s17068_s1 + $0xb8] sm:$0xff]   ;;  %v10936_v28 = vcombine.low %v14944_v46, %v14944_v46  ;;  %v13052_v50 = vld [vmem:[%s17068_s1 + $0x100] sm:$0xff]  }
 0x60b   :  { %v13053_v29 = vld [vmem:[%s17068_s1 + $0x108] sm:$0xff]   ;;  %v13054_v30 = vld [vmem:[%s17068_s1 + $0x110] sm:$0xff]   ;;  %v13083_v46 = vld [vmem:[%s17068_s1 + $0xc0] sm:$0xff]  }
 0x627   :  { %v11864_v31 = vpop.f32.mrb[48].mxu1  ;;  %v11886_v53 = vpop.f32.mrb[52].mxu0 }
 0x628   :  { %v11865_v32 = vpop.f32.mrb[49].mxu1  ;;  %v11887_v51 = vpop.f32.mrb[53].mxu0 }
 0x629   :  { %v11866_v33 = vadd.f32 %v11865_v32, %v11864_v31  ;;  %v11867_v54 = vpop.f32.mrb[50].mxu1  ;;  %v11888_v52 = vadd.f32 %v11887_v51, %v11886_v53  ;;  %v11889_v36 = vpop.f32.mrb[54].mxu0  ;;  %v13055_v31 = vld [vmem:[%s17068_s1 + $0x118] sm:$0xff]   ;;  %v13056_v53 = vld [vmem:[%s17069_s0 + $0x88] ss:$0 sps:$4 sm:$0xff]  }
 0x62a   :  { %v11868_v37 = vpop.f32.mrb[51].mxu1  ;;  %v11890_v38 = vpop.f32.mrb[55].mxu0  ;;  %v13057_v32 = vld [vmem:[%s17070_s3 + $0x300] ss:$16 sps:$4 sm:$0xff]   ;;  %v13059_v51 = vld [vmem:[%s17070_s3 + $0x304] ss:$16 sps:$4 sm:$0xff]  }
 0x62b   :  { %v3543_v57 = vadd.f32 %v11866_v33, %v14531_v49  ;;  %v13017_v49 = vld [vmem:[%s17068_s1] sm:$0xff]   ;;  %v13060_v33 = vld [vmem:[%s17070_s3 + $0x308] ss:$16 sps:$4 sm:$0xff]   ;;  %v13062_v54 = vld [vmem:[%s17070_s3 + $0x30c] ss:$16 sps:$4 sm:$0xff]  }
 0x62c   :  { %v13068_v36 = vld [vmem:[%s17070_s3 + $0x32c] ss:$16 sps:$4 sm:$0xff]   ;;  %v13063_v37 = vld [vmem:[%s17070_s3 + $0x320] ss:$16 sps:$4 sm:$0xff]   ;;  %v13066_v38 = vld [vmem:[%s17070_s3 + $0x328] ss:$16 sps:$4 sm:$0xff]  }
 0x62d   :  { %v3583_v39 = vadd.f32 %v11888_v52, %v3543_v57  ;;  %v13065_v52 = vld [vmem:[%s17070_s3 + $0x324] ss:$16 sps:$4 sm:$0xff]  }
 0x62e   :  { %v13071_v57 = vld [vmem:[%s17070_s3 + $0x344] ss:$16 sps:$4 sm:$0xff]  }
 0x637   :  { %v3622_v40 = vpop.f32.mrb[52].mxu1 }
 0x638   :  { %v3623_v58 = vadd.f32 %v3622_v40, %v3583_v39  ;;  %v12501_v41 = vpop.f32.mrb[53].mxu1  ;;  %v13074_v39 = vld [vmem:[%s17070_s3 + $0x34c] ss:$16 sps:$4 sm:$0xff]   ;;  %v13069_v40 = vld [vmem:[%s17070_s3 + $0x340] ss:$16 sps:$4 sm:$0xff]  }
 0x639   :  { %v3625_v42 = vpop.f32.mrb[54].mxu1  ;;  %v13077_v41 = vld [vmem:[%s17070_s3 + $0x364] ss:$16 sps:$4 sm:$0xff]  }
 0x63a   :  { %v3628_v43 = vmax.f32 %v3623_v58, 0.0  ;;  %v12502_v44 = vpop.f32.mrb[55].mxu1  ;;  %v13072_v58 = vld [vmem:[%s17070_s3 + $0x348] ss:$16 sps:$4 sm:$0xff]   ;;  %v13075_v42 = vld [vmem:[%s17070_s3 + $0x360] ss:$16 sps:$4 sm:$0xff]  }
 0x63b   :  { %v13078_v44 = vld [vmem:[%s17070_s3 + $0x368] ss:$16 sps:$4 sm:$0xff]  }
 0x63c   :  { %v3629_v48 = vpack.c.bf16 %v3628_v43, %v3628_v43  ;;  %v13080_v43 = vld [vmem:[%s17070_s3 + $0x36c] ss:$16 sps:$4 sm:$0xff]  }
 0x63e   :  { %10928 = vmatmul.mubr.msk.bf16.vlgmr.msra.gmra.mrb[56].mxu0 %vm342_vm1, %v3629_v48  ;;  %10929 = vmatmul.mubr.msk.bf16.vlgmr.msra.gmra.mrb[56].mxu1 %vm342_vm1, %v3629_v48 }
 0x63f   :  { %11898 = vmatpush3.bf16.msra.mxu0 %v13017_v49  ;;  %11920 = vmatpush3.bf16.msra.mxu1 %v13019_v47 }
 0x640   :  { %11899 = vmatprep.subr.bf16.mxu0 %v13020_v55  ;;  %11921 = vmatprep.subr.bf16.mxu1 %v13022_v56 }
 0x641   :  { %4174 = vmatprep.mubr.bf16.mxu0 %v10935_v59  ;;  %4214 = vmatprep.mubr.bf16.mxu1 %v10937_v60 }
 0x643   :  { %11900 = vmatpush3.bf16.msra.mxu0 %v13021_v62  ;;  %11922 = vmatpush3.bf16.msra.mxu1 %v13023_v16 }
 0x644   :  { %11901 = vmatprep.subr.bf16.mxu0 %v13024_v63  ;;  %11923 = vmatprep.subr.bf16.mxu1 %v13026_v0 }
 0x647   :  { %11902 = vmatpush3.bf16.msra.mxu0 %v13025_v17  ;;  %11924 = vmatpush3.bf16.msra.mxu1 %v13027_v13 }
 0x648   :  { %11903 = vmatprep.subr.bf16.mxu0 %v13028_v1  ;;  %11925 = vmatprep.subr.bf16.mxu1 %v13030_v2 }
 0x64b   :  { %11904 = vmatpush3.bf16.msra.mxu0 %v13029_v14  ;;  %11926 = vmatpush3.bf16.msra.mxu1 %v13031_v3 }
 0x64c   :  { %11905 = vmatprep.subr.bf16.mxu0 %v13032_v18  ;;  %11927 = vmatprep.subr.bf16.mxu1 %v13034_v4 }
 0x64f   :  { %11906 = vmatpush3.bf16.msra.mxu0 %v13033_v21  ;;  %11928 = vmatpush3.bf16.msra.mxu1 %v13035_v5 }
 0x650   :  { %11907 = vmatprep.subr.bf16.mxu0 %v13036_v19  ;;  %11929 = vmatprep.subr.bf16.mxu1 %v13038_v22 }
 0x653   :  { %11908 = vmatpush3.bf16.msra.mxu0 %v13037_v6  ;;  %11930 = vmatpush3.bf16.msra.mxu1 %v13039_v7 }
 0x654   :  { %11909 = vmatprep.subr.bf16.mxu0 %v13040_v8  ;;  %11931 = vmatprep.subr.bf16.mxu1 %v13042_v9 }
 0x657   :  { %11910 = vmatpush3.bf16.msra.mxu0 %v13041_v10  ;;  %11932 = vmatpush3.bf16.msra.mxu1 %v13043_v11  ;;  %v15145_v10 = vld [vmem:[%s17069_s0 + $0x8c] sm:$0xff]  ;;  %v15150_v11 = vld [vmem:[%s17069_s0 + $0x94] sm:$0xff] }
 0x658   :  { %11911 = vmatprep.subr.bf16.mxu0 %v13044_v34  ;;  %11933 = vmatprep.subr.bf16.mxu1 %v13046_v12  ;;  %v13082_v34 = vld [vmem:[%s17068_s1] sm:$0xff]  }
 0x659   :  { %v13084_v12 = vld [vmem:[%s17068_s1 + $0x80] sm:$0xff]  }
 0x65b   :  { %11912 = vmatpush3.bf16.msra.mxu0 %v13045_v15  ;;  %11934 = vmatpush3.bf16.msra.mxu1 %v13049_v24  ;;  %v13085_v24 = vld [vmem:[%s17068_s1 + $0x48] sm:$0xff]  }
 0x65c   :  { %12503 = vmatprep.subr.bf16.mxu0 %v13699_v35  ;;  %4363 = vmatprep.subr.bf16.mxu1 %v13059_v51  ;;  %v13092_v51 = vld [vmem:[%s17068_s1 + $0x90] sm:$0xff]  }
 0x65e   :  { %4175 = vmatmul.mubr.bf16.vlgmr.msra.gmra.mrb[60].mxu0 %v10934_v25  ;;  %4215 = vmatmul.mubr.bf16.vlgmr.msra.gmra.mrb[60].mxu1 %v10936_v28  ;;  %v13087_v25 = vld [vmem:[%s17068_s1 + $0xc8] sm:$0xff]   ;;  %v10999_v28 = vcombine.high %v15145_v10, %v15145_v10 }
 0x65f   :  { %12504 = vmatpush3.bf16.msra.mxu0 %v13052_v50  ;;  %12511 = vmatprep.mubr.msk.bf16.mxu0 %vm13700_vm0, %v13699_v35  ;;  %v11001_v50 = vcombine.high %v15150_v11, %v15150_v11 }
 0x660   :  { %12505 = vmatprep.subr.bf16.mxu0 %v13699_v35  ;;  %4395 = vmatprep.mubr.bf16.mxu1 %v13701_v61 }
 0x661   :  { %4364 = vmatpush1.bf16.msra.mxu1 %v13057_v32  ;;  %v13090_v32 = vld [vmem:[%s17068_s1 + $0x10] sm:$0xff]  }
 0x662   :  { %4365 = vmatprep.subr.bf16.mxu1 %v13065_v52  ;;  %v13094_v52 = vld [vmem:[%s17068_s1 + $0x18] sm:$0xff]  }
 0x663   :  { %12506 = vmatpush3.bf16.msra.mxu0 %v13053_v29  ;;  %v13086_v29 = vld [vmem:[%s17068_s1 + $0x8] sm:$0xff]  }
 0x664   :  { %12507 = vmatprep.subr.bf16.mxu0 %v13699_v35 }
 0x665   :  { %4366 = vmatpush1.bf16.msra.mxu1 %v13063_v37  ;;  %v13097_v37 = vld [vmem:[%s17068_s1 + $0x60] sm:$0xff]  }
 0x666   :  { %4367 = vmatprep.subr.bf16.mxu1 %v13071_v57  ;;  %v13098_v57 = vld [vmem:[%s17068_s1 + $0x20] sm:$0xff]  }
 0x667   :  { %12508 = vmatpush3.bf16.msra.mxu0 %v13054_v30  ;;  %v13088_v30 = vld [vmem:[%s17068_s1 + $0x88] sm:$0xff]  }
 0x668   :  { %12509 = vmatprep.subr.bf16.mxu0 %v13699_v35 }
 0x669   :  { %4368 = vmatpush1.bf16.msra.mxu1 %v13069_v40  ;;  %v13101_v40 = vld [vmem:[%s17068_s1 + $0x68] sm:$0xff]  }
 0x66a   :  { %4369 = vmatprep.subr.bf16.mxu1 %v13077_v41  ;;  %v13102_v41 = vld [vmem:[%s17068_s1 + $0x28] sm:$0xff]  }
 0x66b   :  { %12510 = vmatpush3.bf16.msra.mxu0 %v13055_v31  ;;  %v13089_v31 = vld [vmem:[%s17068_s1 + $0x50] sm:$0xff]  }
 0x66c   :  { %4404 = vmatprep.subr.bf16.mxu0 %v13062_v54  ;;  %v13095_v54 = vld [vmem:[%s17068_s1 + $0xd8] sm:$0xff]  }
 0x66d   :  { %4370 = vmatpush1.bf16.msra.mxu1 %v13075_v42  ;;  %v13104_v42 = vld [vmem:[%s17068_s1 + $0xa8] sm:$0xff]  }
 0x66e   :  { %12512 = vmatmul.mubr.msk.bf16.vlgmr.msra.gmra.mrb[64].mxu0 %vm342_vm1, %v13056_v53  ;;  %11946 = vmatprep.subr.bf16.mxu1 %v13081_v45  ;;  %v13091_v53 = vld [vmem:[%s17068_s1 + $0xd0] sm:$0xff]  }
 0x66f   :  { %4436 = vmatprep.mubr.bf16.mxu0 %v13701_v61  ;;  %4405 = vmatpush1.bf16.msra.mxu0 %v13060_v33  ;;  %v13093_v33 = vld [vmem:[%s17068_s1 + $0x58] sm:$0xff]   ;;  %v13106_v45 = vld [vmem:[%s17068_s1 + $0x30] sm:$0xff]  }
 0x670   :  { %4406 = vmatprep.subr.bf16.mxu0 %v13068_v36  ;;  %v13096_v36 = vld [vmem:[%s17068_s1 + $0x98] sm:$0xff]  }
 0x673   :  { %4407 = vmatpush1.bf16.msra.mxu0 %v13066_v38  ;;  %v13099_v38 = vld [vmem:[%s17068_s1 + $0xe0] sm:$0xff]  }
 0x674   :  { %4408 = vmatprep.subr.bf16.mxu0 %v13074_v39  ;;  %v13100_v39 = vld [vmem:[%s17068_s1 + $0xa0] sm:$0xff]  }
 0x677   :  { %4409 = vmatpush1.bf16.msra.mxu0 %v13072_v58  ;;  %v13103_v58 = vld [vmem:[%s17068_s1 + $0xe8] sm:$0xff]  }
 0x678   :  { %4410 = vmatprep.subr.bf16.mxu0 %v13080_v43  ;;  %v13105_v43 = vld [vmem:[%s17068_s1 + $0x70] sm:$0xff]  }
 0x67b   :  { %4411 = vmatpush1.bf16.msra.mxu0 %v13078_v44  ;;  %v13107_v44 = vld [vmem:[%s17068_s1 + $0xf0] sm:$0xff]  }
 0x67c   :  { %11968 = vmatprep.subr.bf16.mxu0 %v13083_v46  ;;  %v13108_v46 = vld [vmem:[%s17068_s1 + $0xb0] sm:$0xff]  }
 0x711   :  { %v3763_v49 = vpop.f32.mrb[56].mxu0  ;;  %v3804_v47 = vpop.f32.mrb[56].mxu1 }
 0x712   :  { %v15125_v48 = vadd.f32 %v3763_v49, %v14924_v20  ;;  %v15128_v55 = vadd.f32 %v3804_v47, %v14927_v23  ;;  %v3765_v56 = vpop.f32.mrb[57].mxu0  ;;  %v3806_v59 = vpop.f32.mrb[57].mxu1  ;;  %v15139_v20 = vld [vmem:[%s17071_s2] ss:$0 sm:$0xff]  ;;  %v13109_v49 = vld [vmem:[%s17068_s1 + $0x78] sm:$0xff]  }
 0x713   :  { %v15131_v60 = vadd.f32 %v3765_v56, %v14930_v26  ;;  %v15134_v62 = vadd.f32 %v3806_v59, %v14933_v27  ;;  %v3767_v16 = vpop.f32.mrb[58].mxu0  ;;  %v3808_v63 = vpop.f32.mrb[58].mxu1  ;;  %v13111_v47 = vld [vmem:[%s17068_s1 + $0xf8] sm:$0xff]  }
 0x714   :  { %v3768_v0 = vpop.f32.mrb[59].mxu0  ;;  %v3809_v17 = vpop.f32.mrb[59].mxu1  ;;  %v13110_v56 = vld [vmem:[%s17068_s1 + $0x38] sm:$0xff]   ;;  %v10998_v16 = vcombine.low %v15145_v10, %v15145_v10  ;;  %v11000_v63 = vcombine.low %v15150_v11, %v15150_v11  ;;  %v13146_v11 = vld [vmem:[%s17068_s1 + $0x40] sm:$0xff]  }
 0x715   :  { %v13114_v59 = vld [vmem:[%s17068_s1 + $0xb8] sm:$0xff]   ;;  %v13117_v0 = vld [vmem:[%s17068_s1 + $0x100] sm:$0xff]   ;;  %v13118_v17 = vld [vmem:[%s17068_s1 + $0x108] sm:$0xff]  }
 0x716   :  { %v13143_v10 = vld [vmem:[%s17070_s3 + $0x3e8] ss:$16 sps:$4 sm:$0xff]  }
 0x731   :  { %v11913_v13 = vpop.f32.mrb[60].mxu0  ;;  %v11935_v1 = vpop.f32.mrb[60].mxu1 }
 0x732   :  { %v11914_v23 = vpop.f32.mrb[61].mxu0  ;;  %v11936_v2 = vpop.f32.mrb[61].mxu1 }
 0x733   :  { %v11915_v14 = vadd.f32 %v11914_v23, %v11913_v13  ;;  %v11916_v3 = vpop.f32.mrb[62].mxu0  ;;  %v11937_v26 = vadd.f32 %v11936_v2, %v11935_v1  ;;  %v11938_v18 = vpop.f32.mrb[62].mxu1  ;;  %v13119_v13 = vld [vmem:[%s17068_s1 + $0x110] sm:$0xff]   ;;  %v13120_v1 = vld [vmem:[%s17068_s1 + $0x118] sm:$0xff]  }
 0x734   :  { %v11917_v4 = vpop.f32.mrb[63].mxu0  ;;  %v11939_v27 = vpop.f32.mrb[63].mxu1  ;;  %v13121_v23 = vld [vmem:[%s17069_s0 + $0x9c] ss:$0 sps:$4 sm:$0xff]   ;;  %v13122_v2 = vld [vmem:[%s17070_s3 + $0x380] ss:$16 sps:$4 sm:$0xff]  }
 0x735   :  { %v4177_v21 = vadd.f32 %v11915_v14, %v15139_v20  ;;  %v13124_v14 = vld [vmem:[%s17070_s3 + $0x384] ss:$16 sps:$4 sm:$0xff]   ;;  %v13125_v3 = vld [vmem:[%s17070_s3 + $0x388] ss:$16 sps:$4 sm:$0xff]   ;;  %v13133_v4 = vld [vmem:[%s17070_s3 + $0x3ac] ss:$16 sps:$4 sm:$0xff]  }
 0x736   :  { %v13130_v18 = vld [vmem:[%s17070_s3 + $0x3a4] ss:$16 sps:$4 sm:$0xff]   ;;  %v13128_v27 = vld [vmem:[%s17070_s3 + $0x3a0] ss:$16 sps:$4 sm:$0xff]  }
 0x737   :  { %v4217_v5 = vadd.f32 %v11937_v26, %v4177_v21  ;;  %v13127_v26 = vld [vmem:[%s17070_s3 + $0x38c] ss:$16 sps:$4 sm:$0xff]   ;;  %v13131_v21 = vld [vmem:[%s17070_s3 + $0x3a8] ss:$16 sps:$4 sm:$0xff]  }
 0x741   :  { %v4256_v19 = vpop.f32.mrb[64].mxu0 }
 0x742   :  { %v4257_v22 = vadd.f32 %v4256_v19, %v4217_v5  ;;  %v12513_v6 = vpop.f32.mrb[65].mxu0  ;;  %v13136_v5 = vld [vmem:[%s17070_s3 + $0x3c4] ss:$16 sps:$4 sm:$0xff]   ;;  %v13139_v19 = vld [vmem:[%s17070_s3 + $0x3cc] ss:$16 sps:$4 sm:$0xff]  }
 0x743   :  { %v4259_v7 = vpop.f32.mrb[66].mxu0  ;;  %v13137_v6 = vld [vmem:[%s17070_s3 + $0x3c8] ss:$16 sps:$4 sm:$0xff]  }
 0x744   :  { %v4262_v8 = vmax.f32 %v4257_v22, 0.0  ;;  %v12514_v9 = vpop.f32.mrb[67].mxu0  ;;  %v13134_v22 = vld [vmem:[%s17070_s3 + $0x3c0] ss:$16 sps:$4 sm:$0xff]   ;;  %v13142_v7 = vld [vmem:[%s17070_s3 + $0x3e4] ss:$16 sps:$4 sm:$0xff]  }
 0x745   :  { %v13145_v9 = vld [vmem:[%s17070_s3 + $0x3ec] ss:$16 sps:$4 sm:$0xff]  }
 0x746   :  { %v4263_v15 = vpack.c.bf16 %v4262_v8, %v4262_v8  ;;  %v13140_v8 = vld [vmem:[%s17070_s3 + $0x3e0] ss:$16 sps:$4 sm:$0xff]  }
 0x748   :  { %10992 = vmatmul.mubr.msk.bf16.vlgmr.msra.gmra.mrb[64].mxu1 %vm342_vm1, %v4263_v15  ;;  %10993 = vmatmul.mubr.msk.bf16.vlgmr.msra.gmra.mrb[68].mxu0 %vm342_vm1, %v4263_v15 }
 0x749   :  { %11947 = vmatpush3.bf16.msra.mxu1 %v13082_v34  ;;  %11969 = vmatpush3.bf16.msra.mxu0 %v13084_v12  ;;  %v13148_v34 = vld [vmem:[%s17068_s1 + $0xc0] sm:$0xff]  }
 0x74a   :  { %11948 = vmatprep.subr.bf16.mxu1 %v13085_v24  ;;  %11970 = vmatprep.subr.bf16.mxu0 %v13087_v25 }
 0x74b   :  { %4808 = vmatprep.mubr.bf16.mxu1 %v10999_v28  ;;  %4848 = vmatprep.mubr.bf16.mxu0 %v11001_v50 }
 0x74d   :  { %11949 = vmatpush3.bf16.msra.mxu1 %v13086_v29  ;;  %11971 = vmatpush3.bf16.msra.mxu0 %v13088_v30 }
 0x74e   :  { %11950 = vmatprep.subr.bf16.mxu1 %v13089_v31  ;;  %11972 = vmatprep.subr.bf16.mxu0 %v13091_v53 }
 0x751   :  { %11951 = vmatpush3.bf16.msra.mxu1 %v13090_v32  ;;  %11973 = vmatpush3.bf16.msra.mxu0 %v13092_v51 }
 0x752   :  { %11952 = vmatprep.subr.bf16.mxu1 %v13093_v33  ;;  %11974 = vmatprep.subr.bf16.mxu0 %v13095_v54 }
 0x755   :  { %11953 = vmatpush3.bf16.msra.mxu1 %v13094_v52  ;;  %11975 = vmatpush3.bf16.msra.mxu0 %v13096_v36 }
 0x756   :  { %11954 = vmatprep.subr.bf16.mxu1 %v13097_v37  ;;  %11976 = vmatprep.subr.bf16.mxu0 %v13099_v38 }
 0x759   :  { %11955 = vmatpush3.bf16.msra.mxu1 %v13098_v57  ;;  %11977 = vmatpush3.bf16.msra.mxu0 %v13100_v39 }
 0x75a   :  { %11956 = vmatprep.subr.bf16.mxu1 %v13101_v40  ;;  %11978 = vmatprep.subr.bf16.mxu0 %v13103_v58 }
 0x75d   :  { %11957 = vmatpush3.bf16.msra.mxu1 %v13102_v41  ;;  %11979 = vmatpush3.bf16.msra.mxu0 %v13104_v42 }
 0x75e   :  { %11958 = vmatprep.subr.bf16.mxu1 %v13105_v43  ;;  %11980 = vmatprep.subr.bf16.mxu0 %v13107_v44 }
 0x761   :  { %11959 = vmatpush3.bf16.msra.mxu1 %v13106_v45  ;;  %11981 = vmatpush3.bf16.msra.mxu0 %v13108_v46  ;;  %v15346_v45 = vld [vmem:[%s17069_s0 + $0xa0] sm:$0xff]  ;;  %v15351_v46 = vld [vmem:[%s17069_s0 + $0xa8] sm:$0xff] }
 0x762   :  { %11960 = vmatprep.subr.bf16.mxu1 %v13109_v49  ;;  %11982 = vmatprep.subr.bf16.mxu0 %v13111_v47  ;;  %v13147_v49 = vld [vmem:[%s17068_s1] sm:$0xff]  }
 0x763   :  { %v13149_v47 = vld [vmem:[%s17068_s1 + $0x80] sm:$0xff]  }
 0x765   :  { %11961 = vmatpush3.bf16.msra.mxu1 %v13110_v56  ;;  %11983 = vmatpush3.bf16.msra.mxu0 %v13114_v59  ;;  %v13150_v59 = vld [vmem:[%s17068_s1 + $0x48] sm:$0xff]  }
 0x766   :  { %12515 = vmatprep.subr.bf16.mxu1 %v13699_v35  ;;  %4997 = vmatprep.subr.bf16.mxu0 %v13124_v14  ;;  %v13157_v14 = vld [vmem:[%s17068_s1 + $0x90] sm:$0xff]  }
 0x768   :  { %4809 = vmatmul.mubr.bf16.vlgmr.msra.gmra.mrb[68].mxu1 %v10998_v16  ;;  %4849 = vmatmul.mubr.bf16.vlgmr.msra.gmra.mrb[72].mxu0 %v11000_v63  ;;  %v13152_v16 = vld [vmem:[%s17068_s1 + $0xc8] sm:$0xff]   ;;  %v11063_v63 = vcombine.high %v15346_v45, %v15346_v45 }
 0x769   :  { %12516 = vmatpush3.bf16.msra.mxu1 %v13117_v0  ;;  %12523 = vmatprep.mubr.msk.bf16.mxu1 %vm13700_vm0, %v13699_v35  ;;  %v11065_v0 = vcombine.high %v15351_v46, %v15351_v46 }
 0x76a   :  { %12517 = vmatprep.subr.bf16.mxu1 %v13699_v35  ;;  %5029 = vmatprep.mubr.bf16.mxu0 %v13701_v61 }
 0x76b   :  { %4998 = vmatpush1.bf16.msra.mxu0 %v13122_v2  ;;  %v13155_v2 = vld [vmem:[%s17068_s1 + $0x10] sm:$0xff]  }
 0x76c   :  { %4999 = vmatprep.subr.bf16.mxu0 %v13130_v18  ;;  %v13159_v18 = vld [vmem:[%s17068_s1 + $0x18] sm:$0xff]  }
 0x76d   :  { %12518 = vmatpush3.bf16.msra.mxu1 %v13118_v17  ;;  %v13151_v17 = vld [vmem:[%s17068_s1 + $0x8] sm:$0xff]  }
 0x76e   :  { %12519 = vmatprep.subr.bf16.mxu1 %v13699_v35 }
 0x76f   :  { %5000 = vmatpush1.bf16.msra.mxu0 %v13128_v27  ;;  %v13162_v27 = vld [vmem:[%s17068_s1 + $0x60] sm:$0xff]  }
 0x770   :  { %5001 = vmatprep.subr.bf16.mxu0 %v13136_v5  ;;  %v13163_v5 = vld [vmem:[%s17068_s1 + $0x20] sm:$0xff]  }
 0x771   :  { %12520 = vmatpush3.bf16.msra.mxu1 %v13119_v13  ;;  %v13153_v13 = vld [vmem:[%s17068_s1 + $0x88] sm:$0xff]  }
 0x772   :  { %12521 = vmatprep.subr.bf16.mxu1 %v13699_v35 }
 0x773   :  { %5002 = vmatpush1.bf16.msra.mxu0 %v13134_v22  ;;  %v13166_v22 = vld [vmem:[%s17068_s1 + $0x68] sm:$0xff]  }
 0x774   :  { %5003 = vmatprep.subr.bf16.mxu0 %v13142_v7  ;;  %v13167_v7 = vld [vmem:[%s17068_s1 + $0x28] sm:$0xff]  }
 0x775   :  { %12522 = vmatpush3.bf16.msra.mxu1 %v13120_v1  ;;  %v13154_v1 = vld [vmem:[%s17068_s1 + $0x50] sm:$0xff]  }
 0x776   :  { %5038 = vmatprep.subr.bf16.mxu1 %v13127_v26  ;;  %v13160_v26 = vld [vmem:[%s17068_s1 + $0xd8] sm:$0xff]  }
 0x777   :  { %5004 = vmatpush1.bf16.msra.mxu0 %v13140_v8  ;;  %v13169_v8 = vld [vmem:[%s17068_s1 + $0xa8] sm:$0xff]  }
 0x778   :  { %12524 = vmatmul.mubr.msk.bf16.vlgmr.msra.gmra.mrb[72].mxu1 %vm342_vm1, %v13121_v23  ;;  %11995 = vmatprep.subr.bf16.mxu0 %v13146_v11  ;;  %v13156_v23 = vld [vmem:[%s17068_s1 + $0xd0] sm:$0xff]  }
 0x779   :  { %5070 = vmatprep.mubr.bf16.mxu1 %v13701_v61  ;;  %5039 = vmatpush1.bf16.msra.mxu1 %v13125_v3  ;;  %v13158_v3 = vld [vmem:[%s17068_s1 + $0x58] sm:$0xff]   ;;  %v13171_v11 = vld [vmem:[%s17068_s1 + $0x30] sm:$0xff]  }
 0x77a   :  { %5040 = vmatprep.subr.bf16.mxu1 %v13133_v4  ;;  %v13161_v4 = vld [vmem:[%s17068_s1 + $0x98] sm:$0xff]  }
 0x77d   :  { %5041 = vmatpush1.bf16.msra.mxu1 %v13131_v21  ;;  %v13164_v21 = vld [vmem:[%s17068_s1 + $0xe0] sm:$0xff]  }
 0x77e   :  { %5042 = vmatprep.subr.bf16.mxu1 %v13139_v19  ;;  %v13165_v19 = vld [vmem:[%s17068_s1 + $0xa0] sm:$0xff]  }
 0x781   :  { %5043 = vmatpush1.bf16.msra.mxu1 %v13137_v6  ;;  %v13168_v6 = vld [vmem:[%s17068_s1 + $0xe8] sm:$0xff]  }
 0x782   :  { %5044 = vmatprep.subr.bf16.mxu1 %v13145_v9  ;;  %v13170_v9 = vld [vmem:[%s17068_s1 + $0x70] sm:$0xff]  }
 0x785   :  { %5045 = vmatpush1.bf16.msra.mxu1 %v13143_v10  ;;  %v13172_v10 = vld [vmem:[%s17068_s1 + $0xf0] sm:$0xff]  }
 0x786   :  { %12017 = vmatprep.subr.bf16.mxu1 %v13148_v34  ;;  %v13173_v34 = vld [vmem:[%s17068_s1 + $0xb0] sm:$0xff]  }
 0x81b   :  { %v4397_v12 = vpop.f32.mrb[64].mxu1  ;;  %v4438_v15 = vpop.f32.mrb[68].mxu0 }
 0x81c   :  { %v15331_v24 = vadd.f32 %v4397_v12, %v15125_v48  ;;  %v15334_v25 = vadd.f32 %v4438_v15, %v15128_v55  ;;  %v4399_v28 = vpop.f32.mrb[65].mxu1  ;;  %v4440_v50 = vpop.f32.mrb[69].mxu0  ;;  %v13174_v12 = vld [vmem:[%s17068_s1 + $0x78] sm:$0xff]  }
 0x81d   :  { %v15337_v29 = vadd.f32 %v4399_v28, %v15131_v60  ;;  %v15340_v30 = vadd.f32 %v4440_v50, %v15134_v62  ;;  %v4401_v31 = vpop.f32.mrb[66].mxu1  ;;  %v4442_v53 = vpop.f32.mrb[70].mxu0  ;;  %v13176_v15 = vld [vmem:[%s17068_s1 + $0xf8] sm:$0xff]  }
 0x81e   :  { %v4402_v32 = vpop.f32.mrb[67].mxu1  ;;  %v4443_v51 = vpop.f32.mrb[71].mxu0  ;;  %v13175_v28 = vld [vmem:[%s17068_s1 + $0x38] sm:$0xff]   ;;  %v11062_v31 = vcombine.low %v15346_v45, %v15346_v45  ;;  %v11064_v53 = vcombine.low %v15351_v46, %v15351_v46  ;;  %v13211_v46 = vld [vmem:[%s17068_s1 + $0x40] sm:$0xff]  }
 0x81f   :  { %v13179_v50 = vld [vmem:[%s17068_s1 + $0xb8] sm:$0xff]   ;;  %v13182_v32 = vld [vmem:[%s17068_s1 + $0x100] sm:$0xff]   ;;  %v13183_v51 = vld [vmem:[%s17068_s1 + $0x108] sm:$0xff]  }
 0x820   :  { %v13208_v45 = vld [vmem:[%s17070_s3 + $0x468] ss:$16 sps:$4 sm:$0xff]  }
 0x83b   :  { %v11962_v33 = vpop.f32.mrb[68].mxu1  ;;  %v11984_v54 = vpop.f32.mrb[72].mxu0 }
 0x83c   :  { %v11963_v52 = vpop.f32.mrb[69].mxu1  ;;  %v11985_v48 = vpop.f32.mrb[73].mxu0 }
 0x83d   :  { %v11964_v36 = vadd.f32 %v11963_v52, %v11962_v33  ;;  %v11965_v37 = vpop.f32.mrb[70].mxu1  ;;  %v11986_v55 = vadd.f32 %v11985_v48, %v11984_v54  ;;  %v11987_v38 = vpop.f32.mrb[74].mxu0  ;;  %v13184_v33 = vld [vmem:[%s17068_s1 + $0x110] sm:$0xff]   ;;  %v13185_v54 = vld [vmem:[%s17068_s1 + $0x118] sm:$0xff]  }
 0x83e   :  { %v11966_v57 = vpop.f32.mrb[71].mxu1  ;;  %v11988_v39 = vpop.f32.mrb[75].mxu0  ;;  %v13186_v52 = vld [vmem:[%s17069_s0 + $0xb0] ss:$0 sps:$4 sm:$0xff]   ;;  %v13190_v37 = vld [vmem:[%s17070_s3 + $0x408] ss:$16 sps:$4 sm:$0xff]  }
 0x83f   :  { %v4811_v60 = vadd.f32 %v11964_v36, %v15139_v20  ;;  %v13187_v48 = vld [vmem:[%s17070_s3 + $0x400] ss:$16 sps:$4 sm:$0xff]   ;;  %v13189_v36 = vld [vmem:[%s17070_s3 + $0x404] ss:$16 sps:$4 sm:$0xff]   ;;  %v13198_v57 = vld [vmem:[%s17070_s3 + $0x42c] ss:$16 sps:$4 sm:$0xff]  }
 0x840   :  { %v13195_v38 = vld [vmem:[%s17070_s3 + $0x424] ss:$16 sps:$4 sm:$0xff]   ;;  %v13193_v39 = vld [vmem:[%s17070_s3 + $0x420] ss:$16 sps:$4 sm:$0xff]  }
 0x841   :  { %v4851_v40 = vadd.f32 %v11986_v55, %v4811_v60  ;;  %v13192_v55 = vld [vmem:[%s17070_s3 + $0x40c] ss:$16 sps:$4 sm:$0xff]   ;;  %v13196_v60 = vld [vmem:[%s17070_s3 + $0x428] ss:$16 sps:$4 sm:$0xff]  }
 0x84b   :  { %v4890_v58 = vpop.f32.mrb[72].mxu1 }
 0x84c   :  { %v4891_v62 = vadd.f32 %v4890_v58, %v4851_v40  ;;  %v12525_v41 = vpop.f32.mrb[73].mxu1  ;;  %v13201_v40 = vld [vmem:[%s17070_s3 + $0x444] ss:$16 sps:$4 sm:$0xff]   ;;  %v13204_v58 = vld [vmem:[%s17070_s3 + $0x44c] ss:$16 sps:$4 sm:$0xff]  }
 0x84d   :  { %v4893_v42 = vpop.f32.mrb[74].mxu1  ;;  %v13202_v41 = vld [vmem:[%s17070_s3 + $0x448] ss:$16 sps:$4 sm:$0xff]  }
 0x84e   :  { %v4896_v43 = vmax.f32 %v4891_v62, 0.0  ;;  %v12526_v44 = vpop.f32.mrb[75].mxu1  ;;  %v13199_v62 = vld [vmem:[%s17070_s3 + $0x440] ss:$16 sps:$4 sm:$0xff]   ;;  %v13207_v42 = vld [vmem:[%s17070_s3 + $0x464] ss:$16 sps:$4 sm:$0xff]  }
 0x84f   :  { %v13210_v44 = vld [vmem:[%s17070_s3 + $0x46c] ss:$16 sps:$4 sm:$0xff]  }
 0x850   :  { %v4897_v56 = vpack.c.bf16 %v4896_v43, %v4896_v43  ;;  %v13205_v43 = vld [vmem:[%s17070_s3 + $0x460] ss:$16 sps:$4 sm:$0xff]  }
 0x852   :  { %11056 = vmatmul.mubr.msk.bf16.vlgmr.msra.gmra.mrb[76].mxu0 %vm342_vm1, %v4897_v56  ;;  %11057 = vmatmul.mubr.msk.bf16.vlgmr.msra.gmra.mrb[76].mxu1 %vm342_vm1, %v4897_v56 }
 0x853   :  { %11996 = vmatpush3.bf16.msra.mxu0 %v13147_v49  ;;  %12018 = vmatpush3.bf16.msra.mxu1 %v13149_v47  ;;  %v13213_v49 = vld [vmem:[%s17068_s1 + $0xc0] sm:$0xff]  }
 0x854   :  { %11997 = vmatprep.subr.bf16.mxu0 %v13150_v59  ;;  %12019 = vmatprep.subr.bf16.mxu1 %v13152_v16 }
 0x855   :  { %5442 = vmatprep.mubr.bf16.mxu0 %v11063_v63  ;;  %5482 = vmatprep.mubr.bf16.mxu1 %v11065_v0 }
 0x857   :  { %11998 = vmatpush3.bf16.msra.mxu0 %v13151_v17  ;;  %12020 = vmatpush3.bf16.msra.mxu1 %v13153_v13 }
 0x858   :  { %11999 = vmatprep.subr.bf16.mxu0 %v13154_v1  ;;  %12021 = vmatprep.subr.bf16.mxu1 %v13156_v23 }
 0x85b   :  { %12000 = vmatpush3.bf16.msra.mxu0 %v13155_v2  ;;  %12022 = vmatpush3.bf16.msra.mxu1 %v13157_v14 }
 0x85c   :  { %12001 = vmatprep.subr.bf16.mxu0 %v13158_v3  ;;  %12023 = vmatprep.subr.bf16.mxu1 %v13160_v26 }
 0x85f   :  { %12002 = vmatpush3.bf16.msra.mxu0 %v13159_v18  ;;  %12024 = vmatpush3.bf16.msra.mxu1 %v13161_v4 }
 0x860   :  { %12003 = vmatprep.subr.bf16.mxu0 %v13162_v27  ;;  %12025 = vmatprep.subr.bf16.mxu1 %v13164_v21 }
 0x863   :  { %12004 = vmatpush3.bf16.msra.mxu0 %v13163_v5  ;;  %12026 = vmatpush3.bf16.msra.mxu1 %v13165_v19 }
 0x864   :  { %12005 = vmatprep.subr.bf16.mxu0 %v13166_v22  ;;  %12027 = vmatprep.subr.bf16.mxu1 %v13168_v6 }
 0x867   :  { %12006 = vmatpush3.bf16.msra.mxu0 %v13167_v7  ;;  %12028 = vmatpush3.bf16.msra.mxu1 %v13169_v8 }
 0x868   :  { %12007 = vmatprep.subr.bf16.mxu0 %v13170_v9  ;;  %12029 = vmatprep.subr.bf16.mxu1 %v13172_v10 }
 0x86b   :  { %12008 = vmatpush3.bf16.msra.mxu0 %v13171_v11  ;;  %12030 = vmatpush3.bf16.msra.mxu1 %v13173_v34  ;;  %v15547_v11 = vld [vmem:[%s17069_s0 + $0xb4] sm:$0xff]  ;;  %v15552_v34 = vld [vmem:[%s17069_s0 + $0xbc] sm:$0xff] }
 0x86c   :  { %12009 = vmatprep.subr.bf16.mxu0 %v13174_v12  ;;  %12031 = vmatprep.subr.bf16.mxu1 %v13176_v15  ;;  %v13214_v12 = vld [vmem:[%s17068_s1 + $0x80] sm:$0xff]  }
 0x86f   :  { %12010 = vmatpush3.bf16.msra.mxu0 %v13175_v28  ;;  %12032 = vmatpush3.bf16.msra.mxu1 %v13179_v50  ;;  %v13215_v28 = vld [vmem:[%s17068_s1 + $0x48] sm:$0xff]  }
 0x870   :  { %12527 = vmatprep.subr.bf16.mxu0 %v13699_v35  ;;  %5631 = vmatprep.subr.bf16.mxu1 %v13189_v36  ;;  %v13217_v50 = vld [vmem:[%s17068_s1 + $0xc8] sm:$0xff]   ;;  %v13223_v36 = vld [vmem:[%s17068_s1 + $0x58] sm:$0xff]  }
 0x872   :  { %5443 = vmatmul.mubr.bf16.vlgmr.msra.gmra.mrb[80].mxu0 %v11062_v31  ;;  %5483 = vmatmul.mubr.bf16.vlgmr.msra.gmra.mrb[80].mxu1 %v11064_v53  ;;  %v11127_v31 = vcombine.high %v15547_v11, %v15547_v11  ;;  %v11129_v53 = vcombine.high %v15552_v34, %v15552_v34 }
 0x873   :  { %12528 = vmatpush3.bf16.msra.mxu0 %v13182_v32  ;;  %12535 = vmatprep.mubr.msk.bf16.mxu0 %vm13700_vm0, %v13699_v35  ;;  %v13216_v32 = vld [vmem:[%s17068_s1 + $0x8] sm:$0xff]  }
 0x874   :  { %12529 = vmatprep.subr.bf16.mxu0 %v13699_v35  ;;  %5663 = vmatprep.mubr.bf16.mxu1 %v13701_v61 }
 0x875   :  { %5632 = vmatpush1.bf16.msra.mxu1 %v13187_v48  ;;  %v13222_v48 = vld [vmem:[%s17068_s1 + $0x90] sm:$0xff]  }
 0x876   :  { %5633 = vmatprep.subr.bf16.mxu1 %v13195_v38  ;;  %v13226_v38 = vld [vmem:[%s17068_s1 + $0x98] sm:$0xff]  }
 0x877   :  { %12530 = vmatpush3.bf16.msra.mxu0 %v13183_v51  ;;  %v13218_v51 = vld [vmem:[%s17068_s1 + $0x88] sm:$0xff]  }
 0x878   :  { %12531 = vmatprep.subr.bf16.mxu0 %v13699_v35 }
 0x879   :  { %5634 = vmatpush1.bf16.msra.mxu1 %v13193_v39  ;;  %v13229_v39 = vld [vmem:[%s17068_s1 + $0xe0] sm:$0xff]  }
 0x87a   :  { %5635 = vmatprep.subr.bf16.mxu1 %v13201_v40  ;;  %v13230_v40 = vld [vmem:[%s17068_s1 + $0xa0] sm:$0xff]  }
 0x87b   :  { %12532 = vmatpush3.bf16.msra.mxu0 %v13184_v33  ;;  %v13219_v33 = vld [vmem:[%s17068_s1 + $0x50] sm:$0xff]  }
 0x87c   :  { %12533 = vmatprep.subr.bf16.mxu0 %v13699_v35 }
 0x87d   :  { %5636 = vmatpush1.bf16.msra.mxu1 %v13199_v62  ;;  %v13233_v62 = vld [vmem:[%s17068_s1 + $0xe8] sm:$0xff]  }
 0x87e   :  { %5637 = vmatprep.subr.bf16.mxu1 %v13207_v42  ;;  %v13234_v42 = vld [vmem:[%s17068_s1 + $0xa8] sm:$0xff]  }
 0x87f   :  { %12534 = vmatpush3.bf16.msra.mxu0 %v13185_v54  ;;  %v13221_v54 = vld [vmem:[%s17068_s1 + $0xd0] sm:$0xff]  }
 0x880   :  { %5672 = vmatprep.subr.bf16.mxu0 %v13192_v55  ;;  %v13224_v55 = vld [vmem:[%s17068_s1 + $0x18] sm:$0xff]  }
 0x881   :  { %5638 = vmatpush1.bf16.msra.mxu1 %v13205_v43  ;;  %v13235_v43 = vld [vmem:[%s17068_s1 + $0x70] sm:$0xff]  }
 0x882   :  { %12536 = vmatmul.mubr.msk.bf16.vlgmr.msra.gmra.mrb[84].mxu0 %vm342_vm1, %v13186_v52  ;;  %12044 = vmatprep.subr.bf16.mxu1 %v13211_v46  ;;  %v13220_v52 = vld [vmem:[%s17068_s1 + $0x10] sm:$0xff]  }
 0x883   :  { %5704 = vmatprep.mubr.bf16.mxu0 %v13701_v61  ;;  %5673 = vmatpush1.bf16.msra.mxu0 %v13190_v37  ;;  %v13225_v37 = vld [vmem:[%s17068_s1 + $0xd8] sm:$0xff]   ;;  %v13238_v46 = vld [vmem:[%s17068_s1 + $0xb0] sm:$0xff]  }
 0x884   :  { %5674 = vmatprep.subr.bf16.mxu0 %v13198_v57  ;;  %v13227_v57 = vld [vmem:[%s17068_s1 + $0x60] sm:$0xff]  }
 0x887   :  { %5675 = vmatpush1.bf16.msra.mxu0 %v13196_v60  ;;  %v13228_v60 = vld [vmem:[%s17068_s1 + $0x20] sm:$0xff]  }
 0x888   :  { %5676 = vmatprep.subr.bf16.mxu0 %v13204_v58  ;;  %v13231_v58 = vld [vmem:[%s17068_s1 + $0x68] sm:$0xff]  }
 0x88b   :  { %5677 = vmatpush1.bf16.msra.mxu0 %v13202_v41  ;;  %v13232_v41 = vld [vmem:[%s17068_s1 + $0x28] sm:$0xff]  }
 0x88c   :  { %5678 = vmatprep.subr.bf16.mxu0 %v13210_v44  ;;  %v13237_v44 = vld [vmem:[%s17068_s1 + $0xf0] sm:$0xff]  }
 0x88f   :  { %5679 = vmatpush1.bf16.msra.mxu0 %v13208_v45  ;;  %v13236_v45 = vld [vmem:[%s17068_s1 + $0x30] sm:$0xff]  }
 0x890   :  { %12066 = vmatprep.subr.bf16.mxu0 %v13213_v49  ;;  %v13239_v49 = vld [vmem:[%s17068_s1 + $0x78] sm:$0xff]  }
 0x925   :  { %v5031_v47 = vpop.f32.mrb[76].mxu0  ;;  %v5072_v56 = vpop.f32.mrb[76].mxu1 }
 0x926   :  { %v15532_v59 = vadd.f32 %v5031_v47, %v15331_v24  ;;  %v15535_v16 = vadd.f32 %v5072_v56, %v15334_v25  ;;  %v5033_v63 = vpop.f32.mrb[77].mxu0  ;;  %v5074_v0 = vpop.f32.mrb[77].mxu1  ;;  %v13241_v47 = vld [vmem:[%s17068_s1 + $0xf8] sm:$0xff]  }
 0x927   :  { %v15538_v17 = vadd.f32 %v5033_v63, %v15337_v29  ;;  %v15541_v13 = vadd.f32 %v5074_v0, %v15340_v30  ;;  %v5035_v1 = vpop.f32.mrb[78].mxu0  ;;  %v5076_v23 = vpop.f32.mrb[78].mxu1  ;;  %v13240_v56 = vld [vmem:[%s17068_s1 + $0x38] sm:$0xff]   ;;  %v11126_v0 = vcombine.low %v15547_v11, %v15547_v11  ;;  %v13276_v11 = vld [vmem:[%s17068_s1 + $0x40] sm:$0xff]  }
 0x928   :  { %v5036_v2 = vpop.f32.mrb[79].mxu0  ;;  %v5077_v14 = vpop.f32.mrb[79].mxu1  ;;  %v13244_v63 = vld [vmem:[%s17068_s1 + $0xb8] sm:$0xff]   ;;  %v11128_v1 = vcombine.low %v15552_v34, %v15552_v34  ;;  %v13247_v23 = vld [vmem:[%s17068_s1 + $0x100] sm:$0xff]  }
 0x929   :  { %v13248_v2 = vld [vmem:[%s17068_s1 + $0x108] sm:$0xff]   ;;  %v13249_v14 = vld [vmem:[%s17068_s1 + $0x110] sm:$0xff]   ;;  %v13278_v34 = vld [vmem:[%s17068_s1 + $0xc0] sm:$0xff]  }
 0x945   :  { %v12011_v3 = vpop.f32.mrb[80].mxu0  ;;  %v12033_v26 = vpop.f32.mrb[80].mxu1 }
 0x946   :  { %v12012_v18 = vpop.f32.mrb[81].mxu0  ;;  %v12034_v24 = vpop.f32.mrb[81].mxu1 }
 0x947   :  { %v12013_v4 = vadd.f32 %v12012_v18, %v12011_v3  ;;  %v12014_v27 = vpop.f32.mrb[82].mxu0  ;;  %v12035_v25 = vadd.f32 %v12034_v24, %v12033_v26  ;;  %v12036_v21 = vpop.f32.mrb[82].mxu1  ;;  %v13250_v3 = vld [vmem:[%s17068_s1 + $0x118] sm:$0xff]   ;;  %v13251_v26 = vld [vmem:[%s17069_s0 + $0xc4] ss:$0 sps:$4 sm:$0xff]  }
 0x948   :  { %v12015_v5 = vpop.f32.mrb[83].mxu0  ;;  %v12037_v19 = vpop.f32.mrb[83].mxu1  ;;  %v13252_v18 = vld [vmem:[%s17070_s3 + $0x480] ss:$16 sps:$4 sm:$0xff]   ;;  %v13254_v24 = vld [vmem:[%s17070_s3 + $0x484] ss:$16 sps:$4 sm:$0xff]  }
 0x949   :  { %v5445_v29 = vadd.f32 %v12013_v4, %v15139_v20  ;;  %v13212_v20 = vld [vmem:[%s17068_s1] sm:$0xff]   ;;  %v13255_v4 = vld [vmem:[%s17070_s3 + $0x488] ss:$16 sps:$4 sm:$0xff]   ;;  %v13257_v27 = vld [vmem:[%s17070_s3 + $0x48c] ss:$16 sps:$4 sm:$0xff]  }
 0x94a   :  { %v13263_v21 = vld [vmem:[%s17070_s3 + $0x4ac] ss:$16 sps:$4 sm:$0xff]   ;;  %v13258_v5 = vld [vmem:[%s17070_s3 + $0x4a0] ss:$16 sps:$4 sm:$0xff]   ;;  %v13261_v19 = vld [vmem:[%s17070_s3 + $0x4a8] ss:$16 sps:$4 sm:$0xff]  }
 0x94b   :  { %v5485_v22 = vadd.f32 %v12035_v25, %v5445_v29  ;;  %v13260_v25 = vld [vmem:[%s17070_s3 + $0x4a4] ss:$16 sps:$4 sm:$0xff]  }
 0x94c   :  { %v13266_v29 = vld [vmem:[%s17070_s3 + $0x4c4] ss:$16 sps:$4 sm:$0xff]  }
 0x955   :  { %v5524_v6 = vpop.f32.mrb[84].mxu0 }
 0x956   :  { %v5525_v30 = vadd.f32 %v5524_v6, %v5485_v22  ;;  %v12537_v7 = vpop.f32.mrb[85].mxu0  ;;  %v13269_v22 = vld [vmem:[%s17070_s3 + $0x4cc] ss:$16 sps:$4 sm:$0xff]   ;;  %v13264_v6 = vld [vmem:[%s17070_s3 + $0x4c0] ss:$16 sps:$4 sm:$0xff]  }
 0x957   :  { %v5527_v8 = vpop.f32.mrb[86].mxu0  ;;  %v13272_v7 = vld [vmem:[%s17070_s3 + $0x4e4] ss:$16 sps:$4 sm:$0xff]  }
 0x958   :  { %v5530_v9 = vmax.f32 %v5525_v30, 0.0  ;;  %v12538_v10 = vpop.f32.mrb[87].mxu0  ;;  %v13267_v30 = vld [vmem:[%s17070_s3 + $0x4c8] ss:$16 sps:$4 sm:$0xff]   ;;  %v13270_v8 = vld [vmem:[%s17070_s3 + $0x4e0] ss:$16 sps:$4 sm:$0xff]  }
 0x959   :  { %v13273_v10 = vld [vmem:[%s17070_s3 + $0x4e8] ss:$16 sps:$4 sm:$0xff]  }
 0x95a   :  { %v5531_v15 = vpack.c.bf16 %v5530_v9, %v5530_v9  ;;  %v13275_v9 = vld [vmem:[%s17070_s3 + $0x4ec] ss:$16 sps:$4 sm:$0xff]  }
 0x95c   :  { %11120 = vmatmul.mubr.msk.bf16.vlgmr.msra.gmra.mrb[84].mxu1 %vm342_vm1, %v5531_v15  ;;  %11121 = vmatmul.mubr.msk.bf16.vlgmr.msra.gmra.mrb[88].mxu0 %vm342_vm1, %v5531_v15 }
 0x95d   :  { %12045 = vmatpush3.bf16.msra.mxu1 %v13212_v20  ;;  %12067 = vmatpush3.bf16.msra.mxu0 %v13214_v12 }
 0x95e   :  { %12046 = vmatprep.subr.bf16.mxu1 %v13215_v28  ;;  %12068 = vmatprep.subr.bf16.mxu0 %v13217_v50 }
 0x95f   :  { %6076 = vmatprep.mubr.bf16.mxu1 %v11127_v31  ;;  %6116 = vmatprep.mubr.bf16.mxu0 %v11129_v53 }
 0x961   :  { %12047 = vmatpush3.bf16.msra.mxu1 %v13216_v32  ;;  %12069 = vmatpush3.bf16.msra.mxu0 %v13218_v51 }
 0x962   :  { %12048 = vmatprep.subr.bf16.mxu1 %v13219_v33  ;;  %12070 = vmatprep.subr.bf16.mxu0 %v13221_v54 }
 0x965   :  { %12049 = vmatpush3.bf16.msra.mxu1 %v13220_v52  ;;  %12071 = vmatpush3.bf16.msra.mxu0 %v13222_v48 }
 0x966   :  { %12050 = vmatprep.subr.bf16.mxu1 %v13223_v36  ;;  %12072 = vmatprep.subr.bf16.mxu0 %v13225_v37 }
 0x969   :  { %12051 = vmatpush3.bf16.msra.mxu1 %v13224_v55  ;;  %12073 = vmatpush3.bf16.msra.mxu0 %v13226_v38 }
 0x96a   :  { %12052 = vmatprep.subr.bf16.mxu1 %v13227_v57  ;;  %12074 = vmatprep.subr.bf16.mxu0 %v13229_v39 }
 0x96d   :  { %12053 = vmatpush3.bf16.msra.mxu1 %v13228_v60  ;;  %12075 = vmatpush3.bf16.msra.mxu0 %v13230_v40 }
 0x96e   :  { %12054 = vmatprep.subr.bf16.mxu1 %v13231_v58  ;;  %12076 = vmatprep.subr.bf16.mxu0 %v13233_v62 }
 0x971   :  { %12055 = vmatpush3.bf16.msra.mxu1 %v13232_v41  ;;  %12077 = vmatpush3.bf16.msra.mxu0 %v13234_v42 }
 0x972   :  { %12056 = vmatprep.subr.bf16.mxu1 %v13235_v43  ;;  %12078 = vmatprep.subr.bf16.mxu0 %v13237_v44 }
 0x975   :  { %12057 = vmatpush3.bf16.msra.mxu1 %v13236_v45  ;;  %12079 = vmatpush3.bf16.msra.mxu0 %v13238_v46  ;;  %v15753_v45 = vld [vmem:[%s17069_s0 + $0xc8] sm:$0xff]  ;;  %v15758_v46 = vld [vmem:[%s17069_s0 + $0xd0] sm:$0xff] }
 0x976   :  { %12058 = vmatprep.subr.bf16.mxu1 %v13239_v49  ;;  %12080 = vmatprep.subr.bf16.mxu0 %v13241_v47  ;;  %v13277_v49 = vld [vmem:[%s17068_s1] sm:$0xff]  }
 0x977   :  { %v13279_v47 = vld [vmem:[%s17068_s1 + $0x80] sm:$0xff]  }
 0x979   :  { %12059 = vmatpush3.bf16.msra.mxu1 %v13240_v56  ;;  %12081 = vmatpush3.bf16.msra.mxu0 %v13244_v63  ;;  %v13280_v63 = vld [vmem:[%s17068_s1 + $0x48] sm:$0xff]  }
 0x97a   :  { %12539 = vmatprep.subr.bf16.mxu1 %v13699_v35  ;;  %6265 = vmatprep.subr.bf16.mxu0 %v13254_v24  ;;  %v13287_v24 = vld [vmem:[%s17068_s1 + $0x90] sm:$0xff]  }
 0x97c   :  { %6077 = vmatmul.mubr.bf16.vlgmr.msra.gmra.mrb[88].mxu1 %v11126_v0  ;;  %6117 = vmatmul.mubr.bf16.vlgmr.msra.gmra.mrb[92].mxu0 %v11128_v1  ;;  %v13282_v0 = vld [vmem:[%s17068_s1 + $0xc8] sm:$0xff]   ;;  %v11191_v1 = vcombine.high %v15753_v45, %v15753_v45 }
 0x97d   :  { %12540 = vmatpush3.bf16.msra.mxu1 %v13247_v23  ;;  %12547 = vmatprep.mubr.msk.bf16.mxu1 %vm13700_vm0, %v13699_v35  ;;  %v11193_v23 = vcombine.high %v15758_v46, %v15758_v46 }
 0x97e   :  { %12541 = vmatprep.subr.bf16.mxu1 %v13699_v35  ;;  %6297 = vmatprep.mubr.bf16.mxu0 %v13701_v61 }
 0x97f   :  { %6266 = vmatpush1.bf16.msra.mxu0 %v13252_v18  ;;  %v13285_v18 = vld [vmem:[%s17068_s1 + $0x10] sm:$0xff]  }
 0x980   :  { %6267 = vmatprep.subr.bf16.mxu0 %v13260_v25  ;;  %v13289_v25 = vld [vmem:[%s17068_s1 + $0x18] sm:$0xff]  }
 0x981   :  { %12542 = vmatpush3.bf16.msra.mxu1 %v13248_v2  ;;  %v13281_v2 = vld [vmem:[%s17068_s1 + $0x8] sm:$0xff]  }
 0x982   :  { %12543 = vmatprep.subr.bf16.mxu1 %v13699_v35 }
 0x983   :  { %6268 = vmatpush1.bf16.msra.mxu0 %v13258_v5  ;;  %v13292_v5 = vld [vmem:[%s17068_s1 + $0x60] sm:$0xff]  }
 0x984   :  { %6269 = vmatprep.subr.bf16.mxu0 %v13266_v29  ;;  %v13293_v29 = vld [vmem:[%s17068_s1 + $0x20] sm:$0xff]  }
 0x985   :  { %12544 = vmatpush3.bf16.msra.mxu1 %v13249_v14  ;;  %v13283_v14 = vld [vmem:[%s17068_s1 + $0x88] sm:$0xff]  }
 0x986   :  { %12545 = vmatprep.subr.bf16.mxu1 %v13699_v35 }
 0x987   :  { %6270 = vmatpush1.bf16.msra.mxu0 %v13264_v6  ;;  %v13296_v6 = vld [vmem:[%s17068_s1 + $0x68] sm:$0xff]  }
 0x988   :  { %6271 = vmatprep.subr.bf16.mxu0 %v13272_v7  ;;  %v13297_v7 = vld [vmem:[%s17068_s1 + $0x28] sm:$0xff]  }
 0x989   :  { %12546 = vmatpush3.bf16.msra.mxu1 %v13250_v3  ;;  %v13284_v3 = vld [vmem:[%s17068_s1 + $0x50] sm:$0xff]  }
 0x98a   :  { %6306 = vmatprep.subr.bf16.mxu1 %v13257_v27  ;;  %v13290_v27 = vld [vmem:[%s17068_s1 + $0xd8] sm:$0xff]  }
 0x98b   :  { %6272 = vmatpush1.bf16.msra.mxu0 %v13270_v8  ;;  %v13299_v8 = vld [vmem:[%s17068_s1 + $0xa8] sm:$0xff]  }
 0x98c   :  { %12548 = vmatmul.mubr.msk.bf16.vlgmr.msra.gmra.mrb[92].mxu1 %vm342_vm1, %v13251_v26  ;;  %12093 = vmatprep.subr.bf16.mxu0 %v13276_v11  ;;  %v13286_v26 = vld [vmem:[%s17068_s1 + $0xd0] sm:$0xff]  }
 0x98d   :  { %6338 = vmatprep.mubr.bf16.mxu1 %v13701_v61  ;;  %6307 = vmatpush1.bf16.msra.mxu1 %v13255_v4  ;;  %v13288_v4 = vld [vmem:[%s17068_s1 + $0x58] sm:$0xff]   ;;  %v13301_v11 = vld [vmem:[%s17068_s1 + $0x30] sm:$0xff]  }
 0x98e   :  { %6308 = vmatprep.subr.bf16.mxu1 %v13263_v21  ;;  %v13291_v21 = vld [vmem:[%s17068_s1 + $0x98] sm:$0xff]  }
 0x991   :  { %6309 = vmatpush1.bf16.msra.mxu1 %v13261_v19  ;;  %v13294_v19 = vld [vmem:[%s17068_s1 + $0xe0] sm:$0xff]  }
 0x992   :  { %6310 = vmatprep.subr.bf16.mxu1 %v13269_v22  ;;  %v13295_v22 = vld [vmem:[%s17068_s1 + $0xa0] sm:$0xff]  }
 0x995   :  { %6311 = vmatpush1.bf16.msra.mxu1 %v13267_v30  ;;  %v13298_v30 = vld [vmem:[%s17068_s1 + $0xe8] sm:$0xff]  }
 0x996   :  { %6312 = vmatprep.subr.bf16.mxu1 %v13275_v9  ;;  %v13300_v9 = vld [vmem:[%s17068_s1 + $0x70] sm:$0xff]  }
 0x999   :  { %6313 = vmatpush1.bf16.msra.mxu1 %v13273_v10  ;;  %v13302_v10 = vld [vmem:[%s17068_s1 + $0xf0] sm:$0xff]  }
 0x99a   :  { %12115 = vmatprep.subr.bf16.mxu1 %v13278_v34  ;;  %v13303_v34 = vld [vmem:[%s17068_s1 + $0xb0] sm:$0xff]  }
 0xa2f   :  { %v5665_v20 = vpop.f32.mrb[84].mxu1  ;;  %v5706_v12 = vpop.f32.mrb[88].mxu0 }
 0xa30   :  { %v15733_v15 = vadd.f32 %v5665_v20, %v15532_v59  ;;  %v15736_v28 = vadd.f32 %v5706_v12, %v15535_v16  ;;  %v5667_v50 = vpop.f32.mrb[85].mxu1  ;;  %v5708_v31 = vpop.f32.mrb[89].mxu0  ;;  %v15747_v59 = vld [vmem:[%s17071_s2] ss:$0 sm:$0xff]  ;;  %v13304_v20 = vld [vmem:[%s17068_s1 + $0x78] sm:$0xff]  }
 0xa31   :  { %v15739_v53 = vadd.f32 %v5667_v50, %v15538_v17  ;;  %v15742_v32 = vadd.f32 %v5708_v31, %v15541_v13  ;;  %v5669_v51 = vpop.f32.mrb[86].mxu1  ;;  %v5710_v33 = vpop.f32.mrb[90].mxu0  ;;  %v13306_v12 = vld [vmem:[%s17068_s1 + $0xf8] sm:$0xff]  }
 0xa32   :  { %v5670_v54 = vpop.f32.mrb[87].mxu1  ;;  %v5711_v52 = vpop.f32.mrb[91].mxu0  ;;  %v13305_v50 = vld [vmem:[%s17068_s1 + $0x38] sm:$0xff]   ;;  %v11190_v51 = vcombine.low %v15753_v45, %v15753_v45  ;;  %v11192_v33 = vcombine.low %v15758_v46, %v15758_v46  ;;  %v13341_v46 = vld [vmem:[%s17068_s1 + $0x40] sm:$0xff]  }
 0xa33   :  { %v13309_v31 = vld [vmem:[%s17068_s1 + $0xb8] sm:$0xff]   ;;  %v13312_v54 = vld [vmem:[%s17068_s1 + $0x100] sm:$0xff]   ;;  %v13313_v52 = vld [vmem:[%s17068_s1 + $0x108] sm:$0xff]  }
 0xa34   :  { %v13338_v45 = vld [vmem:[%s17070_s3 + $0x568] ss:$16 sps:$4 sm:$0xff]  }
 0xa4f   :  { %v12060_v48 = vpop.f32.mrb[88].mxu1  ;;  %v12082_v36 = vpop.f32.mrb[92].mxu0 }
 0xa50   :  { %v12061_v16 = vpop.f32.mrb[89].mxu1  ;;  %v12083_v37 = vpop.f32.mrb[93].mxu0 }
 0xa51   :  { %v12062_v55 = vadd.f32 %v12061_v16, %v12060_v48  ;;  %v12063_v38 = vpop.f32.mrb[90].mxu1  ;;  %v12084_v17 = vadd.f32 %v12083_v37, %v12082_v36  ;;  %v12085_v57 = vpop.f32.mrb[94].mxu0  ;;  %v13314_v48 = vld [vmem:[%s17068_s1 + $0x110] sm:$0xff]   ;;  %v13315_v36 = vld [vmem:[%s17068_s1 + $0x118] sm:$0xff]  }
 0xa52   :  { %v12064_v39 = vpop.f32.mrb[91].mxu1  ;;  %v12086_v13 = vpop.f32.mrb[95].mxu0  ;;  %v13316_v16 = vld [vmem:[%s17069_s0 + $0xd8] ss:$0 sps:$4 sm:$0xff]   ;;  %v13317_v37 = vld [vmem:[%s17070_s3 + $0x500] ss:$16 sps:$4 sm:$0xff]  }
 0xa53   :  { %v6079_v60 = vadd.f32 %v12062_v55, %v15747_v59  ;;  %v13319_v55 = vld [vmem:[%s17070_s3 + $0x504] ss:$16 sps:$4 sm:$0xff]   ;;  %v13320_v38 = vld [vmem:[%s17070_s3 + $0x508] ss:$16 sps:$4 sm:$0xff]   ;;  %v13328_v39 = vld [vmem:[%s17070_s3 + $0x52c] ss:$16 sps:$4 sm:$0xff]  }
 0xa54   :  { %v13325_v57 = vld [vmem:[%s17070_s3 + $0x524] ss:$16 sps:$4 sm:$0xff]   ;;  %v13323_v13 = vld [vmem:[%s17070_s3 + $0x520] ss:$16 sps:$4 sm:$0xff]  }
 0xa55   :  { %v6119_v40 = vadd.f32 %v12084_v17, %v6079_v60  ;;  %v13322_v17 = vld [vmem:[%s17070_s3 + $0x50c] ss:$16 sps:$4 sm:$0xff]   ;;  %v13326_v60 = vld [vmem:[%s17070_s3 + $0x528] ss:$16 sps:$4 sm:$0xff]  }
 0xa5f   :  { %v6158_v58 = vpop.f32.mrb[92].mxu1 }
 0xa60   :  { %v6159_v62 = vadd.f32 %v6158_v58, %v6119_v40  ;;  %v12549_v41 = vpop.f32.mrb[93].mxu1  ;;  %v13331_v40 = vld [vmem:[%s17070_s3 + $0x544] ss:$16 sps:$4 sm:$0xff]   ;;  %v13334_v58 = vld [vmem:[%s17070_s3 + $0x54c] ss:$16 sps:$4 sm:$0xff]  }
 0xa61   :  { %v6161_v42 = vpop.f32.mrb[94].mxu1  ;;  %v13332_v41 = vld [vmem:[%s17070_s3 + $0x548] ss:$16 sps:$4 sm:$0xff]  }
 0xa62   :  { %v6164_v43 = vmax.f32 %v6159_v62, 0.0  ;;  %v12550_v44 = vpop.f32.mrb[95].mxu1  ;;  %v13329_v62 = vld [vmem:[%s17070_s3 + $0x540] ss:$16 sps:$4 sm:$0xff]   ;;  %v13337_v42 = vld [vmem:[%s17070_s3 + $0x564] ss:$16 sps:$4 sm:$0xff]  }
 0xa63   :  { %v13340_v44 = vld [vmem:[%s17070_s3 + $0x56c] ss:$16 sps:$4 sm:$0xff]  }
 0xa64   :  { %v6165_v56 = vpack.c.bf16 %v6164_v43, %v6164_v43  ;;  %v13335_v43 = vld [vmem:[%s17070_s3 + $0x560] ss:$16 sps:$4 sm:$0xff]  }
 0xa66   :  { %11184 = vmatmul.mubr.msk.bf16.vlgmr.msra.gmra.mrb[96].mxu0 %vm342_vm1, %v6165_v56  ;;  %11185 = vmatmul.mubr.msk.bf16.vlgmr.msra.gmra.mrb[96].mxu1 %vm342_vm1, %v6165_v56 }
 0xa67   :  { %12094 = vmatpush3.bf16.msra.mxu0 %v13277_v49  ;;  %12116 = vmatpush3.bf16.msra.mxu1 %v13279_v47  ;;  %v13343_v49 = vld [vmem:[%s17068_s1 + $0xc0] sm:$0xff]  }
 0xa68   :  { %12095 = vmatprep.subr.bf16.mxu0 %v13280_v63  ;;  %12117 = vmatprep.subr.bf16.mxu1 %v13282_v0 }
 0xa69   :  { %6710 = vmatprep.mubr.bf16.mxu0 %v11191_v1  ;;  %6750 = vmatprep.mubr.bf16.mxu1 %v11193_v23 }
 0xa6b   :  { %12096 = vmatpush3.bf16.msra.mxu0 %v13281_v2  ;;  %12118 = vmatpush3.bf16.msra.mxu1 %v13283_v14 }
 0xa6c   :  { %12097 = vmatprep.subr.bf16.mxu0 %v13284_v3  ;;  %12119 = vmatprep.subr.bf16.mxu1 %v13286_v26 }
 0xa6f   :  { %12098 = vmatpush3.bf16.msra.mxu0 %v13285_v18  ;;  %12120 = vmatpush3.bf16.msra.mxu1 %v13287_v24 }
 0xa70   :  { %12099 = vmatprep.subr.bf16.mxu0 %v13288_v4  ;;  %12121 = vmatprep.subr.bf16.mxu1 %v13290_v27 }
 0xa73   :  { %12100 = vmatpush3.bf16.msra.mxu0 %v13289_v25  ;;  %12122 = vmatpush3.bf16.msra.mxu1 %v13291_v21 }
 0xa74   :  { %12101 = vmatprep.subr.bf16.mxu0 %v13292_v5  ;;  %12123 = vmatprep.subr.bf16.mxu1 %v13294_v19 }
 0xa77   :  { %12102 = vmatpush3.bf16.msra.mxu0 %v13293_v29  ;;  %12124 = vmatpush3.bf16.msra.mxu1 %v13295_v22 }
 0xa78   :  { %12103 = vmatprep.subr.bf16.mxu0 %v13296_v6  ;;  %12125 = vmatprep.subr.bf16.mxu1 %v13298_v30 }
 0xa7b   :  { %12104 = vmatpush3.bf16.msra.mxu0 %v13297_v7  ;;  %12126 = vmatpush3.bf16.msra.mxu1 %v13299_v8 }
 0xa7c   :  { %12105 = vmatprep.subr.bf16.mxu0 %v13300_v9  ;;  %12127 = vmatprep.subr.bf16.mxu1 %v13302_v10 }
 0xa7f   :  { %12106 = vmatpush3.bf16.msra.mxu0 %v13301_v11  ;;  %12128 = vmatpush3.bf16.msra.mxu1 %v13303_v34  ;;  %v15954_v11 = vld [vmem:[%s17069_s0 + $0xdc] sm:$0xff]  ;;  %v15959_v34 = vld [vmem:[%s17069_s0 + $0xe4] sm:$0xff] }
 0xa80   :  { %12107 = vmatprep.subr.bf16.mxu0 %v13304_v20  ;;  %12129 = vmatprep.subr.bf16.mxu1 %v13306_v12  ;;  %v13342_v20 = vld [vmem:[%s17068_s1] sm:$0xff]  }
 0xa81   :  { %v13344_v12 = vld [vmem:[%s17068_s1 + $0x80] sm:$0xff]  }
 0xa83   :  { %12108 = vmatpush3.bf16.msra.mxu0 %v13305_v50  ;;  %12130 = vmatpush3.bf16.msra.mxu1 %v13309_v31  ;;  %v13345_v31 = vld [vmem:[%s17068_s1 + $0x48] sm:$0xff]  }
 0xa84   :  { %12551 = vmatprep.subr.bf16.mxu0 %v13699_v35  ;;  %6899 = vmatprep.subr.bf16.mxu1 %v13319_v55  ;;  %v13352_v55 = vld [vmem:[%s17068_s1 + $0x90] sm:$0xff]  }
 0xa86   :  { %6711 = vmatmul.mubr.bf16.vlgmr.msra.gmra.mrb[100].mxu0 %v11190_v51  ;;  %6751 = vmatmul.mubr.bf16.vlgmr.msra.gmra.mrb[100].mxu1 %v11192_v33  ;;  %v13347_v51 = vld [vmem:[%s17068_s1 + $0xc8] sm:$0xff]   ;;  %v11255_v33 = vcombine.high %v15954_v11, %v15954_v11 }
 0xa87   :  { %12552 = vmatpush3.bf16.msra.mxu0 %v13312_v54  ;;  %12559 = vmatprep.mubr.msk.bf16.mxu0 %vm13700_vm0, %v13699_v35  ;;  %v11257_v54 = vcombine.high %v15959_v34, %v15959_v34 }
 0xa88   :  { %12553 = vmatprep.subr.bf16.mxu0 %v13699_v35  ;;  %6931 = vmatprep.mubr.bf16.mxu1 %v13701_v61 }
 0xa89   :  { %6900 = vmatpush1.bf16.msra.mxu1 %v13317_v37  ;;  %v13350_v37 = vld [vmem:[%s17068_s1 + $0x10] sm:$0xff]  }
 0xa8a   :  { %6901 = vmatprep.subr.bf16.mxu1 %v13325_v57  ;;  %v13354_v57 = vld [vmem:[%s17068_s1 + $0x18] sm:$0xff]  }
 0xa8b   :  { %12554 = vmatpush3.bf16.msra.mxu0 %v13313_v52  ;;  %v13346_v52 = vld [vmem:[%s17068_s1 + $0x8] sm:$0xff]  }
 0xa8c   :  { %12555 = vmatprep.subr.bf16.mxu0 %v13699_v35 }
 0xa8d   :  { %6902 = vmatpush1.bf16.msra.mxu1 %v13323_v13  ;;  %v13357_v13 = vld [vmem:[%s17068_s1 + $0x60] sm:$0xff]  }
 0xa8e   :  { %6903 = vmatprep.subr.bf16.mxu1 %v13331_v40  ;;  %v13358_v40 = vld [vmem:[%s17068_s1 + $0x20] sm:$0xff]  }
 0xa8f   :  { %12556 = vmatpush3.bf16.msra.mxu0 %v13314_v48  ;;  %v13348_v48 = vld [vmem:[%s17068_s1 + $0x88] sm:$0xff]  }
 0xa90   :  { %12557 = vmatprep.subr.bf16.mxu0 %v13699_v35 }
 0xa91   :  { %6904 = vmatpush1.bf16.msra.mxu1 %v13329_v62  ;;  %v13361_v62 = vld [vmem:[%s17068_s1 + $0x68] sm:$0xff]  }
 0xa92   :  { %6905 = vmatprep.subr.bf16.mxu1 %v13337_v42  ;;  %v13362_v42 = vld [vmem:[%s17068_s1 + $0x28] sm:$0xff]  }
 0xa93   :  { %12558 = vmatpush3.bf16.msra.mxu0 %v13315_v36  ;;  %v13349_v36 = vld [vmem:[%s17068_s1 + $0x50] sm:$0xff]  }
 0xa94   :  { %6940 = vmatprep.subr.bf16.mxu0 %v13322_v17  ;;  %v13355_v17 = vld [vmem:[%s17068_s1 + $0xd8] sm:$0xff]  }
 0xa95   :  { %6906 = vmatpush1.bf16.msra.mxu1 %v13335_v43  ;;  %v13364_v43 = vld [vmem:[%s17068_s1 + $0xa8] sm:$0xff]  }
 0xa96   :  { %12560 = vmatmul.mubr.msk.bf16.vlgmr.msra.gmra.mrb[104].mxu0 %vm342_vm1, %v13316_v16  ;;  %12142 = vmatprep.subr.bf16.mxu1 %v13341_v46  ;;  %v13351_v16 = vld [vmem:[%s17068_s1 + $0xd0] sm:$0xff]  }
 0xa97   :  { %6972 = vmatprep.mubr.bf16.mxu0 %v13701_v61  ;;  %6941 = vmatpush1.bf16.msra.mxu0 %v13320_v38  ;;  %v13353_v38 = vld [vmem:[%s17068_s1 + $0x58] sm:$0xff]   ;;  %v13366_v46 = vld [vmem:[%s17068_s1 + $0x30] sm:$0xff]  }
 0xa98   :  { %6942 = vmatprep.subr.bf16.mxu0 %v13328_v39  ;;  %v13356_v39 = vld [vmem:[%s17068_s1 + $0x98] sm:$0xff]  }
 0xa9b   :  { %6943 = vmatpush1.bf16.msra.mxu0 %v13326_v60  ;;  %v13359_v60 = vld [vmem:[%s17068_s1 + $0xe0] sm:$0xff]  }
 0xa9c   :  { %6944 = vmatprep.subr.bf16.mxu0 %v13334_v58  ;;  %v13360_v58 = vld [vmem:[%s17068_s1 + $0xa0] sm:$0xff]  }
 0xa9f   :  { %6945 = vmatpush1.bf16.msra.mxu0 %v13332_v41  ;;  %v13363_v41 = vld [vmem:[%s17068_s1 + $0xe8] sm:$0xff]  }
 0xaa0   :  { %6946 = vmatprep.subr.bf16.mxu0 %v13340_v44  ;;  %v13365_v44 = vld [vmem:[%s17068_s1 + $0x70] sm:$0xff]  }
 0xaa3   :  { %6947 = vmatpush1.bf16.msra.mxu0 %v13338_v45  ;;  %v13367_v45 = vld [vmem:[%s17068_s1 + $0xf0] sm:$0xff]  }
 0xaa4   :  { %12164 = vmatprep.subr.bf16.mxu0 %v13343_v49  ;;  %v13368_v49 = vld [vmem:[%s17068_s1 + $0xb0] sm:$0xff]  }
 0xb39   :  { %v6299_v47 = vpop.f32.mrb[96].mxu0  ;;  %v6340_v56 = vpop.f32.mrb[96].mxu1 }
 0xb3a   :  { %v15939_v63 = vadd.f32 %v6299_v47, %v15733_v15  ;;  %v15942_v0 = vadd.f32 %v6340_v56, %v15736_v28  ;;  %v6301_v1 = vpop.f32.mrb[97].mxu0  ;;  %v6342_v23 = vpop.f32.mrb[97].mxu1  ;;  %v13369_v47 = vld [vmem:[%s17068_s1 + $0x78] sm:$0xff]  }
 0xb3b   :  { %v15945_v2 = vadd.f32 %v6301_v1, %v15739_v53  ;;  %v15948_v14 = vadd.f32 %v6342_v23, %v15742_v32  ;;  %v6303_v3 = vpop.f32.mrb[98].mxu0  ;;  %v6344_v26 = vpop.f32.mrb[98].mxu1  ;;  %v13371_v56 = vld [vmem:[%s17068_s1 + $0xf8] sm:$0xff]  }
 0xb3c   :  { %v6304_v18 = vpop.f32.mrb[99].mxu0  ;;  %v6345_v24 = vpop.f32.mrb[99].mxu1  ;;  %v13370_v1 = vld [vmem:[%s17068_s1 + $0x38] sm:$0xff]   ;;  %v11254_v3 = vcombine.low %v15954_v11, %v15954_v11  ;;  %v11256_v26 = vcombine.low %v15959_v34, %v15959_v34  ;;  %v13406_v34 = vld [vmem:[%s17068_s1 + $0x40] sm:$0xff]  }
 0xb3d   :  { %v13374_v23 = vld [vmem:[%s17068_s1 + $0xb8] sm:$0xff]   ;;  %v13377_v18 = vld [vmem:[%s17068_s1 + $0x100] sm:$0xff]   ;;  %v13378_v24 = vld [vmem:[%s17068_s1 + $0x108] sm:$0xff]  }
 0xb3e   :  { %v13403_v11 = vld [vmem:[%s17070_s3 + $0x5e8] ss:$16 sps:$4 sm:$0xff]  }
 0xb59   :  { %v12109_v4 = vpop.f32.mrb[100].mxu0  ;;  %v12131_v27 = vpop.f32.mrb[100].mxu1 }
 0xb5a   :  { %v12110_v25 = vpop.f32.mrb[101].mxu0  ;;  %v12132_v15 = vpop.f32.mrb[101].mxu1 }
 0xb5b   :  { %v12111_v21 = vadd.f32 %v12110_v25, %v12109_v4  ;;  %v12112_v5 = vpop.f32.mrb[102].mxu0  ;;  %v12133_v28 = vadd.f32 %v12132_v15, %v12131_v27  ;;  %v12134_v19 = vpop.f32.mrb[102].mxu1  ;;  %v13379_v4 = vld [vmem:[%s17068_s1 + $0x110] sm:$0xff]   ;;  %v13380_v27 = vld [vmem:[%s17068_s1 + $0x118] sm:$0xff]   ;;  %v13381_v25 = vld [vmem:[%s17069_s0 + $0xec] ss:$0 sps:$4 sm:$0xff]  }
 0xb5c   :  { %v12113_v29 = vpop.f32.mrb[103].mxu0  ;;  %v12135_v22 = vpop.f32.mrb[103].mxu1  ;;  %v13382_v15 = vld [vmem:[%s17070_s3 + $0x580] ss:$16 sps:$4 sm:$0xff]   ;;  %v13385_v5 = vld [vmem:[%s17070_s3 + $0x588] ss:$16 sps:$4 sm:$0xff]  }
 0xb5d   :  { %v6713_v53 = vadd.f32 %v12111_v21, %v15747_v59  ;;  %v13384_v21 = vld [vmem:[%s17070_s3 + $0x584] ss:$16 sps:$4 sm:$0xff]   ;;  %v13393_v29 = vld [vmem:[%s17070_s3 + $0x5ac] ss:$16 sps:$4 sm:$0xff]   ;;  %v13388_v22 = vld [vmem:[%s17070_s3 + $0x5a0] ss:$16 sps:$4 sm:$0xff]  }
 0xb5e   :  { %v13390_v19 = vld [vmem:[%s17070_s3 + $0x5a4] ss:$16 sps:$4 sm:$0xff]  }
 0xb5f   :  { %v6753_v6 = vadd.f32 %v12133_v28, %v6713_v53  ;;  %v13387_v28 = vld [vmem:[%s17070_s3 + $0x58c] ss:$16 sps:$4 sm:$0xff]   ;;  %v13391_v53 = vld [vmem:[%s17070_s3 + $0x5a8] ss:$16 sps:$4 sm:$0xff]  }
 0xb69   :  { %v6792_v30 = vpop.f32.mrb[104].mxu0 }
 0xb6a   :  { %v6793_v32 = vadd.f32 %v6792_v30, %v6753_v6  ;;  %v12561_v7 = vpop.f32.mrb[105].mxu0  ;;  %v13396_v6 = vld [vmem:[%s17070_s3 + $0x5c4] ss:$16 sps:$4 sm:$0xff]   ;;  %v13399_v30 = vld [vmem:[%s17070_s3 + $0x5cc] ss:$16 sps:$4 sm:$0xff]  }
 0xb6b   :  { %v6795_v8 = vpop.f32.mrb[106].mxu0  ;;  %v13397_v7 = vld [vmem:[%s17070_s3 + $0x5c8] ss:$16 sps:$4 sm:$0xff]  }
 0xb6c   :  { %v6798_v9 = vmax.f32 %v6793_v32, 0.0  ;;  %v12562_v10 = vpop.f32.mrb[107].mxu0  ;;  %v13394_v32 = vld [vmem:[%s17070_s3 + $0x5c0] ss:$16 sps:$4 sm:$0xff]   ;;  %v13402_v8 = vld [vmem:[%s17070_s3 + $0x5e4] ss:$16 sps:$4 sm:$0xff]  }
 0xb6d   :  { %v13405_v10 = vld [vmem:[%s17070_s3 + $0x5ec] ss:$16 sps:$4 sm:$0xff]  }
 0xb6e   :  { %v6799_v50 = vpack.c.bf16 %v6798_v9, %v6798_v9  ;;  %v13400_v9 = vld [vmem:[%s17070_s3 + $0x5e0] ss:$16 sps:$4 sm:$0xff]  }
 0xb70   :  { %11248 = vmatmul.mubr.msk.bf16.vlgmr.msra.gmra.mrb[104].mxu1 %vm342_vm1, %v6799_v50  ;;  %11249 = vmatmul.mubr.msk.bf16.vlgmr.msra.gmra.mrb[108].mxu0 %vm342_vm1, %v6799_v50 }
 0xb71   :  { %12143 = vmatpush3.bf16.msra.mxu1 %v13342_v20  ;;  %12165 = vmatpush3.bf16.msra.mxu0 %v13344_v12  ;;  %v13408_v20 = vld [vmem:[%s17068_s1 + $0xc0] sm:$0xff]  }
 0xb72   :  { %12144 = vmatprep.subr.bf16.mxu1 %v13345_v31  ;;  %12166 = vmatprep.subr.bf16.mxu0 %v13347_v51 }
 0xb73   :  { %7344 = vmatprep.mubr.bf16.mxu1 %v11255_v33  ;;  %7384 = vmatprep.mubr.bf16.mxu0 %v11257_v54 }
 0xb75   :  { %12145 = vmatpush3.bf16.msra.mxu1 %v13346_v52  ;;  %12167 = vmatpush3.bf16.msra.mxu0 %v13348_v48 }
 0xb76   :  { %12146 = vmatprep.subr.bf16.mxu1 %v13349_v36  ;;  %12168 = vmatprep.subr.bf16.mxu0 %v13351_v16 }
 0xb79   :  { %12147 = vmatpush3.bf16.msra.mxu1 %v13350_v37  ;;  %12169 = vmatpush3.bf16.msra.mxu0 %v13352_v55 }
 0xb7a   :  { %12148 = vmatprep.subr.bf16.mxu1 %v13353_v38  ;;  %12170 = vmatprep.subr.bf16.mxu0 %v13355_v17 }
 0xb7d   :  { %12149 = vmatpush3.bf16.msra.mxu1 %v13354_v57  ;;  %12171 = vmatpush3.bf16.msra.mxu0 %v13356_v39 }
 0xb7e   :  { %12150 = vmatprep.subr.bf16.mxu1 %v13357_v13  ;;  %12172 = vmatprep.subr.bf16.mxu0 %v13359_v60 }
 0xb81   :  { %12151 = vmatpush3.bf16.msra.mxu1 %v13358_v40  ;;  %12173 = vmatpush3.bf16.msra.mxu0 %v13360_v58 }
 0xb82   :  { %12152 = vmatprep.subr.bf16.mxu1 %v13361_v62  ;;  %12174 = vmatprep.subr.bf16.mxu0 %v13363_v41 }
 0xb85   :  { %12153 = vmatpush3.bf16.msra.mxu1 %v13362_v42  ;;  %12175 = vmatpush3.bf16.msra.mxu0 %v13364_v43 }
 0xb86   :  { %12154 = vmatprep.subr.bf16.mxu1 %v13365_v44  ;;  %12176 = vmatprep.subr.bf16.mxu0 %v13367_v45 }
 0xb89   :  { %12155 = vmatpush3.bf16.msra.mxu1 %v13366_v46  ;;  %12177 = vmatpush3.bf16.msra.mxu0 %v13368_v49  ;;  %v16155_v46 = vld [vmem:[%s17069_s0 + $0xf0] sm:$0xff]  ;;  %v16160_v49 = vld [vmem:[%s17069_s0 + $0xf8] sm:$0xff] }
 0xb8a   :  { %12156 = vmatprep.subr.bf16.mxu1 %v13369_v47  ;;  %12178 = vmatprep.subr.bf16.mxu0 %v13371_v56  ;;  %v13409_v47 = vld [vmem:[%s17068_s1 + $0x80] sm:$0xff]  }
 0xb8d   :  { %12157 = vmatpush3.bf16.msra.mxu1 %v13370_v1  ;;  %12179 = vmatpush3.bf16.msra.mxu0 %v13374_v23  ;;  %v13410_v1 = vld [vmem:[%s17068_s1 + $0x48] sm:$0xff]  }
 0xb8e   :  { %12563 = vmatprep.subr.bf16.mxu1 %v13699_v35  ;;  %7533 = vmatprep.subr.bf16.mxu0 %v13384_v21  ;;  %v13412_v23 = vld [vmem:[%s17068_s1 + $0xc8] sm:$0xff]   ;;  %v13418_v21 = vld [vmem:[%s17068_s1 + $0x58] sm:$0xff]  }
 0xb90   :  { %7345 = vmatmul.mubr.bf16.vlgmr.msra.gmra.mrb[108].mxu1 %v11254_v3  ;;  %7385 = vmatmul.mubr.bf16.vlgmr.msra.gmra.mrb[112].mxu0 %v11256_v26  ;;  %v11319_v3 = vcombine.high %v16155_v46, %v16155_v46  ;;  %v11321_v26 = vcombine.high %v16160_v49, %v16160_v49 }
 0xb91   :  { %12564 = vmatpush3.bf16.msra.mxu1 %v13377_v18  ;;  %12571 = vmatprep.mubr.msk.bf16.mxu1 %vm13700_vm0, %v13699_v35  ;;  %v13411_v18 = vld [vmem:[%s17068_s1 + $0x8] sm:$0xff]  }
 0xb92   :  { %12565 = vmatprep.subr.bf16.mxu1 %v13699_v35  ;;  %7565 = vmatprep.mubr.bf16.mxu0 %v13701_v61 }
 0xb93   :  { %7534 = vmatpush1.bf16.msra.mxu0 %v13382_v15  ;;  %v13417_v15 = vld [vmem:[%s17068_s1 + $0x90] sm:$0xff]  }
 0xb94   :  { %7535 = vmatprep.subr.bf16.mxu0 %v13390_v19  ;;  %v13421_v19 = vld [vmem:[%s17068_s1 + $0x98] sm:$0xff]  }
 0xb95   :  { %12566 = vmatpush3.bf16.msra.mxu1 %v13378_v24  ;;  %v13413_v24 = vld [vmem:[%s17068_s1 + $0x88] sm:$0xff]  }
 0xb96   :  { %12567 = vmatprep.subr.bf16.mxu1 %v13699_v35 }
 0xb97   :  { %7536 = vmatpush1.bf16.msra.mxu0 %v13388_v22  ;;  %v13424_v22 = vld [vmem:[%s17068_s1 + $0xe0] sm:$0xff]  }
 0xb98   :  { %7537 = vmatprep.subr.bf16.mxu0 %v13396_v6  ;;  %v13425_v6 = vld [vmem:[%s17068_s1 + $0xa0] sm:$0xff]  }
 0xb99   :  { %12568 = vmatpush3.bf16.msra.mxu1 %v13379_v4  ;;  %v13414_v4 = vld [vmem:[%s17068_s1 + $0x50] sm:$0xff]  }
 0xb9a   :  { %12569 = vmatprep.subr.bf16.mxu1 %v13699_v35 }
 0xb9b   :  { %7538 = vmatpush1.bf16.msra.mxu0 %v13394_v32  ;;  %v13428_v32 = vld [vmem:[%s17068_s1 + $0xe8] sm:$0xff]  }
 0xb9c   :  { %7539 = vmatprep.subr.bf16.mxu0 %v13402_v8  ;;  %v13429_v8 = vld [vmem:[%s17068_s1 + $0xa8] sm:$0xff]  }
 0xb9d   :  { %12570 = vmatpush3.bf16.msra.mxu1 %v13380_v27  ;;  %v13416_v27 = vld [vmem:[%s17068_s1 + $0xd0] sm:$0xff]  }
 0xb9e   :  { %7574 = vmatprep.subr.bf16.mxu1 %v13387_v28  ;;  %v13419_v28 = vld [vmem:[%s17068_s1 + $0x18] sm:$0xff]  }
 0xb9f   :  { %7540 = vmatpush1.bf16.msra.mxu0 %v13400_v9  ;;  %v13430_v9 = vld [vmem:[%s17068_s1 + $0x70] sm:$0xff]  }
 0xba0   :  { %12572 = vmatmul.mubr.msk.bf16.vlgmr.msra.gmra.mrb[112].mxu1 %vm342_vm1, %v13381_v25  ;;  %12191 = vmatprep.subr.bf16.mxu0 %v13406_v34  ;;  %v13415_v25 = vld [vmem:[%s17068_s1 + $0x10] sm:$0xff]  }
 0xba1   :  { %7606 = vmatprep.mubr.bf16.mxu1 %v13701_v61  ;;  %7575 = vmatpush1.bf16.msra.mxu1 %v13385_v5  ;;  %v13420_v5 = vld [vmem:[%s17068_s1 + $0xd8] sm:$0xff]   ;;  %v13433_v34 = vld [vmem:[%s17068_s1 + $0xb0] sm:$0xff]  }
 0xba2   :  { %7576 = vmatprep.subr.bf16.mxu1 %v13393_v29  ;;  %v13422_v29 = vld [vmem:[%s17068_s1 + $0x60] sm:$0xff]  }
 0xba5   :  { %7577 = vmatpush1.bf16.msra.mxu1 %v13391_v53  ;;  %v13423_v53 = vld [vmem:[%s17068_s1 + $0x20] sm:$0xff]  }
 0xba6   :  { %7578 = vmatprep.subr.bf16.mxu1 %v13399_v30  ;;  %v13426_v30 = vld [vmem:[%s17068_s1 + $0x68] sm:$0xff]  }
 0xba9   :  { %7579 = vmatpush1.bf16.msra.mxu1 %v13397_v7  ;;  %v13427_v7 = vld [vmem:[%s17068_s1 + $0x28] sm:$0xff]  }
 0xbaa   :  { %7580 = vmatprep.subr.bf16.mxu1 %v13405_v10  ;;  %v13432_v10 = vld [vmem:[%s17068_s1 + $0xf0] sm:$0xff]  }
 0xbad   :  { %7581 = vmatpush1.bf16.msra.mxu1 %v13403_v11  ;;  %v13431_v11 = vld [vmem:[%s17068_s1 + $0x30] sm:$0xff]  }
 0xbae   :  { %12213 = vmatprep.subr.bf16.mxu1 %v13408_v20  ;;  %v13434_v20 = vld [vmem:[%s17068_s1 + $0x78] sm:$0xff]  }
 0xc43   :  { %v6933_v12 = vpop.f32.mrb[104].mxu1  ;;  %v6974_v50 = vpop.f32.mrb[108].mxu0 }
 0xc44   :  { %v16140_v31 = vadd.f32 %v6933_v12, %v15939_v63  ;;  %v16143_v51 = vadd.f32 %v6974_v50, %v15942_v0  ;;  %v6935_v33 = vpop.f32.mrb[105].mxu1  ;;  %v6976_v54 = vpop.f32.mrb[109].mxu0  ;;  %v13436_v12 = vld [vmem:[%s17068_s1 + $0xf8] sm:$0xff]  }
 0xc45   :  { %v16146_v52 = vadd.f32 %v6935_v33, %v15945_v2  ;;  %v16149_v48 = vadd.f32 %v6976_v54, %v15948_v14  ;;  %v6937_v36 = vpop.f32.mrb[106].mxu1  ;;  %v6978_v16 = vpop.f32.mrb[110].mxu0  ;;  %v13435_v50 = vld [vmem:[%s17068_s1 + $0x38] sm:$0xff]   ;;  %v11318_v54 = vcombine.low %v16155_v46, %v16155_v46  ;;  %v13471_v46 = vld [vmem:[%s17068_s1 + $0x40] sm:$0xff]  }
 0xc46   :  { %v6938_v37 = vpop.f32.mrb[107].mxu1  ;;  %v6979_v55 = vpop.f32.mrb[111].mxu0  ;;  %v13439_v33 = vld [vmem:[%s17068_s1 + $0xb8] sm:$0xff]   ;;  %v11320_v36 = vcombine.low %v16160_v49, %v16160_v49  ;;  %v13442_v16 = vld [vmem:[%s17068_s1 + $0x100] sm:$0xff]  }
 0xc47   :  { %v13443_v37 = vld [vmem:[%s17068_s1 + $0x108] sm:$0xff]   ;;  %v13444_v55 = vld [vmem:[%s17068_s1 + $0x110] sm:$0xff]   ;;  %v13473_v49 = vld [vmem:[%s17068_s1 + $0xc0] sm:$0xff]  }
 0xc63   :  { %v12158_v38 = vpop.f32.mrb[108].mxu1  ;;  %v12180_v17 = vpop.f32.mrb[112].mxu0 }
 0xc64   :  { %v12159_v57 = vpop.f32.mrb[109].mxu1  ;;  %v12181_v63 = vpop.f32.mrb[113].mxu0 }
 0xc65   :  { %v12160_v39 = vadd.f32 %v12159_v57, %v12158_v38  ;;  %v12161_v13 = vpop.f32.mrb[110].mxu1  ;;  %v12182_v0 = vadd.f32 %v12181_v63, %v12180_v17  ;;  %v12183_v60 = vpop.f32.mrb[114].mxu0  ;;  %v13445_v38 = vld [vmem:[%s17068_s1 + $0x118] sm:$0xff]   ;;  %v13446_v17 = vld [vmem:[%s17069_s0 + $0x100] ss:$0 sps:$4 sm:$0xff]  }
 0xc66   :  { %v12162_v40 = vpop.f32.mrb[111].mxu1  ;;  %v12184_v58 = vpop.f32.mrb[115].mxu0  ;;  %v13447_v57 = vld [vmem:[%s17070_s3 + $0x600] ss:$16 sps:$4 sm:$0xff]   ;;  %v13449_v63 = vld [vmem:[%s17070_s3 + $0x604] ss:$16 sps:$4 sm:$0xff]  }
 0xc67   :  { %v7347_v2 = vadd.f32 %v12160_v39, %v15747_v59  ;;  %v13407_v59 = vld [vmem:[%s17068_s1] sm:$0xff]   ;;  %v13450_v39 = vld [vmem:[%s17070_s3 + $0x608] ss:$16 sps:$4 sm:$0xff]   ;;  %v13452_v13 = vld [vmem:[%s17070_s3 + $0x60c] ss:$16 sps:$4 sm:$0xff]  }
 0xc68   :  { %v13458_v60 = vld [vmem:[%s17070_s3 + $0x62c] ss:$16 sps:$4 sm:$0xff]   ;;  %v13453_v40 = vld [vmem:[%s17070_s3 + $0x620] ss:$16 sps:$4 sm:$0xff]   ;;  %v13456_v58 = vld [vmem:[%s17070_s3 + $0x628] ss:$16 sps:$4 sm:$0xff]  }
 0xc69   :  { %v7387_v62 = vadd.f32 %v12182_v0, %v7347_v2  ;;  %v13455_v0 = vld [vmem:[%s17070_s3 + $0x624] ss:$16 sps:$4 sm:$0xff]  }
 0xc6a   :  { %v13461_v2 = vld [vmem:[%s17070_s3 + $0x644] ss:$16 sps:$4 sm:$0xff]  }
 0xc73   :  { %v7426_v41 = vpop.f32.mrb[112].mxu1 }
 0xc74   :  { %v7427_v14 = vadd.f32 %v7426_v41, %v7387_v62  ;;  %v12573_v42 = vpop.f32.mrb[113].mxu1  ;;  %v13464_v62 = vld [vmem:[%s17070_s3 + $0x64c] ss:$16 sps:$4 sm:$0xff]   ;;  %v13459_v41 = vld [vmem:[%s17070_s3 + $0x640] ss:$16 sps:$4 sm:$0xff]  }
 0xc75   :  { %v7429_v43 = vpop.f32.mrb[114].mxu1  ;;  %v13467_v42 = vld [vmem:[%s17070_s3 + $0x664] ss:$16 sps:$4 sm:$0xff]  }
 0xc76   :  { %v7432_v44 = vmax.f32 %v7427_v14, 0.0  ;;  %v12574_v45 = vpop.f32.mrb[115].mxu1  ;;  %v13462_v14 = vld [vmem:[%s17070_s3 + $0x648] ss:$16 sps:$4 sm:$0xff]   ;;  %v13465_v43 = vld [vmem:[%s17070_s3 + $0x660] ss:$16 sps:$4 sm:$0xff]  }
 0xc77   :  { %v13468_v45 = vld [vmem:[%s17070_s3 + $0x668] ss:$16 sps:$4 sm:$0xff]  }
 0xc78   :  { %v7433_v56 = vpack.c.bf16 %v7432_v44, %v7432_v44  ;;  %v13470_v44 = vld [vmem:[%s17070_s3 + $0x66c] ss:$16 sps:$4 sm:$0xff]  }
 0xc7a   :  { %11312 = vmatmul.mubr.msk.bf16.vlgmr.msra.gmra.mrb[116].mxu0 %vm342_vm1, %v7433_v56  ;;  %11313 = vmatmul.mubr.msk.bf16.vlgmr.msra.gmra.mrb[116].mxu1 %vm342_vm1, %v7433_v56 }
 0xc7b   :  { %12192 = vmatpush3.bf16.msra.mxu0 %v13407_v59  ;;  %12214 = vmatpush3.bf16.msra.mxu1 %v13409_v47 }
 0xc7c   :  { %12193 = vmatprep.subr.bf16.mxu0 %v13410_v1  ;;  %12215 = vmatprep.subr.bf16.mxu1 %v13412_v23 }
 0xc7d   :  { %7978 = vmatprep.mubr.bf16.mxu0 %v11319_v3  ;;  %8018 = vmatprep.mubr.bf16.mxu1 %v11321_v26 }
 0xc7f   :  { %12194 = vmatpush3.bf16.msra.mxu0 %v13411_v18  ;;  %12216 = vmatpush3.bf16.msra.mxu1 %v13413_v24 }
 0xc80   :  { %12195 = vmatprep.subr.bf16.mxu0 %v13414_v4  ;;  %12217 = vmatprep.subr.bf16.mxu1 %v13416_v27 }
 0xc83   :  { %12196 = vmatpush3.bf16.msra.mxu0 %v13415_v25  ;;  %12218 = vmatpush3.bf16.msra.mxu1 %v13417_v15 }
 0xc84   :  { %12197 = vmatprep.subr.bf16.mxu0 %v13418_v21  ;;  %12219 = vmatprep.subr.bf16.mxu1 %v13420_v5 }
 0xc87   :  { %12198 = vmatpush3.bf16.msra.mxu0 %v13419_v28  ;;  %12220 = vmatpush3.bf16.msra.mxu1 %v13421_v19 }
 0xc88   :  { %12199 = vmatprep.subr.bf16.mxu0 %v13422_v29  ;;  %12221 = vmatprep.subr.bf16.mxu1 %v13424_v22 }
 0xc8b   :  { %12200 = vmatpush3.bf16.msra.mxu0 %v13423_v53  ;;  %12222 = vmatpush3.bf16.msra.mxu1 %v13425_v6 }
 0xc8c   :  { %12201 = vmatprep.subr.bf16.mxu0 %v13426_v30  ;;  %12223 = vmatprep.subr.bf16.mxu1 %v13428_v32 }
 0xc8f   :  { %12202 = vmatpush3.bf16.msra.mxu0 %v13427_v7  ;;  %12224 = vmatpush3.bf16.msra.mxu1 %v13429_v8 }
 0xc90   :  { %12203 = vmatprep.subr.bf16.mxu0 %v13430_v9  ;;  %12225 = vmatprep.subr.bf16.mxu1 %v13432_v10 }
 0xc93   :  { %12204 = vmatpush3.bf16.msra.mxu0 %v13431_v11  ;;  %12226 = vmatpush3.bf16.msra.mxu1 %v13433_v34  ;;  %v16361_v11 = vld [vmem:[%s17069_s0 + $0x104] sm:$0xff]  ;;  %v16366_v34 = vld [vmem:[%s17069_s0 + $0x10c] sm:$0xff] }
 0xc94   :  { %12205 = vmatprep.subr.bf16.mxu0 %v13434_v20  ;;  %12227 = vmatprep.subr.bf16.mxu1 %v13436_v12  ;;  %v13472_v20 = vld [vmem:[%s17068_s1] sm:$0xff]  }
 0xc95   :  { %v13474_v12 = vld [vmem:[%s17068_s1 + $0x80] sm:$0xff]  }
 0xc97   :  { %12206 = vmatpush3.bf16.msra.mxu0 %v13435_v50  ;;  %12228 = vmatpush3.bf16.msra.mxu1 %v13439_v33  ;;  %v13475_v33 = vld [vmem:[%s17068_s1 + $0x48] sm:$0xff]  }
 0xc98   :  { %12575 = vmatprep.subr.bf16.mxu0 %v13699_v35  ;;  %8167 = vmatprep.subr.bf16.mxu1 %v13449_v63  ;;  %v13482_v63 = vld [vmem:[%s17068_s1 + $0x90] sm:$0xff]  }
 0xc9a   :  { %7979 = vmatmul.mubr.bf16.vlgmr.msra.gmra.mrb[120].mxu0 %v11318_v54  ;;  %8019 = vmatmul.mubr.bf16.vlgmr.msra.gmra.mrb[120].mxu1 %v11320_v36  ;;  %v13477_v54 = vld [vmem:[%s17068_s1 + $0xc8] sm:$0xff]   ;;  %v11383_v36 = vcombine.high %v16361_v11, %v16361_v11 }
 0xc9b   :  { %12576 = vmatpush3.bf16.msra.mxu0 %v13442_v16  ;;  %12583 = vmatprep.mubr.msk.bf16.mxu0 %vm13700_vm0, %v13699_v35  ;;  %v11385_v16 = vcombine.high %v16366_v34, %v16366_v34 }
 0xc9c   :  { %12577 = vmatprep.subr.bf16.mxu0 %v13699_v35  ;;  %8199 = vmatprep.mubr.bf16.mxu1 %v13701_v61 }
 0xc9d   :  { %8168 = vmatpush1.bf16.msra.mxu1 %v13447_v57  ;;  %v13480_v57 = vld [vmem:[%s17068_s1 + $0x10] sm:$0xff]  }
 0xc9e   :  { %8169 = vmatprep.subr.bf16.mxu1 %v13455_v0  ;;  %v13484_v0 = vld [vmem:[%s17068_s1 + $0x18] sm:$0xff]  }
 0xc9f   :  { %12578 = vmatpush3.bf16.msra.mxu0 %v13443_v37  ;;  %v13476_v37 = vld [vmem:[%s17068_s1 + $0x8] sm:$0xff]  }
 0xca0   :  { %12579 = vmatprep.subr.bf16.mxu0 %v13699_v35 }
 0xca1   :  { %8170 = vmatpush1.bf16.msra.mxu1 %v13453_v40  ;;  %v13487_v40 = vld [vmem:[%s17068_s1 + $0x60] sm:$0xff]  }
 0xca2   :  { %8171 = vmatprep.subr.bf16.mxu1 %v13461_v2  ;;  %v13488_v2 = vld [vmem:[%s17068_s1 + $0x20] sm:$0xff]  }
 0xca3   :  { %12580 = vmatpush3.bf16.msra.mxu0 %v13444_v55  ;;  %v13478_v55 = vld [vmem:[%s17068_s1 + $0x88] sm:$0xff]  }
 0xca4   :  { %12581 = vmatprep.subr.bf16.mxu0 %v13699_v35 }
 0xca5   :  { %8172 = vmatpush1.bf16.msra.mxu1 %v13459_v41  ;;  %v13491_v41 = vld [vmem:[%s17068_s1 + $0x68] sm:$0xff]  }
 0xca6   :  { %8173 = vmatprep.subr.bf16.mxu1 %v13467_v42  ;;  %v13492_v42 = vld [vmem:[%s17068_s1 + $0x28] sm:$0xff]  }
 0xca7   :  { %12582 = vmatpush3.bf16.msra.mxu0 %v13445_v38  ;;  %v13479_v38 = vld [vmem:[%s17068_s1 + $0x50] sm:$0xff]  }
 0xca8   :  { %8208 = vmatprep.subr.bf16.mxu0 %v13452_v13  ;;  %v13485_v13 = vld [vmem:[%s17068_s1 + $0xd8] sm:$0xff]  }
 0xca9   :  { %8174 = vmatpush1.bf16.msra.mxu1 %v13465_v43  ;;  %v13494_v43 = vld [vmem:[%s17068_s1 + $0xa8] sm:$0xff]  }
 0xcaa   :  { %12584 = vmatmul.mubr.msk.bf16.vlgmr.msra.gmra.mrb[124].mxu0 %vm342_vm1, %v13446_v17  ;;  %12240 = vmatprep.subr.bf16.mxu1 %v13471_v46  ;;  %v13481_v17 = vld [vmem:[%s17068_s1 + $0xd0] sm:$0xff]  }
 0xcab   :  { %8240 = vmatprep.mubr.bf16.mxu0 %v13701_v61  ;;  %8209 = vmatpush1.bf16.msra.mxu0 %v13450_v39  ;;  %v13483_v39 = vld [vmem:[%s17068_s1 + $0x58] sm:$0xff]   ;;  %v13496_v46 = vld [vmem:[%s17068_s1 + $0x30] sm:$0xff]  }
 0xcac   :  { %8210 = vmatprep.subr.bf16.mxu0 %v13458_v60  ;;  %v13486_v60 = vld [vmem:[%s17068_s1 + $0x98] sm:$0xff]  }
 0xcaf   :  { %8211 = vmatpush1.bf16.msra.mxu0 %v13456_v58  ;;  %v13489_v58 = vld [vmem:[%s17068_s1 + $0xe0] sm:$0xff]  }
 0xcb0   :  { %8212 = vmatprep.subr.bf16.mxu0 %v13464_v62  ;;  %v13490_v62 = vld [vmem:[%s17068_s1 + $0xa0] sm:$0xff]  }
 0xcb3   :  { %8213 = vmatpush1.bf16.msra.mxu0 %v13462_v14  ;;  %v13493_v14 = vld [vmem:[%s17068_s1 + $0xe8] sm:$0xff]  }
 0xcb4   :  { %8214 = vmatprep.subr.bf16.mxu0 %v13470_v44  ;;  %v13495_v44 = vld [vmem:[%s17068_s1 + $0x70] sm:$0xff]  }
 0xcb7   :  { %8215 = vmatpush1.bf16.msra.mxu0 %v13468_v45  ;;  %v13497_v45 = vld [vmem:[%s17068_s1 + $0xf0] sm:$0xff]  }
 0xcb8   :  { %12262 = vmatprep.subr.bf16.mxu0 %v13473_v49  ;;  %v13498_v49 = vld [vmem:[%s17068_s1 + $0xb0] sm:$0xff]  }
 0xd4d   :  { %v7567_v59 = vpop.f32.mrb[116].mxu0  ;;  %v7608_v47 = vpop.f32.mrb[116].mxu1 }
 0xd4e   :  { %v16341_v56 = vadd.f32 %v7567_v59, %v16140_v31  ;;  %v16344_v1 = vadd.f32 %v7608_v47, %v16143_v51  ;;  %v7569_v23 = vpop.f32.mrb[117].mxu0  ;;  %v7610_v3 = vpop.f32.mrb[117].mxu1  ;;  %v16355_v31 = vld [vmem:[%s17071_s2] ss:$0 sm:$0xff]  ;;  %v13499_v59 = vld [vmem:[%s17068_s1 + $0x78] sm:$0xff]  }
 0xd4f   :  { %v16347_v26 = vadd.f32 %v7569_v23, %v16146_v52  ;;  %v16350_v18 = vadd.f32 %v7610_v3, %v16149_v48  ;;  %v7571_v24 = vpop.f32.mrb[118].mxu0  ;;  %v7612_v4 = vpop.f32.mrb[118].mxu1  ;;  %v13501_v47 = vld [vmem:[%s17068_s1 + $0xf8] sm:$0xff]  }
 0xd50   :  { %v7572_v27 = vpop.f32.mrb[119].mxu0  ;;  %v7613_v25 = vpop.f32.mrb[119].mxu1  ;;  %v13500_v23 = vld [vmem:[%s17068_s1 + $0x38] sm:$0xff]   ;;  %v11382_v24 = vcombine.low %v16361_v11, %v16361_v11  ;;  %v11384_v4 = vcombine.low %v16366_v34, %v16366_v34  ;;  %v13536_v34 = vld [vmem:[%s17068_s1 + $0x40] sm:$0xff]  }
 0xd51   :  { %v13504_v3 = vld [vmem:[%s17068_s1 + $0xb8] sm:$0xff]   ;;  %v13507_v27 = vld [vmem:[%s17068_s1 + $0x100] sm:$0xff]   ;;  %v13508_v25 = vld [vmem:[%s17068_s1 + $0x108] sm:$0xff]  }
 0xd52   :  { %v13533_v11 = vld [vmem:[%s17070_s3 + $0x6e8] ss:$16 sps:$4 sm:$0xff]  }
 0xd6d   :  { %v12207_v15 = vpop.f32.mrb[120].mxu0  ;;  %v12229_v21 = vpop.f32.mrb[120].mxu1 }
 0xd6e   :  { %v12208_v51 = vpop.f32.mrb[121].mxu0  ;;  %v12230_v5 = vpop.f32.mrb[121].mxu1 }
 0xd6f   :  { %v12209_v28 = vadd.f32 %v12208_v51, %v12207_v15  ;;  %v12210_v19 = vpop.f32.mrb[122].mxu0  ;;  %v12231_v52 = vadd.f32 %v12230_v5, %v12229_v21  ;;  %v12232_v29 = vpop.f32.mrb[122].mxu1  ;;  %v13509_v15 = vld [vmem:[%s17068_s1 + $0x110] sm:$0xff]   ;;  %v13510_v21 = vld [vmem:[%s17068_s1 + $0x118] sm:$0xff]  }
 0xd70   :  { %v12211_v22 = vpop.f32.mrb[123].mxu0  ;;  %v12233_v48 = vpop.f32.mrb[123].mxu1  ;;  %v13511_v51 = vld [vmem:[%s17069_s0 + $0x114] ss:$0 sps:$4 sm:$0xff]   ;;  %v13512_v5 = vld [vmem:[%s17070_s3 + $0x680] ss:$16 sps:$4 sm:$0xff]  }
 0xd71   :  { %v7981_v53 = vadd.f32 %v12209_v28, %v16355_v31  ;;  %v13514_v28 = vld [vmem:[%s17070_s3 + $0x684] ss:$16 sps:$4 sm:$0xff]   ;;  %v13515_v19 = vld [vmem:[%s17070_s3 + $0x688] ss:$16 sps:$4 sm:$0xff]   ;;  %v13523_v22 = vld [vmem:[%s17070_s3 + $0x6ac] ss:$16 sps:$4 sm:$0xff]  }
 0xd72   :  { %v13520_v29 = vld [vmem:[%s17070_s3 + $0x6a4] ss:$16 sps:$4 sm:$0xff]   ;;  %v13518_v48 = vld [vmem:[%s17070_s3 + $0x6a0] ss:$16 sps:$4 sm:$0xff]  }
 0xd73   :  { %v8021_v6 = vadd.f32 %v12231_v52, %v7981_v53  ;;  %v13517_v52 = vld [vmem:[%s17070_s3 + $0x68c] ss:$16 sps:$4 sm:$0xff]   ;;  %v13521_v53 = vld [vmem:[%s17070_s3 + $0x6a8] ss:$16 sps:$4 sm:$0xff]  }
 0xd7d   :  { %v8060_v30 = vpop.f32.mrb[124].mxu0 }
 0xd7e   :  { %v8061_v32 = vadd.f32 %v8060_v30, %v8021_v6  ;;  %v12585_v7 = vpop.f32.mrb[125].mxu0  ;;  %v13526_v6 = vld [vmem:[%s17070_s3 + $0x6c4] ss:$16 sps:$4 sm:$0xff]   ;;  %v13529_v30 = vld [vmem:[%s17070_s3 + $0x6cc] ss:$16 sps:$4 sm:$0xff]  }
 0xd7f   :  { %v8063_v8 = vpop.f32.mrb[126].mxu0  ;;  %v13527_v7 = vld [vmem:[%s17070_s3 + $0x6c8] ss:$16 sps:$4 sm:$0xff]  }
 0xd80   :  { %v8066_v9 = vmax.f32 %v8061_v32, 0.0  ;;  %v12586_v10 = vpop.f32.mrb[127].mxu0  ;;  %v13524_v32 = vld [vmem:[%s17070_s3 + $0x6c0] ss:$16 sps:$4 sm:$0xff]   ;;  %v13532_v8 = vld [vmem:[%s17070_s3 + $0x6e4] ss:$16 sps:$4 sm:$0xff]  }
 0xd81   :  { %v13535_v10 = vld [vmem:[%s17070_s3 + $0x6ec] ss:$16 sps:$4 sm:$0xff]  }
 0xd82   :  { %v8067_v50 = vpack.c.bf16 %v8066_v9, %v8066_v9  ;;  %v13530_v9 = vld [vmem:[%s17070_s3 + $0x6e0] ss:$16 sps:$4 sm:$0xff]  }
 0xd84   :  { %11376 = vmatmul.mubr.msk.bf16.vlgmr.msra.gmra.mrb[124].mxu1 %vm342_vm1, %v8067_v50  ;;  %11377 = vmatmul.mubr.msk.bf16.vlgmr.msra.gmra.mrb[128].mxu0 %vm342_vm1, %v8067_v50 }
 0xd85   :  { %12241 = vmatpush3.bf16.msra.mxu1 %v13472_v20  ;;  %12263 = vmatpush3.bf16.msra.mxu0 %v13474_v12  ;;  %v13538_v20 = vld [vmem:[%s17068_s1 + $0xc0] sm:$0xff]  }
 0xd86   :  { %12242 = vmatprep.subr.bf16.mxu1 %v13475_v33  ;;  %12264 = vmatprep.subr.bf16.mxu0 %v13477_v54 }
 0xd87   :  { %8612 = vmatprep.mubr.bf16.mxu1 %v11383_v36  ;;  %8652 = vmatprep.mubr.bf16.mxu0 %v11385_v16 }
 0xd89   :  { %12243 = vmatpush3.bf16.msra.mxu1 %v13476_v37  ;;  %12265 = vmatpush3.bf16.msra.mxu0 %v13478_v55 }
 0xd8a   :  { %12244 = vmatprep.subr.bf16.mxu1 %v13479_v38  ;;  %12266 = vmatprep.subr.bf16.mxu0 %v13481_v17 }
 0xd8d   :  { %12245 = vmatpush3.bf16.msra.mxu1 %v13480_v57  ;;  %12267 = vmatpush3.bf16.msra.mxu0 %v13482_v63 }
 0xd8e   :  { %12246 = vmatprep.subr.bf16.mxu1 %v13483_v39  ;;  %12268 = vmatprep.subr.bf16.mxu0 %v13485_v13 }
 0xd91   :  { %12247 = vmatpush3.bf16.msra.mxu1 %v13484_v0  ;;  %12269 = vmatpush3.bf16.msra.mxu0 %v13486_v60 }
 0xd92   :  { %12248 = vmatprep.subr.bf16.mxu1 %v13487_v40  ;;  %12270 = vmatprep.subr.bf16.mxu0 %v13489_v58 }
 0xd95   :  { %12249 = vmatpush3.bf16.msra.mxu1 %v13488_v2  ;;  %12271 = vmatpush3.bf16.msra.mxu0 %v13490_v62 }
 0xd96   :  { %12250 = vmatprep.subr.bf16.mxu1 %v13491_v41  ;;  %12272 = vmatprep.subr.bf16.mxu0 %v13493_v14 }
 0xd99   :  { %12251 = vmatpush3.bf16.msra.mxu1 %v13492_v42  ;;  %12273 = vmatpush3.bf16.msra.mxu0 %v13494_v43 }
 0xd9a   :  { %12252 = vmatprep.subr.bf16.mxu1 %v13495_v44  ;;  %12274 = vmatprep.subr.bf16.mxu0 %v13497_v45 }
 0xd9d   :  { %12253 = vmatpush3.bf16.msra.mxu1 %v13496_v46  ;;  %12275 = vmatpush3.bf16.msra.mxu0 %v13498_v49  ;;  %v16562_v46 = vld [vmem:[%s17069_s0 + $0x118] sm:$0xff]  ;;  %v16567_v49 = vld [vmem:[%s17069_s0 + $0x120] sm:$0xff] }
 0xd9e   :  { %12254 = vmatprep.subr.bf16.mxu1 %v13499_v59  ;;  %12276 = vmatprep.subr.bf16.mxu0 %v13501_v47  ;;  %v13537_v59 = vld [vmem:[%s17068_s1] sm:$0xff]  }
 0xd9f   :  { %v13539_v47 = vld [vmem:[%s17068_s1 + $0x80] sm:$0xff]  }
 0xda1   :  { %12255 = vmatpush3.bf16.msra.mxu1 %v13500_v23  ;;  %12277 = vmatpush3.bf16.msra.mxu0 %v13504_v3  ;;  %v13540_v3 = vld [vmem:[%s17068_s1 + $0x48] sm:$0xff]  }
 0xda2   :  { %12587 = vmatprep.subr.bf16.mxu1 %v13699_v35  ;;  %8801 = vmatprep.subr.bf16.mxu0 %v13514_v28  ;;  %v13547_v28 = vld [vmem:[%s17068_s1 + $0x90] sm:$0xff]  }
 0xda4   :  { %8613 = vmatmul.mubr.bf16.vlgmr.msra.gmra.mrb[128].mxu1 %v11382_v24  ;;  %8653 = vmatmul.mubr.bf16.vlgmr.msra.gmra.mrb[132].mxu0 %v11384_v4  ;;  %v13542_v24 = vld [vmem:[%s17068_s1 + $0xc8] sm:$0xff]   ;;  %v11447_v4 = vcombine.high %v16562_v46, %v16562_v46 }
 0xda5   :  { %12588 = vmatpush3.bf16.msra.mxu1 %v13507_v27  ;;  %12595 = vmatprep.mubr.msk.bf16.mxu1 %vm13700_vm0, %v13699_v35  ;;  %v11449_v27 = vcombine.high %v16567_v49, %v16567_v49 }
 0xda6   :  { %12589 = vmatprep.subr.bf16.mxu1 %v13699_v35  ;;  %8833 = vmatprep.mubr.bf16.mxu0 %v13701_v61 }
 0xda7   :  { %8802 = vmatpush1.bf16.msra.mxu0 %v13512_v5  ;;  %v13545_v5 = vld [vmem:[%s17068_s1 + $0x10] sm:$0xff]  }
 0xda8   :  { %8803 = vmatprep.subr.bf16.mxu0 %v13520_v29  ;;  %v13549_v29 = vld [vmem:[%s17068_s1 + $0x18] sm:$0xff]  }
 0xda9   :  { %12590 = vmatpush3.bf16.msra.mxu1 %v13508_v25  ;;  %v13541_v25 = vld [vmem:[%s17068_s1 + $0x8] sm:$0xff]  }
 0xdaa   :  { %12591 = vmatprep.subr.bf16.mxu1 %v13699_v35 }
 0xdab   :  { %8804 = vmatpush1.bf16.msra.mxu0 %v13518_v48  ;;  %v13552_v48 = vld [vmem:[%s17068_s1 + $0x60] sm:$0xff]  }
 0xdac   :  { %8805 = vmatprep.subr.bf16.mxu0 %v13526_v6  ;;  %v13553_v6 = vld [vmem:[%s17068_s1 + $0x20] sm:$0xff]  }
 0xdad   :  { %12592 = vmatpush3.bf16.msra.mxu1 %v13509_v15  ;;  %v13543_v15 = vld [vmem:[%s17068_s1 + $0x88] sm:$0xff]  }
 0xdae   :  { %12593 = vmatprep.subr.bf16.mxu1 %v13699_v35 }
 0xdaf   :  { %8806 = vmatpush1.bf16.msra.mxu0 %v13524_v32  ;;  %v13556_v32 = vld [vmem:[%s17068_s1 + $0x68] sm:$0xff]  }
 0xdb0   :  { %8807 = vmatprep.subr.bf16.mxu0 %v13532_v8  ;;  %v13557_v8 = vld [vmem:[%s17068_s1 + $0x28] sm:$0xff]  }
 0xdb1   :  { %12594 = vmatpush3.bf16.msra.mxu1 %v13510_v21  ;;  %v13544_v21 = vld [vmem:[%s17068_s1 + $0x50] sm:$0xff]  }
 0xdb2   :  { %8842 = vmatprep.subr.bf16.mxu1 %v13517_v52  ;;  %v13550_v52 = vld [vmem:[%s17068_s1 + $0xd8] sm:$0xff]  }
 0xdb3   :  { %8808 = vmatpush1.bf16.msra.mxu0 %v13530_v9  ;;  %v13559_v9 = vld [vmem:[%s17068_s1 + $0xa8] sm:$0xff]  }
 0xdb4   :  { %12596 = vmatmul.mubr.msk.bf16.vlgmr.msra.gmra.mrb[132].mxu1 %vm342_vm1, %v13511_v51  ;;  %12289 = vmatprep.subr.bf16.mxu0 %v13536_v34  ;;  %v13546_v51 = vld [vmem:[%s17068_s1 + $0xd0] sm:$0xff]  }
 0xdb5   :  { %8874 = vmatprep.mubr.bf16.mxu1 %v13701_v61  ;;  %8843 = vmatpush1.bf16.msra.mxu1 %v13515_v19  ;;  %v13548_v19 = vld [vmem:[%s17068_s1 + $0x58] sm:$0xff]   ;;  %v13561_v34 = vld [vmem:[%s17068_s1 + $0x30] sm:$0xff]  }
 0xdb6   :  { %8844 = vmatprep.subr.bf16.mxu1 %v13523_v22  ;;  %v13551_v22 = vld [vmem:[%s17068_s1 + $0x98] sm:$0xff]  }
 0xdb9   :  { %8845 = vmatpush1.bf16.msra.mxu1 %v13521_v53  ;;  %v13554_v53 = vld [vmem:[%s17068_s1 + $0xe0] sm:$0xff]  }
 0xdba   :  { %8846 = vmatprep.subr.bf16.mxu1 %v13529_v30  ;;  %v13555_v30 = vld [vmem:[%s17068_s1 + $0xa0] sm:$0xff]  }
 0xdbd   :  { %8847 = vmatpush1.bf16.msra.mxu1 %v13527_v7  ;;  %v13558_v7 = vld [vmem:[%s17068_s1 + $0xe8] sm:$0xff]  }
 0xdbe   :  { %8848 = vmatprep.subr.bf16.mxu1 %v13535_v10  ;;  %v13560_v10 = vld [vmem:[%s17068_s1 + $0x70] sm:$0xff]  }
 0xdc1   :  { %8849 = vmatpush1.bf16.msra.mxu1 %v13533_v11  ;;  %v13562_v11 = vld [vmem:[%s17068_s1 + $0xf0] sm:$0xff]  }
 0xdc2   :  { %12311 = vmatprep.subr.bf16.mxu1 %v13538_v20  ;;  %v13563_v20 = vld [vmem:[%s17068_s1 + $0xb0] sm:$0xff]  }
 0xe57   :  { %v8201_v12 = vpop.f32.mrb[124].mxu1  ;;  %v8242_v50 = vpop.f32.mrb[128].mxu0 }
 0xe58   :  { %v16547_v33 = vadd.f32 %v8201_v12, %v16341_v56  ;;  %v16550_v54 = vadd.f32 %v8242_v50, %v16344_v1  ;;  %v8203_v36 = vpop.f32.mrb[125].mxu1  ;;  %v8244_v16 = vpop.f32.mrb[129].mxu0  ;;  %v13564_v12 = vld [vmem:[%s17068_s1 + $0x78] sm:$0xff]  }
 0xe59   :  { %v16553_v37 = vadd.f32 %v8203_v36, %v16347_v26  ;;  %v16556_v55 = vadd.f32 %v8244_v16, %v16350_v18  ;;  %v8205_v38 = vpop.f32.mrb[126].mxu1  ;;  %v8246_v17 = vpop.f32.mrb[130].mxu0  ;;  %v13566_v50 = vld [vmem:[%s17068_s1 + $0xf8] sm:$0xff]  }
 0xe5a   :  { %v8206_v57 = vpop.f32.mrb[127].mxu1  ;;  %v8247_v63 = vpop.f32.mrb[131].mxu0  ;;  %v13565_v36 = vld [vmem:[%s17068_s1 + $0x38] sm:$0xff]   ;;  %v11446_v38 = vcombine.low %v16562_v46, %v16562_v46  ;;  %v11448_v17 = vcombine.low %v16567_v49, %v16567_v49  ;;  %v13601_v49 = vld [vmem:[%s17068_s1 + $0x40] sm:$0xff]  }
 0xe5b   :  { %v13569_v16 = vld [vmem:[%s17068_s1 + $0xb8] sm:$0xff]   ;;  %v13572_v57 = vld [vmem:[%s17068_s1 + $0x100] sm:$0xff]   ;;  %v13573_v63 = vld [vmem:[%s17068_s1 + $0x108] sm:$0xff]  }
 0xe5c   :  { %v13598_v46 = vld [vmem:[%s17070_s3 + $0x768] ss:$16 sps:$4 sm:$0xff]  }
 0xe77   :  { %v12256_v39 = vpop.f32.mrb[128].mxu1  ;;  %v12278_v13 = vpop.f32.mrb[132].mxu0 }
 0xe78   :  { %v12257_v0 = vpop.f32.mrb[129].mxu1  ;;  %v12279_v56 = vpop.f32.mrb[133].mxu0 }
 0xe79   :  { %v12258_v60 = vadd.f32 %v12257_v0, %v12256_v39  ;;  %v12259_v40 = vpop.f32.mrb[130].mxu1  ;;  %v12280_v1 = vadd.f32 %v12279_v56, %v12278_v13  ;;  %v12281_v58 = vpop.f32.mrb[134].mxu0  ;;  %v13574_v39 = vld [vmem:[%s17068_s1 + $0x110] sm:$0xff]   ;;  %v13575_v13 = vld [vmem:[%s17068_s1 + $0x118] sm:$0xff]   ;;  %v13576_v0 = vld [vmem:[%s17069_s0 + $0x128] ss:$0 sps:$4 sm:$0xff]  }
 0xe7a   :  { %v12260_v2 = vpop.f32.mrb[131].mxu1  ;;  %v12282_v62 = vpop.f32.mrb[135].mxu0  ;;  %v13577_v56 = vld [vmem:[%s17070_s3 + $0x700] ss:$16 sps:$4 sm:$0xff]   ;;  %v13580_v40 = vld [vmem:[%s17070_s3 + $0x708] ss:$16 sps:$4 sm:$0xff]  }
 0xe7b   :  { %v8615_v26 = vadd.f32 %v12258_v60, %v16355_v31  ;;  %v13579_v60 = vld [vmem:[%s17070_s3 + $0x704] ss:$16 sps:$4 sm:$0xff]   ;;  %v13588_v2 = vld [vmem:[%s17070_s3 + $0x72c] ss:$16 sps:$4 sm:$0xff]   ;;  %v13583_v62 = vld [vmem:[%s17070_s3 + $0x720] ss:$16 sps:$4 sm:$0xff]  }
 0xe7c   :  { %v13585_v58 = vld [vmem:[%s17070_s3 + $0x724] ss:$16 sps:$4 sm:$0xff]  }
 0xe7d   :  { %v8655_v41 = vadd.f32 %v12280_v1, %v8615_v26  ;;  %v13582_v1 = vld [vmem:[%s17070_s3 + $0x70c] ss:$16 sps:$4 sm:$0xff]   ;;  %v13586_v26 = vld [vmem:[%s17070_s3 + $0x728] ss:$16 sps:$4 sm:$0xff]  }
 0xe87   :  { %v8694_v14 = vpop.f32.mrb[132].mxu1 }
 0xe88   :  { %v8695_v18 = vadd.f32 %v8694_v14, %v8655_v41  ;;  %v12597_v42 = vpop.f32.mrb[133].mxu1  ;;  %v13591_v41 = vld [vmem:[%s17070_s3 + $0x744] ss:$16 sps:$4 sm:$0xff]   ;;  %v13594_v14 = vld [vmem:[%s17070_s3 + $0x74c] ss:$16 sps:$4 sm:$0xff]  }
 0xe89   :  { %v8697_v43 = vpop.f32.mrb[134].mxu1  ;;  %v13592_v42 = vld [vmem:[%s17070_s3 + $0x748] ss:$16 sps:$4 sm:$0xff]  }
 0xe8a   :  { %v8700_v44 = vmax.f32 %v8695_v18, 0.0  ;;  %v12598_v45 = vpop.f32.mrb[135].mxu1  ;;  %v13589_v18 = vld [vmem:[%s17070_s3 + $0x740] ss:$16 sps:$4 sm:$0xff]   ;;  %v13597_v43 = vld [vmem:[%s17070_s3 + $0x764] ss:$16 sps:$4 sm:$0xff]  }
 0xe8b   :  { %v13600_v45 = vld [vmem:[%s17070_s3 + $0x76c] ss:$16 sps:$4 sm:$0xff]  }
 0xe8c   :  { %v8701_v23 = vpack.c.bf16 %v8700_v44, %v8700_v44  ;;  %v13595_v44 = vld [vmem:[%s17070_s3 + $0x760] ss:$16 sps:$4 sm:$0xff]  }
 0xe8e   :  { %11440 = vmatmul.mubr.msk.bf16.vlgmr.msra.gmra.mrb[136].mxu0 %vm342_vm1, %v8701_v23  ;;  %11441 = vmatmul.mubr.msk.bf16.vlgmr.msra.gmra.mrb[136].mxu1 %vm342_vm1, %v8701_v23 }
 0xe8f   :  { %12290 = vmatpush3.bf16.msra.mxu0 %v13537_v59  ;;  %12312 = vmatpush3.bf16.msra.mxu1 %v13539_v47  ;;  %v13603_v59 = vld [vmem:[%s17068_s1 + $0xc0] sm:$0xff]  }
 0xe90   :  { %12291 = vmatprep.subr.bf16.mxu0 %v13540_v3  ;;  %12313 = vmatprep.subr.bf16.mxu1 %v13542_v24 }
 0xe91   :  { %9246 = vmatprep.mubr.bf16.mxu0 %v11447_v4  ;;  %9286 = vmatprep.mubr.bf16.mxu1 %v11449_v27 }
 0xe93   :  { %12292 = vmatpush3.bf16.msra.mxu0 %v13541_v25  ;;  %12314 = vmatpush3.bf16.msra.mxu1 %v13543_v15 }
 0xe94   :  { %12293 = vmatprep.subr.bf16.mxu0 %v13544_v21  ;;  %12315 = vmatprep.subr.bf16.mxu1 %v13546_v51 }
 0xe97   :  { %12294 = vmatpush3.bf16.msra.mxu0 %v13545_v5  ;;  %12316 = vmatpush3.bf16.msra.mxu1 %v13547_v28 }
 0xe98   :  { %12295 = vmatprep.subr.bf16.mxu0 %v13548_v19  ;;  %12317 = vmatprep.subr.bf16.mxu1 %v13550_v52 }
 0xe9b   :  { %12296 = vmatpush3.bf16.msra.mxu0 %v13549_v29  ;;  %12318 = vmatpush3.bf16.msra.mxu1 %v13551_v22 }
 0xe9c   :  { %12297 = vmatprep.subr.bf16.mxu0 %v13552_v48  ;;  %12319 = vmatprep.subr.bf16.mxu1 %v13554_v53 }
 0xe9f   :  { %12298 = vmatpush3.bf16.msra.mxu0 %v13553_v6  ;;  %12320 = vmatpush3.bf16.msra.mxu1 %v13555_v30 }
 0xea0   :  { %12299 = vmatprep.subr.bf16.mxu0 %v13556_v32  ;;  %12321 = vmatprep.subr.bf16.mxu1 %v13558_v7 }
 0xea3   :  { %12300 = vmatpush3.bf16.msra.mxu0 %v13557_v8  ;;  %12322 = vmatpush3.bf16.msra.mxu1 %v13559_v9 }
 0xea4   :  { %12301 = vmatprep.subr.bf16.mxu0 %v13560_v10  ;;  %12323 = vmatprep.subr.bf16.mxu1 %v13562_v11 }
 0xea7   :  { %12302 = vmatpush3.bf16.msra.mxu0 %v13561_v34  ;;  %12324 = vmatpush3.bf16.msra.mxu1 %v13563_v20  ;;  %v16763_v34 = vld [vmem:[%s17069_s0 + $0x12c] sm:$0xff]  ;;  %v16768_v20 = vld [vmem:[%s17069_s0 + $0x134] sm:$0xff] }
 0xea8   :  { %12303 = vmatprep.subr.bf16.mxu0 %v13564_v12  ;;  %12325 = vmatprep.subr.bf16.mxu1 %v13566_v50  ;;  %v13604_v12 = vld [vmem:[%s17068_s1 + $0x80] sm:$0xff]  }
 0xeab   :  { %12304 = vmatpush3.bf16.msra.mxu0 %v13565_v36  ;;  %12326 = vmatpush3.bf16.msra.mxu1 %v13569_v16  ;;  %v13605_v36 = vld [vmem:[%s17068_s1 + $0x48] sm:$0xff]  }
 0xeac   :  { %12599 = vmatprep.subr.bf16.mxu0 %v13699_v35  ;;  %9435 = vmatprep.subr.bf16.mxu1 %v13579_v60  ;;  %v13607_v16 = vld [vmem:[%s17068_s1 + $0xc8] sm:$0xff]   ;;  %v13613_v60 = vld [vmem:[%s17068_s1 + $0x58] sm:$0xff]  }
 0xeae   :  { %9247 = vmatmul.mubr.bf16.vlgmr.msra.gmra.mrb[140].mxu0 %v11446_v38  ;;  %9287 = vmatmul.mubr.bf16.vlgmr.msra.gmra.mrb[140].mxu1 %v11448_v17  ;;  %v11511_v38 = vcombine.high %v16763_v34, %v16763_v34  ;;  %v11513_v17 = vcombine.high %v16768_v20, %v16768_v20 }
 0xeaf   :  { %12600 = vmatpush3.bf16.msra.mxu0 %v13572_v57  ;;  %12607 = vmatprep.mubr.msk.bf16.mxu0 %vm13700_vm0, %v13699_v35  ;;  %v13606_v57 = vld [vmem:[%s17068_s1 + $0x8] sm:$0xff]  }
 0xeb0   :  { %12601 = vmatprep.subr.bf16.mxu0 %v13699_v35  ;;  %9467 = vmatprep.mubr.bf16.mxu1 %v13701_v61 }
 0xeb1   :  { %9436 = vmatpush1.bf16.msra.mxu1 %v13577_v56  ;;  %v13612_v56 = vld [vmem:[%s17068_s1 + $0x90] sm:$0xff]  }
 0xeb2   :  { %9437 = vmatprep.subr.bf16.mxu1 %v13585_v58  ;;  %v13616_v58 = vld [vmem:[%s17068_s1 + $0x98] sm:$0xff]  }
 0xeb3   :  { %12602 = vmatpush3.bf16.msra.mxu0 %v13573_v63  ;;  %v13608_v63 = vld [vmem:[%s17068_s1 + $0x88] sm:$0xff]  }
 0xeb4   :  { %12603 = vmatprep.subr.bf16.mxu0 %v13699_v35 }
 0xeb5   :  { %9438 = vmatpush1.bf16.msra.mxu1 %v13583_v62  ;;  %v13619_v62 = vld [vmem:[%s17068_s1 + $0xe0] sm:$0xff]  }
 0xeb6   :  { %9439 = vmatprep.subr.bf16.mxu1 %v13591_v41  ;;  %v13620_v41 = vld [vmem:[%s17068_s1 + $0xa0] sm:$0xff]  }
 0xeb7   :  { %12604 = vmatpush3.bf16.msra.mxu0 %v13574_v39  ;;  %v13609_v39 = vld [vmem:[%s17068_s1 + $0x50] sm:$0xff]  }
 0xeb8   :  { %12605 = vmatprep.subr.bf16.mxu0 %v13699_v35 }
 0xeb9   :  { %9440 = vmatpush1.bf16.msra.mxu1 %v13589_v18  ;;  %v13623_v18 = vld [vmem:[%s17068_s1 + $0xe8] sm:$0xff]  }
 0xeba   :  { %9441 = vmatprep.subr.bf16.mxu1 %v13597_v43  ;;  %v13624_v43 = vld [vmem:[%s17068_s1 + $0xa8] sm:$0xff]  }
 0xebb   :  { %12606 = vmatpush3.bf16.msra.mxu0 %v13575_v13  ;;  %v13611_v13 = vld [vmem:[%s17068_s1 + $0xd0] sm:$0xff]  }
 0xebc   :  { %9476 = vmatprep.subr.bf16.mxu0 %v13582_v1  ;;  %v13614_v1 = vld [vmem:[%s17068_s1 + $0x18] sm:$0xff]  }
 0xebd   :  { %9442 = vmatpush1.bf16.msra.mxu1 %v13595_v44  ;;  %v13625_v44 = vld [vmem:[%s17068_s1 + $0x70] sm:$0xff]  }
 0xebe   :  { %12608 = vmatmul.mubr.msk.bf16.vlgmr.msra.gmra.mrb[144].mxu0 %vm342_vm1, %v13576_v0  ;;  %12338 = vmatprep.subr.bf16.mxu1 %v13601_v49  ;;  %v13610_v0 = vld [vmem:[%s17068_s1 + $0x10] sm:$0xff]  }
 0xebf   :  { %9508 = vmatprep.mubr.bf16.mxu0 %v13701_v61  ;;  %9477 = vmatpush1.bf16.msra.mxu0 %v13580_v40  ;;  %v13615_v40 = vld [vmem:[%s17068_s1 + $0xd8] sm:$0xff]   ;;  %v13628_v49 = vld [vmem:[%s17068_s1 + $0xb0] sm:$0xff]  }
 0xec0   :  { %9478 = vmatprep.subr.bf16.mxu0 %v13588_v2  ;;  %v13617_v2 = vld [vmem:[%s17068_s1 + $0x60] sm:$0xff]  }
 0xec3   :  { %9479 = vmatpush1.bf16.msra.mxu0 %v13586_v26  ;;  %v13618_v26 = vld [vmem:[%s17068_s1 + $0x20] sm:$0xff]  }
 0xec4   :  { %9480 = vmatprep.subr.bf16.mxu0 %v13594_v14  ;;  %v13621_v14 = vld [vmem:[%s17068_s1 + $0x68] sm:$0xff]  }
 0xec7   :  { %9481 = vmatpush1.bf16.msra.mxu0 %v13592_v42  ;;  %v13622_v42 = vld [vmem:[%s17068_s1 + $0x28] sm:$0xff]  }
 0xec8   :  { %9482 = vmatprep.subr.bf16.mxu0 %v13600_v45  ;;  %v13627_v45 = vld [vmem:[%s17068_s1 + $0xf0] sm:$0xff]  }
 0xecb   :  { %9483 = vmatpush1.bf16.msra.mxu0 %v13598_v46  ;;  %v13626_v46 = vld [vmem:[%s17068_s1 + $0x30] sm:$0xff]  }
 0xecc   :  { %12360 = vmatprep.subr.bf16.mxu0 %v13603_v59  ;;  %v13629_v59 = vld [vmem:[%s17068_s1 + $0x78] sm:$0xff]  }
 0xf61   :  { %v8835_v47 = vpop.f32.mrb[136].mxu0  ;;  %v8876_v23 = vpop.f32.mrb[136].mxu1 }
 0xf62   :  { %v16748_v3 = vadd.f32 %v8835_v47, %v16547_v33  ;;  %v16751_v24 = vadd.f32 %v8876_v23, %v16550_v54  ;;  %v8837_v4 = vpop.f32.mrb[137].mxu0  ;;  %v8878_v27 = vpop.f32.mrb[137].mxu1  ;;  %v13631_v47 = vld [vmem:[%s17068_s1 + $0xf8] sm:$0xff]  }
 0xf63   :  { %v16754_v25 = vadd.f32 %v8837_v4, %v16553_v37  ;;  %v16757_v15 = vadd.f32 %v8878_v27, %v16556_v55  ;;  %v8839_v21 = vpop.f32.mrb[138].mxu0  ;;  %v8880_v51 = vpop.f32.mrb[138].mxu1  ;;  %v13630_v23 = vld [vmem:[%s17068_s1 + $0x38] sm:$0xff]   ;;  %v11510_v27 = vcombine.low %v16763_v34, %v16763_v34 }
 0xf64   :  { %v8840_v5 = vpop.f32.mrb[139].mxu0  ;;  %v8881_v28 = vpop.f32.mrb[139].mxu1  ;;  %v13634_v4 = vld [vmem:[%s17068_s1 + $0xb8] sm:$0xff]   ;;  %v11512_v21 = vcombine.low %v16768_v20, %v16768_v20  ;;  %v13637_v51 = vld [vmem:[%s17068_s1 + $0x100] sm:$0xff]  }
 0xf65   :  { %v13638_v5 = vld [vmem:[%s17068_s1 + $0x108] sm:$0xff]   ;;  %v13639_v28 = vld [vmem:[%s17068_s1 + $0x110] sm:$0xff]  }
 0xf81   :  { %v12305_v19 = vpop.f32.mrb[140].mxu0  ;;  %v12327_v52 = vpop.f32.mrb[140].mxu1 }
 0xf82   :  { %v12306_v29 = vpop.f32.mrb[141].mxu0  ;;  %v12328_v33 = vpop.f32.mrb[141].mxu1 }
 0xf83   :  { %v12307_v22 = vadd.f32 %v12306_v29, %v12305_v19  ;;  %v12308_v48 = vpop.f32.mrb[142].mxu0  ;;  %v12329_v54 = vadd.f32 %v12328_v33, %v12327_v52  ;;  %v12330_v53 = vpop.f32.mrb[142].mxu1  ;;  %v13640_v19 = vld [vmem:[%s17068_s1 + $0x118] sm:$0xff]   ;;  %v13642_v29 = vld [vmem:[%s17070_s3 + $0x780] ss:$16 sps:$4 sm:$0xff]  }
 0xf84   :  { %v12309_v6 = vpop.f32.mrb[143].mxu0  ;;  %v12331_v30 = vpop.f32.mrb[143].mxu1  ;;  %v13641_v52 = vld [vmem:[%s17069_s0 + $0x13c] ss:$0 sps:$4 sm:$0xff]   ;;  %v13644_v33 = vld [vmem:[%s17070_s3 + $0x784] ss:$16 sps:$4 sm:$0xff]  }
 0xf85   :  { %v9249_v37 = vadd.f32 %v12307_v22, %v16355_v31  ;;  %v13602_v31 = vld [vmem:[%s17068_s1] sm:$0xff]   ;;  %v13647_v22 = vld [vmem:[%s17070_s3 + $0x78c] ss:$16 sps:$4 sm:$0xff]   ;;  %v13651_v53 = vld [vmem:[%s17070_s3 + $0x7a8] ss:$16 sps:$4 sm:$0xff]  }
 0xf86   :  { %v13653_v48 = vld [vmem:[%s17070_s3 + $0x7ac] ss:$16 sps:$4 sm:$0xff]   ;;  %v13656_v6 = vld [vmem:[%s17070_s3 + $0x7c4] ss:$16 sps:$4 sm:$0xff]  }
 0xf87   :  { %v9289_v32 = vadd.f32 %v12329_v54, %v9249_v37  ;;  %v13648_v54 = vld [vmem:[%s17070_s3 + $0x7a0] ss:$16 sps:$4 sm:$0xff]   ;;  %v13659_v30 = vld [vmem:[%s17070_s3 + $0x7cc] ss:$16 sps:$4 sm:$0xff]  }
 0xf88   :  { %v13654_v37 = vld [vmem:[%s17070_s3 + $0x7c0] ss:$16 sps:$4 sm:$0xff]  }
 0xf91   :  { %v9328_v7 = vpop.f32.mrb[144].mxu0 }
 0xf92   :  { %v9329_v55 = vadd.f32 %v9328_v7, %v9289_v32  ;;  %v12609_v8 = vpop.f32.mrb[145].mxu0  ;;  %v13657_v32 = vld [vmem:[%s17070_s3 + $0x7c8] ss:$16 sps:$4 sm:$0xff]   ;;  %v13662_v7 = vld [vmem:[%s17070_s3 + $0x7e4] ss:$16 sps:$4 sm:$0xff]  }
 0xf93   :  { %v9331_v9 = vpop.f32.mrb[146].mxu0  ;;  %v13660_v8 = vld [vmem:[%s17070_s3 + $0x7e0] ss:$16 sps:$4 sm:$0xff]  }
 0xf94   :  { %v9334_v10 = vmax.f32 %v9329_v55, 0.0  ;;  %v12610_v11 = vpop.f32.mrb[147].mxu0  ;;  %v13665_v55 = vld [vmem:[%s17070_s3 + $0x7ec] ss:$16 sps:$4 sm:$0xff]   ;;  %v13663_v9 = vld [vmem:[%s17070_s3 + $0x7e8] ss:$16 sps:$4 sm:$0xff]  }
 0xf95   :  { %v13667_v11 = vld [vmem:[%s17072_s5 + $0xc0] sm:$0xff]  }
 0xf96   :  { %v9335_v50 = vpack.c.bf16 %v9334_v10, %v9334_v10  ;;  %v13666_v10 = vld [vmem:[%s17072_s5 + $0x40] sm:$0xff]  }
 0xf98   :  { %11504 = vmatmul.mubr.msk.bf16.vlgmr.msra.gmra.mrb[144].mxu1 %vm342_vm1, %v9335_v50  ;;  %11505 = vmatmul.mubr.msk.bf16.vlgmr.msra.gmra.mrb[148].mxu0 %vm342_vm1, %v9335_v50 }
 0xf99   :  { %12339 = vmatpush3.bf16.msra.mxu1 %v13602_v31  ;;  %12361 = vmatpush3.bf16.msra.mxu0 %v13604_v12 }
 0xf9a   :  { %12340 = vmatprep.subr.bf16.mxu1 %v13605_v36  ;;  %12362 = vmatprep.subr.bf16.mxu0 %v13607_v16 }
 0xf9b   :  { %9880 = vmatprep.mubr.bf16.mxu1 %v11511_v38  ;;  %9920 = vmatprep.mubr.bf16.mxu0 %v11513_v17 }
 0xf9d   :  { %12341 = vmatpush3.bf16.msra.mxu1 %v13606_v57  ;;  %12363 = vmatpush3.bf16.msra.mxu0 %v13608_v63 }
 0xf9e   :  { %12342 = vmatprep.subr.bf16.mxu1 %v13609_v39  ;;  %12364 = vmatprep.subr.bf16.mxu0 %v13611_v13 }
 0xfa1   :  { %12343 = vmatpush3.bf16.msra.mxu1 %v13610_v0  ;;  %12365 = vmatpush3.bf16.msra.mxu0 %v13612_v56 }
 0xfa2   :  { %12344 = vmatprep.subr.bf16.mxu1 %v13613_v60  ;;  %12366 = vmatprep.subr.bf16.mxu0 %v13615_v40 }
 0xfa5   :  { %12345 = vmatpush3.bf16.msra.mxu1 %v13614_v1  ;;  %12367 = vmatpush3.bf16.msra.mxu0 %v13616_v58 }
 0xfa6   :  { %12346 = vmatprep.subr.bf16.mxu1 %v13617_v2  ;;  %12368 = vmatprep.subr.bf16.mxu0 %v13619_v62 }
 0xfa9   :  { %12347 = vmatpush3.bf16.msra.mxu1 %v13618_v26  ;;  %12369 = vmatpush3.bf16.msra.mxu0 %v13620_v41 }
 0xfaa   :  { %12348 = vmatprep.subr.bf16.mxu1 %v13621_v14  ;;  %12370 = vmatprep.subr.bf16.mxu0 %v13623_v18 }
 0xfad   :  { %12349 = vmatpush3.bf16.msra.mxu1 %v13622_v42  ;;  %12371 = vmatpush3.bf16.msra.mxu0 %v13624_v43 }
 0xfae   :  { %12350 = vmatprep.subr.bf16.mxu1 %v13625_v44  ;;  %12372 = vmatprep.subr.bf16.mxu0 %v13627_v45  ;;  %v13668_v44 = vld [vmem:[%s17072_s5] sm:$0xff]  }
 0xfaf   :  { %v13669_v45 = vld [vmem:[%s17072_s5 + $0x80] sm:$0xff]  }
 0xfb1   :  { %12351 = vmatpush3.bf16.msra.mxu1 %v13626_v46  ;;  %12373 = vmatpush3.bf16.msra.mxu0 %v13628_v49  ;;  %v13670_v49 = vld [vmem:[%s17072_s5 + $0x48] sm:$0xff]  }
 0xfb2   :  { %12352 = vmatprep.subr.bf16.mxu1 %v13629_v59  ;;  %12374 = vmatprep.subr.bf16.mxu0 %v13631_v47  ;;  %v13671_v59 = vld [vmem:[%s17072_s5 + $0xc8] sm:$0xff]  }
 0xfb3   :  { %v13672_v47 = vld [vmem:[%s17072_s5 + $0x8] sm:$0xff]  }
 0xfb5   :  { %12353 = vmatpush3.bf16.msra.mxu1 %v13630_v23  ;;  %12375 = vmatpush3.bf16.msra.mxu0 %v13634_v4  ;;  %v13673_v23 = vld [vmem:[%s17072_s5 + $0x88] sm:$0xff]   ;;  %v13674_v4 = vld [vmem:[%s17072_s5 + $0x50] sm:$0xff]  }
 0xfb6   :  { %12611 = vmatprep.subr.bf16.mxu1 %v13699_v35  ;;  %10069 = vmatprep.subr.bf16.mxu0 %v13644_v33  ;;  %v13683_v33 = vld [vmem:[%s17072_s5 + $0xe0] sm:$0xff]  }
 0xfb8   :  { %9881 = vmatmul.mubr.bf16.vlgmr.msra.gmra.mrb[148].mxu1 %v11510_v27  ;;  %9921 = vmatmul.mubr.bf16.vlgmr.msra.gmra.mrb[152].mxu0 %v11512_v21  ;;  %v13675_v27 = vld [vmem:[%s17072_s5 + $0xd0] sm:$0xff]  }
 0xfb9   :  { %12612 = vmatpush3.bf16.msra.mxu1 %v13637_v51  ;;  %12619 = vmatprep.mubr.msk.bf16.mxu1 %vm13700_vm0, %v13699_v35  ;;  %v13676_v21 = vld [vmem:[%s17072_s5 + $0x10] sm:$0xff]  }
 0xfba   :  { %12613 = vmatprep.subr.bf16.mxu1 %v13699_v35  ;;  %10101 = vmatprep.mubr.bf16.mxu0 %v13701_v61  ;;  %v13677_v51 = vld [vmem:[%s17072_s5 + $0x90] sm:$0xff]  }
 0xfbb   :  { %10070 = vmatpush1.bf16.msra.mxu0 %v13642_v29  ;;  %v13682_v29 = vld [vmem:[%s17072_s5 + $0x60] sm:$0xff]  }
 0xfbd   :  { %12614 = vmatpush3.bf16.msra.mxu1 %v13638_v5  ;;  %v13678_v5 = vld [vmem:[%s17072_s5 + $0x58] sm:$0xff]  }
 0xfbe   :  { %12615 = vmatprep.subr.bf16.mxu1 %v13699_v35 }
 0xfc1   :  { %12616 = vmatpush3.bf16.msra.mxu1 %v13639_v28  ;;  %v13679_v28 = vld [vmem:[%s17072_s5 + $0xd8] sm:$0xff]  }
 0xfc2   :  { %12617 = vmatprep.subr.bf16.mxu1 %v13699_v35  ;;  %v13645_v35 = vld [vmem:[%s17070_s3 + $0x788] ss:$16 sps:$4 sm:$0xff]  }
 0xfc5   :  { %12618 = vmatpush3.bf16.msra.mxu1 %v13640_v19  ;;  %v13680_v19 = vld [vmem:[%s17072_s5 + $0x18] sm:$0xff]  }
 0xfc6   :  { %10110 = vmatprep.subr.bf16.mxu1 %v13647_v22  ;;  %v13685_v22 = vld [vmem:[%s17072_s5 + $0xa0] sm:$0xff]  }
 0xfc8   :  { %12620 = vmatmul.mubr.msk.bf16.vlgmr.msra.gmra.mrb[152].mxu1 %vm342_vm1, %v13641_v52  ;;  %v13681_v52 = vld [vmem:[%s17072_s5 + $0x98] sm:$0xff]  }
 0xfc9   :  { %10142 = vmatprep.mubr.bf16.mxu1 %v13701_v61  ;;  %v13650_v61 = vld [vmem:[%s17070_s3 + $0x7a4] ss:$16 sps:$4 sm:$0xff]   ;;  %10111 = vmatpush1.bf16.msra.mxu1 %v13645_v35 }
 0xfca   :  { %10071 = vmatprep.subr.bf16.mxu0 %v13650_v61  ;;  %10112 = vmatprep.subr.bf16.mxu1 %v13653_v48  ;;  %v13684_v35 = vld [vmem:[%s17072_s5 + $0x20] sm:$0xff]   ;;  %v13686_v61 = vld [vmem:[%s17072_s5 + $0x68] sm:$0xff]  }
 0xfcb   :  { %10072 = vmatpush1.bf16.msra.mxu0 %v13648_v54  ;;  %v13687_v48 = vld [vmem:[%s17072_s5 + $0xe8] sm:$0xff]  }
 0xfcc   :  { %10073 = vmatprep.subr.bf16.mxu0 %v13656_v6  ;;  %v13688_v54 = vld [vmem:[%s17072_s5 + $0x28] sm:$0xff]   ;;  %v13690_v6 = vld [vmem:[%s17072_s5 + $0x70] sm:$0xff]  }
 0xfcd   :  { %10113 = vmatpush1.bf16.msra.mxu1 %v13651_v53  ;;  %v13689_v53 = vld [vmem:[%s17072_s5 + $0xa8] sm:$0xff]  }
 0xfce   :  { %10114 = vmatprep.subr.bf16.mxu1 %v13659_v30  ;;  %v13691_v30 = vld [vmem:[%s17072_s5 + $0xf0] sm:$0xff]  }
 0xfcf   :  { %10074 = vmatpush1.bf16.msra.mxu0 %v13654_v37  ;;  %v13692_v37 = vld [vmem:[%s17072_s5 + $0x30] sm:$0xff]  }
 0xfd0   :  { %10075 = vmatprep.subr.bf16.mxu0 %v13662_v7  ;;  %v13694_v7 = vld [vmem:[%s17072_s5 + $0x78] sm:$0xff]  }
 0xfd1   :  { %10115 = vmatpush1.bf16.msra.mxu1 %v13657_v32  ;;  %v13693_v32 = vld [vmem:[%s17072_s5 + $0xb0] sm:$0xff]  }
 0xfd2   :  { %10116 = vmatprep.subr.bf16.mxu1 %v13665_v55  ;;  %v13695_v55 = vld [vmem:[%s17072_s5 + $0xf8] sm:$0xff]  }
 0xfd3   :  { %10076 = vmatpush1.bf16.msra.mxu0 %v13660_v8  ;;  %v13696_v8 = vld [vmem:[%s17072_s5 + $0x38] sm:$0xff]  }
 0xfd4   :  { %12387 = vmatprep.subr.bf16.mxu0 %v13666_v10  ;;  %v10169_v10 = vlaneseq }
 0xfd5   :  { %10117 = vmatpush1.bf16.msra.mxu1 %v13663_v9  ;;  %v13697_v9 = vld [vmem:[%s17072_s5 + $0xb8] sm:$0xff]  }
 0xfd6   :  { %12409 = vmatprep.subr.bf16.mxu1 %v13667_v11  ;;  %v10170_v11 = vshrl.u32 %v10169_v10, 7 }
0x106b   :  { %v9469_v34 = vpop.f32.mrb[144].mxu1  ;;  %v9510_v20 = vpop.f32.mrb[148].mxu0 }
0x106c   :  { %v16949_v31 = vadd.f32 %v9469_v34, %v16748_v3  ;;  %v16952_v12 = vadd.f32 %v9510_v20, %v16751_v24  ;;  %v9471_v50 = vpop.f32.mrb[145].mxu1  ;;  %v9512_v36 = vpop.f32.mrb[149].mxu0  ;;  %v11509_v3 = vld [vmem:[%s17071_s2] ss:$0 sm:$0xff]  ;;  %v10171_v34 = vsub.s32 0, %v10170_v11  ;;  %v10179_v20 = vsub.s32 2, %v10170_v11 }
0x106d   :  { %v16955_v16 = vadd.f32 %v9471_v50, %v16754_v25  ;;  %v16958_v38 = vadd.f32 %v9512_v36, %v16757_v15  ;;  %v9473_v17 = vpop.f32.mrb[146].mxu1  ;;  %v9514_v57 = vpop.f32.mrb[150].mxu0  ;;  %v10167_v50 = vld [vmem:[%s17073_s4] sm:$0xf]  ;;  %v10175_v36 = vsub.s32 1, %v10170_v11 }
0x106e   :  { %v9474_v63 = vpop.f32.mrb[147].mxu1  ;;  %v9515_v39 = vpop.f32.mrb[151].mxu0  ;;  %v10183_v17 = vsub.s32 3, %v10170_v11  ;;  %v10172_v57 = vrot.slane %v10167_v50, %v10171_v34 }
0x106f   :  { %v10180_v63 = vrot.slane %v10167_v50, %v10179_v20 }
0x108b   :  { %v12354_v13 = vpop.f32.mrb[148].mxu1  ;;  %v12376_v0 = vpop.f32.mrb[152].mxu0 }
0x108c   :  { %v12355_v24 = vpop.f32.mrb[149].mxu1  ;;  %v12377_v56 = vpop.f32.mrb[153].mxu0 }
0x108d   :  { %v12356_v60 = vadd.f32 %v12355_v24, %v12354_v13  ;;  %v12357_v40 = vpop.f32.mrb[150].mxu1  ;;  %v12378_v1 = vadd.f32 %v12377_v56, %v12376_v0  ;;  %v12379_v25 = vpop.f32.mrb[154].mxu0  ;;  %v10176_v0 = vrot.slane %v10167_v50, %v10175_v36 }
0x108e   :  { %v12358_v58 = vpop.f32.mrb[151].mxu1  ;;  %v12380_v2 = vpop.f32.mrb[155].mxu0 }
0x108f   :  { %v9883_v15 = vadd.f32 %v12356_v60, %v11509_v3  ;;  %v10184_v3 = vrot.slane %v10167_v50, %v10183_v17 }
0x1091   :  { %v9923_v62 = vadd.f32 %v12378_v1, %v9883_v15 }
0x109b   :  { %v9962_v26 = vpop.f32.mrb[152].mxu1 }
0x109c   :  { %v9963_v41 = vadd.f32 %v9962_v26, %v9923_v62  ;;  %v12621_v14 = vpop.f32.mrb[153].mxu1 }
0x109d   :  { %v9965_v18 = vpop.f32.mrb[154].mxu1 }
0x109e   :  { %v9968_v42 = vmax.f32 %v9963_v41, 0.0  ;;  %v12622_v43 = vpop.f32.mrb[155].mxu1 }
0x10a0   :  { %v9969_v46 = vpack.c.bf16 %v9968_v42, %v9968_v42 }
0x10a2   :  { %11568 = vmatmul.mubr.msk.bf16.vlgmr.msra.gmra.mrb[156].mxu0 %vm342_vm1, %v9969_v46  ;;  %11569 = vmatmul.mubr.msk.bf16.vlgmr.msra.gmra.mrb[156].mxu1 %vm342_vm1, %v9969_v46 }
0x10a3   :  { %12388 = vmatpush3.bf16.msra.mxu0 %v13668_v44  ;;  %12410 = vmatpush3.bf16.msra.mxu1 %v13669_v45 }
0x10a4   :  { %12389 = vmatprep.subr.bf16.mxu0 %v13670_v49  ;;  %12411 = vmatprep.subr.bf16.mxu1 %v13671_v59  ;;  %v11570_v59 = vld [vmem:[%s17074_s6] ss:$0 sm:$0xff] }
0x10a7   :  { %12390 = vmatpush3.bf16.msra.mxu0 %v13672_v47  ;;  %12412 = vmatpush3.bf16.msra.mxu1 %v13673_v23 }
0x10a8   :  { %12391 = vmatprep.subr.bf16.mxu0 %v13674_v4  ;;  %12413 = vmatprep.subr.bf16.mxu1 %v13675_v27 }
0x10ab   :  { %12392 = vmatpush3.bf16.msra.mxu0 %v13676_v21  ;;  %12414 = vmatpush3.bf16.msra.mxu1 %v13677_v51 }
0x10ac   :  { %12393 = vmatprep.subr.bf16.mxu0 %v13678_v5  ;;  %12415 = vmatprep.subr.bf16.mxu1 %v13679_v28 }
0x10af   :  { %12394 = vmatpush3.bf16.msra.mxu0 %v13680_v19  ;;  %12416 = vmatpush3.bf16.msra.mxu1 %v13681_v52 }
0x10b0   :  { %12395 = vmatprep.subr.bf16.mxu0 %v13682_v29  ;;  %12417 = vmatprep.subr.bf16.mxu1 %v13683_v33 }
0x10b3   :  { %12396 = vmatpush3.bf16.msra.mxu0 %v13684_v35  ;;  %12418 = vmatpush3.bf16.msra.mxu1 %v13685_v22 }
0x10b4   :  { %12397 = vmatprep.subr.bf16.mxu0 %v13686_v61  ;;  %12419 = vmatprep.subr.bf16.mxu1 %v13687_v48 }
0x10b7   :  { %12398 = vmatpush3.bf16.msra.mxu0 %v13688_v54  ;;  %12420 = vmatpush3.bf16.msra.mxu1 %v13689_v53 }
0x10b8   :  { %12399 = vmatprep.subr.bf16.mxu0 %v13690_v6  ;;  %12421 = vmatprep.subr.bf16.mxu1 %v13691_v30 }
0x10bb   :  { %12400 = vmatpush3.bf16.msra.mxu0 %v13692_v37  ;;  %12422 = vmatpush3.bf16.msra.mxu1 %v13693_v32 }
0x10bc   :  { %12401 = vmatprep.subr.bf16.mxu0 %v13694_v7  ;;  %12423 = vmatprep.subr.bf16.mxu1 %v13695_v55 }
0x10bf   :  { %12402 = vmatpush3.bf16.msra.mxu0 %v13696_v8  ;;  %12424 = vmatpush3.bf16.msra.mxu1 %v13697_v9 }
0x1175   :  { %v10103_v39 = vpop.f32.mrb[156].mxu0  ;;  %v10144_v13 = vpop.f32.mrb[156].mxu1 }
0x1176   :  { %v10155_v24 = vadd.f32 %v10103_v39, %v16949_v31  ;;  %v10157_v56 = vadd.f32 %v10144_v13, %v16952_v12  ;;  %v10105_v60 = vpop.f32.mrb[157].mxu0  ;;  %v10146_v40 = vpop.f32.mrb[157].mxu1 }
0x1177   :  { %v10156_v1 = vadd.f32 %v10105_v60, %v16955_v16  ;;  %v10158_v25 = vadd.f32 %v10146_v40, %v16958_v38  ;;  %v10107_v58 = vpop.f32.mrb[158].mxu0  ;;  %v10148_v2 = vpop.f32.mrb[158].mxu1 }
0x1178   :  { %v10189_v15 = vadd.f32 %v10172_v57, %v10155_v24  ;;  %v10191_v62 = vadd.f32 %v10180_v63, %v10157_v56  ;;  %v10108_v26 = vpop.f32.mrb[159].mxu0  ;;  %v10149_v41 = vpop.f32.mrb[159].mxu1 }
0x1179   :  { %v10190_v14 = vadd.f32 %v10176_v0, %v10156_v1  ;;  %v10192_v18 = vadd.f32 %v10184_v3, %v10158_v25 }
0x117a   :  { %v10193_v42 = vmax.f32 %v10189_v15, 0.0  ;;  %v10195_v43 = vmax.f32 %v10191_v62, 0.0 }
0x117b   :  { %v10194_v44 = vmax.f32 %v10190_v14, 0.0  ;;  %v10196_v31 = vmax.f32 %v10192_v18, 0.0 }
0x117c   :  { %v10197_v46 = vpack.c.bf16 %v10193_v42, %v10193_v42  ;;  %v10199_v49 = vpack.c.bf16 %v10195_v43, %v10195_v43 }
0x117d   :  { %v10198_v45 = vpack.c.bf16 %v10194_v44, %v10194_v44  ;;  %v10200_v12 = vpack.c.bf16 %v10196_v31, %v10196_v31 }
0x117f   :  { %10496 = vmatprep.mubr.bf16.mxu0 %v10198_v45  ;;  %10536 = vmatprep.mubr.bf16.mxu1 %v10200_v12 }
0x1180   :  { %10497 = vmatmul.mubr.bf16.vlgmr.msra.gmra.mrb[160].mxu0 %v10197_v46  ;;  %10537 = vmatmul.mubr.bf16.vlgmr.msra.gmra.mrb[160].mxu1 %v10199_v49 }
0x1253   :  { %v12403_v16 = vpop.f32.mrb[160].mxu0  ;;  %v12425_v38 = vpop.f32.mrb[160].mxu1 }
0x1254   :  { %v12404_v47 = vpop.f32.mrb[161].mxu0  ;;  %v12426_v23 = vpop.f32.mrb[161].mxu1 }
0x1255   :  { %v12405_v4 = vadd.f32 %v12404_v47, %v12403_v16  ;;  %v12427_v27 = vadd.f32 %v12426_v23, %v12425_v38  ;;  %v12406_v21 = vpop.f32.mrb[162].mxu0  ;;  %v12428_v51 = vpop.f32.mrb[162].mxu1 }
0x1256   :  { %v12407_v5 = vpop.f32.mrb[163].mxu0  ;;  %v12429_v28 = vpop.f32.mrb[163].mxu1 }
0x1257   :  { %v10499_v19 = vadd.f32 %v12405_v4, %v11570_v59 }
0x1259   :  { %v10539_v52 = vadd.f32 %v12427_v27, %v10499_v19 }
0x125b   :  { %10544 = vst [vmem:[%s17075_s7] sm:$0xff] %v10539_v52 }

</bundles_post_ra>
